<compile_context>
chip_gen: v6e
topology: v6e:2x2x1
jax: 0.10.0
libtpu: 0.0.40
codegen_flags: <defaults>
</compile_context>

<pallas_src>
import math
import jax
import jax.numpy as jnp
from jax import lax
from jax.experimental import pallas as pl
from jax.experimental.pallas import tpu as pltpu

# ---------------- configuration (small, consistent with the module) ----------
B = 2               # batch
N_IN = 4            # Block n_inputs (channels after skip concat)
N_OUT = 6           # Block n_outputs
DIM = 16            # UpsamplingBlock `dim`; Block works on 2*DIM
D = 2 * DIM         # spatial length == LayerNorm width inside Block (32)
NDIFF = 8           # number_of_diffusions
KSIZE = 5
N_SC = (N_IN + N_OUT) // 2 + 1      # 6
HID = 16            # SelfAttention hidden_dim (qkv channels == MHA sequence length)
HEADS = 4
HEAD_DIM = D // HEADS               # 8
DIM_EMBED = 64
DIM_LATENT = 128
C_UP = N_IN // 2    # channels of the transposed conv (2)

PACK_COLS = 128     # lane width of the packed-weight buffer

# (name, 2-D packed shape) -- order defines the packed layout
PACK_SHAPES = (
    ("up_wstack", (4 * C_UP, C_UP)),          # vstack_k of convT weight[:, :, k].T
    ("up_b", (C_UP, 1)),
    ("up_T", (4 * DIM, 2 * DIM)),             # vstack_k of stride-2 scatter matrices
    ("embed_table", (NDIFF, DIM_EMBED)),
    ("te_fc1_wT", (DIM_EMBED, DIM_LATENT)),
    ("te_fc1_b", (1, DIM_LATENT)),
    ("te_fc2_wT", (DIM_LATENT, D)),
    ("te_fc2_b", (1, D)),
    ("te_c1_w", (N_IN, 1)),
    ("te_c1_b", (N_IN, 1)),
    ("te_co_w", (N_IN, N_IN)),
    ("te_co_b", (N_IN, 1)),
    ("pre_w2", (N_SC, KSIZE * N_IN)),          # im2col weight (Cout, K*Cin)
    ("pre_b", (N_SC, 1)),
    ("ln1_g", (1, D)),
    ("ln1_b", (1, D)),
    ("sc_w", (N_SC, N_SC)),
    ("sc_b", (N_SC, 1)),
    ("at_ln_g", (1, D)),
    ("at_ln_b", (1, D)),
    ("qkv_w", (3 * HID, N_SC)),
    ("wqT", (D, D)),
    ("wkT", (D, D)),
    ("wvT", (D, D)),
    ("bq", (1, D)),
    ("bk", (1, D)),
    ("bv", (1, D)),
    ("woT", (D, D)),
    ("bo", (1, D)),
    ("to_out_w", (N_SC, HID)),
    ("to_out_b", (N_SC, 1)),
    ("post_w2", (N_OUT, KSIZE * N_SC)),        # im2col weight (Cout, K*Cin)
    ("post_b", (N_OUT, 1)),
    ("ln2_g", (1, D)),
    ("ln2_b", (1, D)),
    ("res_w", (N_OUT, N_IN)),
    ("res_b", (N_OUT, 1)),
)


def _round8(n):
    return ((n + 7) // 8) * 8


def _build_layout():
    layout = {}
    off = 0
    for name, (r, c) in PACK_SHAPES:
        layout[name] = (off, r, c)
        off += _round8(r)                      # 8-row aligned -> tile-aligned slices
    return layout, off


LAYOUT, PACK_ROWS = _build_layout()            # PACK_ROWS == 664


# ---------------- in-kernel math helpers -------------------------------------
def _mish(x):
    # x * tanh(softplus(x)), numerically stable softplus
    sp = jnp.maximum(x, 0.0) + jnp.log1p(jnp.exp(-jnp.abs(x)))
    return x * jnp.tanh(sp)


def _layer_norm(x, g, b, eps=1e-5):
    mu = jnp.mean(x, axis=-1, keepdims=True)
    var = jnp.mean((x - mu) ** 2, axis=-1, keepdims=True)
    return (x - mu) * lax.rsqrt(var + eps) * g + b


def _softmax(x):
    m = jnp.max(x, axis=-1, keepdims=True)
    e = jnp.exp(x - m)
    return e * pl.reciprocal(jnp.sum(e, axis=-1, keepdims=True), approx=True)


def _conv1d_same_im2col(x, w2, b, ksize):
    # x: (Cin, L); w2: (Cout, K*Cin) with w2[co, k*Cin+ci] = w[co, ci, k]; b: (Cout,1)
    cin, L = x.shape
    pad = ksize // 2
    xp = jnp.concatenate(
        [jnp.zeros((cin, pad), x.dtype), x, jnp.zeros((cin, pad), x.dtype)], axis=1)
    xcol = jnp.concatenate([xp[:, k:k + L] for k in range(ksize)], axis=0)  # (K*Cin, L)
    return jnp.dot(w2, xcol, preferred_element_type=jnp.float32) + b


# ---------------- fused kernel: upsample + concat + Block (whole batch) -------
def fused_kernel(t_ref, x_ref, h_ref, w_ref, out_ref):
    def load(name):
        off, r, c = LAYOUT[name]
        return w_ref[off:off + r, 0:c]

    W = {name: load(name) for name, _ in PACK_SHAPES}   # hoisted, loaded once
    g = W.__getitem__
    scale = 1.0 / math.sqrt(HEAD_DIM)

    for b in range(B):                                  # whole batch in one grid step
        xb = x_ref[b]                                   # (C_UP, DIM)
        hb = h_ref[b]                                   # (N_IN - C_UP, D)
        tb = t_ref[b]                                   # int32 scalar (SMEM)

        # ---- ConvTranspose1d(C_UP, C_UP, k=4, stride=2, padding=1) ----
        y_all = jnp.dot(g("up_wstack"), xb,
                        preferred_element_type=jnp.float32)        # (4*C_UP, DIM)
        T_all = g("up_T")                                          # (4*DIM, 2*DIM)
        acc = jnp.zeros((C_UP, 2 * DIM), jnp.float32)
        for k in range(4):
            acc = acc + jnp.dot(y_all[k * C_UP:(k + 1) * C_UP],
                                T_all[k * DIM:(k + 1) * DIM],
                                preferred_element_type=jnp.float32)
        up = acc + g("up_b")                                       # (C_UP, D)

        # ---- skip-connection concat along channels (torch.cat([x, h], dim=1)) ----
        x0 = jnp.concatenate([up, hb], axis=0)                     # (N_IN, D)

        # ---- diffusion-step embedding gather (in-kernel, masked reduce) ----
        tbl = g("embed_table")                                     # (NDIFF, 64)
        rid = lax.broadcasted_iota(jnp.int32, (NDIFF, DIM_EMBED), 0)
        emb = jnp.sum(jnp.where(rid == tb, tbl, 0.0),
                      axis=0, keepdims=True)                       # (1, 64)

        # ---- TimeEmbedding ----
        h1 = _mish(jnp.dot(emb, g("te_fc1_wT"),
                           preferred_element_type=jnp.float32) + g("te_fc1_b"))
        te = jnp.dot(h1, g("te_fc2_wT"),
                     preferred_element_type=jnp.float32) + g("te_fc2_b")    # (1, D)
        te_m = _mish(te)
        x1 = _mish(g("te_c1_w") * te_m + g("te_c1_b"))                      # (N_IN, D)
        t_out = jnp.dot(g("te_co_w"), x1 + te,
                        preferred_element_type=jnp.float32) + g("te_co_b")  # (N_IN, D)

        x = x0 + t_out

        # ---- pre-shortcut conv (k=5 same, im2col) + LN + mish + 1x1 shortcut ----
        s = _conv1d_same_im2col(x, g("pre_w2"), g("pre_b"), KSIZE)          # (N_SC, D)
        s = _mish(_layer_norm(s, g("ln1_g"), g("ln1_b")))
        s = jnp.dot(g("sc_w"), s, preferred_element_type=jnp.float32) + g("sc_b")

        # ---- SelfAttention ----
        xn = _layer_norm(s, g("at_ln_g"), g("at_ln_b"))
        qkv = jnp.dot(g("qkv_w"), xn, preferred_element_type=jnp.float32)   # (3*HID, D)
        q, k_, v = qkv[:HID], qkv[HID:2 * HID], qkv[2 * HID:]
        qp = jnp.dot(q, g("wqT"), preferred_element_type=jnp.float32) + g("bq")
        kp = jnp.dot(k_, g("wkT"), preferred_element_type=jnp.float32) + g("bk")
        vp = jnp.dot(v, g("wvT"), preferred_element_type=jnp.float32) + g("bv")
        heads_out = []
        for hh in range(HEADS):
            sl = slice(hh * HEAD_DIM, (hh + 1) * HEAD_DIM)
            qh, kh, vh = qp[:, sl], kp[:, sl], vp[:, sl]
            sc = lax.dot_general(qh, kh, (((1,), (1,)), ((), ())),
                                 preferred_element_type=jnp.float32) * scale
            p = _softmax(sc)
            heads_out.append(jnp.dot(p, vh, preferred_element_type=jnp.float32))
        ho = jnp.concatenate(heads_out, axis=1)                             # (HID, D)
        mo = jnp.dot(ho, g("woT"), preferred_element_type=jnp.float32) + g("bo")
        att = jnp.dot(g("to_out_w"), mo,
                      preferred_element_type=jnp.float32) + g("to_out_b")   # (N_SC, D)
        s = att + s

        # ---- post-shortcut conv + LN + mish + residual 1x1 conv ----
        o = _conv1d_same_im2col(s, g("post_w2"), g("post_b"), KSIZE)        # (N_OUT, D)
        o = _mish(_layer_norm(o, g("ln2_g"), g("ln2_b")))
        res = jnp.dot(g("res_w"), x0, preferred_element_type=jnp.float32) + g("res_b")
        out_ref[b] = (o + res).astype(out_ref.dtype)


# ---------------- parameters (deterministic, synthetic) -----------------------
def init_params(key):
    keys = iter(jax.random.split(key, 64))

    def rnd(shape, scale=0.1):
        return (scale * jax.random.normal(next(keys), shape)).astype(jnp.float32)

    p = {}
    # ConvTranspose1d(C_UP, C_UP, 4, stride=2, padding=1); torch weight (Cin, Cout, 4)
    up_w = rnd((C_UP, C_UP, 4))
    p["up_wstack"] = jnp.concatenate([up_w[:, :, k].T for k in range(4)], axis=0)
    p["up_b"] = rnd((C_UP, 1))
    # scatter matrices: T_k[i, o] = 1 if o == 2*i - 1 + k (stride=2, pad=1)
    ii = jnp.arange(DIM)[:, None]
    oo = jnp.arange(2 * DIM)[None, :]
    p["up_T"] = jnp.concatenate(
        [(oo == 2 * ii - 1 + k).astype(jnp.float32) for k in range(4)], axis=0)

    # TimeEmbedding sinusoidal table
    half = DIM_EMBED // 2
    freq = jnp.exp(jnp.arange(half, dtype=jnp.float32) * (-10.0 / (half - 1)))
    tt = jnp.arange(1, NDIFF + 1, dtype=jnp.float32)[:, None] * freq[None, :]
    p["embed_table"] = jnp.concatenate([jnp.sin(tt), jnp.cos(tt)], axis=-1)  # (8, 64)

    p["te_fc1_wT"] = rnd((DIM_EMBED, DIM_LATENT))
    p["te_fc1_b"] = rnd((1, DIM_LATENT))
    p["te_fc2_wT"] = rnd((DIM_LATENT, D))
    p["te_fc2_b"] = rnd((1, D))
    p["te_c1_w"] = rnd((N_IN, 1))        # Conv1d(1, N_IN, 1) weight[:, 0, 0]
    p["te_c1_b"] = rnd((N_IN, 1))
    p["te_co_w"] = rnd((N_IN, N_IN))     # Conv1d(N_IN, N_IN, 1)
    p["te_co_b"] = rnd((N_IN, 1))

    # Block convs / norms (im2col weight: (Cout, Cin, K) -> (Cout, K*Cin))
    pre_w = rnd((N_SC, N_IN, KSIZE))
    p["pre_w2"] = jnp.transpose(pre_w, (0, 2, 1)).reshape(N_SC, KSIZE * N_IN)
    p["pre_b"] = rnd((N_SC, 1))
    p["ln1_g"] = jnp.ones((1, D), jnp.float32)
    p["ln1_b"] = jnp.zeros((1, D), jnp.float32)
    p["sc_w"] = rnd((N_SC, N_SC))
    p["sc_b"] = rnd((N_SC, 1))

    # SelfAttention(vector_size=D, dim=N_SC, hidden_dim=HID, num_heads=HEADS)
    p["at_ln_g"] = jnp.ones((1, D), jnp.float32)
    p["at_ln_b"] = jnp.zeros((1, D), jnp.float32)
    p["qkv_w"] = rnd((3 * HID, N_SC))    # Conv1d(N_SC, 3*HID, 1, bias=False)
    p["wqT"] = rnd((D, D)); p["wkT"] = rnd((D, D)); p["wvT"] = rnd((D, D))
    p["bq"] = rnd((1, D)); p["bk"] = rnd((1, D)); p["bv"] = rnd((1, D))
    p["woT"] = rnd((D, D)); p["bo"] = rnd((1, D))
    p["to_out_w"] = rnd((N_SC, HID))     # Conv1d(HID, N_SC, 1)
    p["to_out_b"] = rnd((N_SC, 1))

    post_w = rnd((N_OUT, N_SC, KSIZE))
    p["post_w2"] = jnp.transpose(post_w, (0, 2, 1)).reshape(N_OUT, KSIZE * N_SC)
    p["post_b"] = rnd((N_OUT, 1))
    p["ln2_g"] = jnp.ones((1, D), jnp.float32)
    p["ln2_b"] = jnp.zeros((1, D), jnp.float32)
    p["res_w"] = rnd((N_OUT, N_IN))      # res_conv (N_IN != N_OUT)
    p["res_b"] = rnd((N_OUT, 1))
    return p


def pack_params(p):
    buf = jnp.zeros((PACK_ROWS, PACK_COLS), jnp.float32)
    for name, (r, c) in PACK_SHAPES:
        off, _, _ = LAYOUT[name]
        buf = buf.at[off:off + r, :c].set(p[name].astype(jnp.float32))
    return buf


# ---------------- wrapper ------------------------------------------------------
def upsampling_block_forward(x, h, t, condition, packed_weights):
    # TODO(synk): `condition` and Block.down are unused by the reference forward.
    del condition
    assert x.shape[0] == B

    grid_spec = pltpu.PrefetchScalarGridSpec(
        num_scalar_prefetch=1,            # t -> SMEM, gathered in-kernel
        grid=(1,),                        # whole batch in a single grid step
        in_specs=[
            pl.BlockSpec((B, C_UP, DIM), lambda i, t_ref: (0, 0, 0)),
            pl.BlockSpec((B, N_IN - C_UP, D), lambda i, t_ref: (0, 0, 0)),
            pl.BlockSpec((PACK_ROWS, PACK_COLS), lambda i, t_ref: (0, 0)),
        ],
        out_specs=pl.BlockSpec((B, N_OUT, D), lambda i, t_ref: (0, 0, 0)),
    )
    return pl.pallas_call(
        fused_kernel,
        out_shape=jax.ShapeDtypeStruct((B, N_OUT, D), jnp.float32),
        grid_spec=grid_spec,
        compiler_params=pltpu.CompilerParams(dimension_semantics=("arbitrary",)),
    )(t.astype(jnp.int32), x, h, packed_weights)


# ---------------- main ---------------------------------------------------------
if __name__ == "__main__":
    root = jax.random.PRNGKey(0)
    kp, kx, kh = jax.random.split(root, 3)
    params = init_params(kp)
    packed = pack_params(params)

    x = jax.random.normal(kx, (B, C_UP, DIM), dtype=jnp.float32)             # (2, 2, 16)
    h = jax.random.normal(kh, (B, N_IN - C_UP, D), dtype=jnp.float32)        # (2, 2, 32)
    t = jnp.array([1, 5], dtype=jnp.int32)

    out = upsampling_block_forward(x, h, t, None, packed)
    out = jax.block_until_ready(out)
    assert out.shape == (B, N_OUT, D), out.shape
    assert bool(jnp.all(jnp.isfinite(out)))
    print("KERNEL_OK")
</pallas_src>

<mosaic_0001>
module attributes {stable_mosaic.version = 11 : i64} {
  func.func @fused_kernel(%arg0: i32, %arg1: memref<2xi32, #tpu.memory_space<smem>>, %arg2: memref<2x2x16xf32, #tpu.memory_space<vmem>>, %arg3: memref<2x2x32xf32, #tpu.memory_space<vmem>>, %arg4: memref<664x128xf32, #tpu.memory_space<vmem>>, %arg5: memref<2x6x32xf32, #tpu.memory_space<vmem>>) attributes {dimension_semantics = [#tpu.dimension_semantics<arbitrary>], iteration_bounds = array<i64: 1>, scalar_prefetch = 1 : i64, scratch_operands = 0 : i64, tpu.core_type = #tpu.core_type<tc>, window_params = [{pipeline_mode = #tpu.pipeline_mode<synchronous>, transform_indices = @transform_0, window_bounds = array<i64: 2, 2, 16>}, {pipeline_mode = #tpu.pipeline_mode<synchronous>, transform_indices = @transform_1, window_bounds = array<i64: 2, 2, 32>}, {pipeline_mode = #tpu.pipeline_mode<synchronous>, transform_indices = @transform_2, window_bounds = array<i64: 664, 128>}, {pipeline_mode = #tpu.pipeline_mode<synchronous>, transform_indices = @transform_3, window_bounds = array<i64: 2, 6, 32>}]} {
    %c0 = arith.constant 0 : index
    %c0_0 = arith.constant 0 : index
    %0 = vector.load %arg4[%c0, %c0_0] : memref<664x128xf32, #tpu.memory_space<vmem>>, vector<8x2xf32>
    %c8 = arith.constant 8 : index
    %c0_1 = arith.constant 0 : index
    %1 = vector.load %arg4[%c8, %c0_1] : memref<664x128xf32, #tpu.memory_space<vmem>>, vector<2x1xf32>
    %c16 = arith.constant 16 : index
    %c0_2 = arith.constant 0 : index
    %2 = vector.load %arg4[%c16, %c0_2] : memref<664x128xf32, #tpu.memory_space<vmem>>, vector<64x32xf32>
    %c80 = arith.constant 80 : index
    %c0_3 = arith.constant 0 : index
    %3 = vector.load %arg4[%c80, %c0_3] : memref<664x128xf32, #tpu.memory_space<vmem>>, vector<8x64xf32>
    %c88 = arith.constant 88 : index
    %c0_4 = arith.constant 0 : index
    %4 = vector.load %arg4[%c88, %c0_4] : memref<664x128xf32, #tpu.memory_space<vmem>>, vector<64x128xf32>
    %c152 = arith.constant 152 : index
    %c0_5 = arith.constant 0 : index
    %5 = vector.load %arg4[%c152, %c0_5] : memref<664x128xf32, #tpu.memory_space<vmem>>, vector<1x128xf32>
    %c160 = arith.constant 160 : index
    %c0_6 = arith.constant 0 : index
    %6 = vector.load %arg4[%c160, %c0_6] : memref<664x128xf32, #tpu.memory_space<vmem>>, vector<128x32xf32>
    %c288 = arith.constant 288 : index
    %c0_7 = arith.constant 0 : index
    %7 = vector.load %arg4[%c288, %c0_7] : memref<664x128xf32, #tpu.memory_space<vmem>>, vector<1x32xf32>
    %c296 = arith.constant 296 : index
    %c0_8 = arith.constant 0 : index
    %8 = vector.load %arg4[%c296, %c0_8] : memref<664x128xf32, #tpu.memory_space<vmem>>, vector<4x1xf32>
    %c304 = arith.constant 304 : index
    %c0_9 = arith.constant 0 : index
    %9 = vector.load %arg4[%c304, %c0_9] : memref<664x128xf32, #tpu.memory_space<vmem>>, vector<4x1xf32>
    %c312 = arith.constant 312 : index
    %c0_10 = arith.constant 0 : index
    %10 = vector.load %arg4[%c312, %c0_10] : memref<664x128xf32, #tpu.memory_space<vmem>>, vector<4x4xf32>
    %c320 = arith.constant 320 : index
    %c0_11 = arith.constant 0 : index
    %11 = vector.load %arg4[%c320, %c0_11] : memref<664x128xf32, #tpu.memory_space<vmem>>, vector<4x1xf32>
    %c328 = arith.constant 328 : index
    %c0_12 = arith.constant 0 : index
    %12 = vector.load %arg4[%c328, %c0_12] : memref<664x128xf32, #tpu.memory_space<vmem>>, vector<6x20xf32>
    %c336 = arith.constant 336 : index
    %c0_13 = arith.constant 0 : index
    %13 = vector.load %arg4[%c336, %c0_13] : memref<664x128xf32, #tpu.memory_space<vmem>>, vector<6x1xf32>
    %c344 = arith.constant 344 : index
    %c0_14 = arith.constant 0 : index
    %14 = vector.load %arg4[%c344, %c0_14] : memref<664x128xf32, #tpu.memory_space<vmem>>, vector<1x32xf32>
    %c352 = arith.constant 352 : index
    %c0_15 = arith.constant 0 : index
    %15 = vector.load %arg4[%c352, %c0_15] : memref<664x128xf32, #tpu.memory_space<vmem>>, vector<1x32xf32>
    %c360 = arith.constant 360 : index
    %c0_16 = arith.constant 0 : index
    %16 = vector.load %arg4[%c360, %c0_16] : memref<664x128xf32, #tpu.memory_space<vmem>>, vector<6x6xf32>
    %c368 = arith.constant 368 : index
    %c0_17 = arith.constant 0 : index
    %17 = vector.load %arg4[%c368, %c0_17] : memref<664x128xf32, #tpu.memory_space<vmem>>, vector<6x1xf32>
    %c376 = arith.constant 376 : index
    %c0_18 = arith.constant 0 : index
    %18 = vector.load %arg4[%c376, %c0_18] : memref<664x128xf32, #tpu.memory_space<vmem>>, vector<1x32xf32>
    %c384 = arith.constant 384 : index
    %c0_19 = arith.constant 0 : index
    %19 = vector.load %arg4[%c384, %c0_19] : memref<664x128xf32, #tpu.memory_space<vmem>>, vector<1x32xf32>
    %c392 = arith.constant 392 : index
    %c0_20 = arith.constant 0 : index
    %20 = vector.load %arg4[%c392, %c0_20] : memref<664x128xf32, #tpu.memory_space<vmem>>, vector<48x6xf32>
    %c440 = arith.constant 440 : index
    %c0_21 = arith.constant 0 : index
    %21 = vector.load %arg4[%c440, %c0_21] : memref<664x128xf32, #tpu.memory_space<vmem>>, vector<32x32xf32>
    %c472 = arith.constant 472 : index
    %c0_22 = arith.constant 0 : index
    %22 = vector.load %arg4[%c472, %c0_22] : memref<664x128xf32, #tpu.memory_space<vmem>>, vector<32x32xf32>
    %c504 = arith.constant 504 : index
    %c0_23 = arith.constant 0 : index
    %23 = vector.load %arg4[%c504, %c0_23] : memref<664x128xf32, #tpu.memory_space<vmem>>, vector<32x32xf32>
    %c536 = arith.constant 536 : index
    %c0_24 = arith.constant 0 : index
    %24 = vector.load %arg4[%c536, %c0_24] : memref<664x128xf32, #tpu.memory_space<vmem>>, vector<1x32xf32>
    %c544 = arith.constant 544 : index
    %c0_25 = arith.constant 0 : index
    %25 = vector.load %arg4[%c544, %c0_25] : memref<664x128xf32, #tpu.memory_space<vmem>>, vector<1x32xf32>
    %c552 = arith.constant 552 : index
    %c0_26 = arith.constant 0 : index
    %26 = vector.load %arg4[%c552, %c0_26] : memref<664x128xf32, #tpu.memory_space<vmem>>, vector<1x32xf32>
    %c560 = arith.constant 560 : index
    %c0_27 = arith.constant 0 : index
    %27 = vector.load %arg4[%c560, %c0_27] : memref<664x128xf32, #tpu.memory_space<vmem>>, vector<32x32xf32>
    %c592 = arith.constant 592 : index
    %c0_28 = arith.constant 0 : index
    %28 = vector.load %arg4[%c592, %c0_28] : memref<664x128xf32, #tpu.memory_space<vmem>>, vector<1x32xf32>
    %c600 = arith.constant 600 : index
    %c0_29 = arith.constant 0 : index
    %29 = vector.load %arg4[%c600, %c0_29] : memref<664x128xf32, #tpu.memory_space<vmem>>, vector<6x16xf32>
    %c608 = arith.constant 608 : index
    %c0_30 = arith.constant 0 : index
    %30 = vector.load %arg4[%c608, %c0_30] : memref<664x128xf32, #tpu.memory_space<vmem>>, vector<6x1xf32>
    %c616 = arith.constant 616 : index
    %c0_31 = arith.constant 0 : index
    %31 = vector.load %arg4[%c616, %c0_31] : memref<664x128xf32, #tpu.memory_space<vmem>>, vector<6x30xf32>
    %c624 = arith.constant 624 : index
    %c0_32 = arith.constant 0 : index
    %32 = vector.load %arg4[%c624, %c0_32] : memref<664x128xf32, #tpu.memory_space<vmem>>, vector<6x1xf32>
    %c632 = arith.constant 632 : index
    %c0_33 = arith.constant 0 : index
    %33 = vector.load %arg4[%c632, %c0_33] : memref<664x128xf32, #tpu.memory_space<vmem>>, vector<1x32xf32>
    %c640 = arith.constant 640 : index
    %c0_34 = arith.constant 0 : index
    %34 = vector.load %arg4[%c640, %c0_34] : memref<664x128xf32, #tpu.memory_space<vmem>>, vector<1x32xf32>
    %c648 = arith.constant 648 : index
    %c0_35 = arith.constant 0 : index
    %35 = vector.load %arg4[%c648, %c0_35] : memref<664x128xf32, #tpu.memory_space<vmem>>, vector<6x4xf32>
    %c656 = arith.constant 656 : index
    %c0_36 = arith.constant 0 : index
    %36 = vector.load %arg4[%c656, %c0_36] : memref<664x128xf32, #tpu.memory_space<vmem>>, vector<6x1xf32>
    %c0_37 = arith.constant 0 : index
    %c0_38 = arith.constant 0 : index
    %c0_39 = arith.constant 0 : index
    %37 = vector.load %arg2[%c0_37, %c0_38, %c0_39] : memref<2x2x16xf32, #tpu.memory_space<vmem>>, vector<1x2x16xf32>
    %38 = vector.shape_cast %37 : vector<1x2x16xf32> to vector<2x16xf32>
    %c0_40 = arith.constant 0 : index
    %c0_41 = arith.constant 0 : index
    %c0_42 = arith.constant 0 : index
    %39 = vector.load %arg3[%c0_40, %c0_41, %c0_42] : memref<2x2x32xf32, #tpu.memory_space<vmem>>, vector<1x2x32xf32>
    %40 = vector.shape_cast %39 : vector<1x2x32xf32> to vector<2x32xf32>
    %c0_43 = arith.constant 0 : index
    %41 = memref.load %arg1[%c0_43] : memref<2xi32, #tpu.memory_space<smem>>
    %cst = arith.constant dense<0.000000e+00> : vector<8x16xf32>
    %42 = tpu.matmul %0, %38, %cst {dimension_numbers = #tpu.dot_dimension_numbers<[1], [0], [0], [1], [0, 0, 1, 1], [], []>} : vector<8x2xf32>, vector<2x16xf32>, vector<8x16xf32> -> vector<8x16xf32>
    %cst_44 = arith.constant 0.000000e+00 : f32
    %43 = vector.broadcast %cst_44 : f32 to vector<2x32xf32>
    %44 = vector.extract_strided_slice %42 {offsets = [0, 0], sizes = [2, 16], strides = [1, 1]} : vector<8x16xf32> to vector<2x16xf32>
    %45 = vector.extract_strided_slice %2 {offsets = [0, 0], sizes = [16, 32], strides = [1, 1]} : vector<64x32xf32> to vector<16x32xf32>
    %cst_45 = arith.constant dense<0.000000e+00> : vector<2x32xf32>
    %46 = tpu.matmul %44, %45, %cst_45 {dimension_numbers = #tpu.dot_dimension_numbers<[1], [0], [0], [1], [0, 0, 1, 1], [], []>} : vector<2x16xf32>, vector<16x32xf32>, vector<2x32xf32> -> vector<2x32xf32>
    %47 = arith.addf %43, %46 : vector<2x32xf32>
    %48 = vector.extract_strided_slice %42 {offsets = [2, 0], sizes = [2, 16], strides = [1, 1]} : vector<8x16xf32> to vector<2x16xf32>
    %49 = vector.extract_strided_slice %2 {offsets = [16, 0], sizes = [16, 32], strides = [1, 1]} : vector<64x32xf32> to vector<16x32xf32>
    %cst_46 = arith.constant dense<0.000000e+00> : vector<2x32xf32>
    %50 = tpu.matmul %48, %49, %cst_46 {dimension_numbers = #tpu.dot_dimension_numbers<[1], [0], [0], [1], [0, 0, 1, 1], [], []>} : vector<2x16xf32>, vector<16x32xf32>, vector<2x32xf32> -> vector<2x32xf32>
    %51 = arith.addf %47, %50 : vector<2x32xf32>
    %52 = vector.extract_strided_slice %42 {offsets = [4, 0], sizes = [2, 16], strides = [1, 1]} : vector<8x16xf32> to vector<2x16xf32>
    %53 = vector.extract_strided_slice %2 {offsets = [32, 0], sizes = [16, 32], strides = [1, 1]} : vector<64x32xf32> to vector<16x32xf32>
    %cst_47 = arith.constant dense<0.000000e+00> : vector<2x32xf32>
    %54 = tpu.matmul %52, %53, %cst_47 {dimension_numbers = #tpu.dot_dimension_numbers<[1], [0], [0], [1], [0, 0, 1, 1], [], []>} : vector<2x16xf32>, vector<16x32xf32>, vector<2x32xf32> -> vector<2x32xf32>
    %55 = arith.addf %51, %54 : vector<2x32xf32>
    %56 = vector.extract_strided_slice %42 {offsets = [6, 0], sizes = [2, 16], strides = [1, 1]} : vector<8x16xf32> to vector<2x16xf32>
    %57 = vector.extract_strided_slice %2 {offsets = [48, 0], sizes = [16, 32], strides = [1, 1]} : vector<64x32xf32> to vector<16x32xf32>
    %cst_48 = arith.constant dense<0.000000e+00> : vector<2x32xf32>
    %58 = tpu.matmul %56, %57, %cst_48 {dimension_numbers = #tpu.dot_dimension_numbers<[1], [0], [0], [1], [0, 0, 1, 1], [], []>} : vector<2x16xf32>, vector<16x32xf32>, vector<2x32xf32> -> vector<2x32xf32>
    %59 = arith.addf %55, %58 : vector<2x32xf32>
    %60 = vector.broadcast %1 : vector<2x1xf32> to vector<2x32xf32>
    %61 = arith.addf %59, %60 : vector<2x32xf32>
    %62 = tpu.concatenate %61, %40 in 0 : vector<2x32xf32>, vector<2x32xf32> -> vector<4x32xf32>
    %63 = tpu.iota {dimensions = array<i32: 0>} : vector<8x64xi32>
    %64 = vector.broadcast %41 : i32 to vector<8x64xi32>
    %65 = arith.cmpi eq, %63, %64 : vector<8x64xi32>
    %cst_49 = arith.constant 0.000000e+00 : f32
    %66 = vector.broadcast %cst_49 : f32 to vector<8x64xf32>
    %67 = arith.select %65, %3, %66 : vector<8x64xi1>, vector<8x64xf32>
    %cst_50 = arith.constant dense<0.000000e+00> : vector<64xf32>
    %68 = vector.multi_reduction <add>, %67, %cst_50 [0] : vector<8x64xf32> to vector<64xf32>
    %69 = vector.shape_cast %68 : vector<64xf32> to vector<1x64xf32>
    %cst_51 = arith.constant dense<0.000000e+00> : vector<1x128xf32>
    %70 = tpu.matmul %69, %4, %cst_51 {dimension_numbers = #tpu.dot_dimension_numbers<[1], [0], [0], [1], [0, 0, 1, 1], [], []>} : vector<1x64xf32>, vector<64x128xf32>, vector<1x128xf32> -> vector<1x128xf32>
    %71 = arith.addf %70, %5 : vector<1x128xf32>
    %cst_52 = arith.constant 0.000000e+00 : f32
    %72 = vector.broadcast %cst_52 : f32 to vector<1x128xf32>
    %73 = arith.maximumf %71, %72 : vector<1x128xf32>
    %74 = math.absf %71 : vector<1x128xf32>
    %cst_53 = arith.constant 0.000000e+00 : f32
    %75 = vector.broadcast %cst_53 : f32 to vector<1x128xf32>
    %76 = arith.subf %75, %74 : vector<1x128xf32>
    %77 = math.exp %76 : vector<1x128xf32>
    %78 = math.log1p %77 : vector<1x128xf32>
    %79 = arith.addf %73, %78 : vector<1x128xf32>
    %80 = math.tanh %79 : vector<1x128xf32>
    %81 = arith.mulf %71, %80 : vector<1x128xf32>
    %cst_54 = arith.constant dense<0.000000e+00> : vector<1x32xf32>
    %82 = tpu.matmul %81, %6, %cst_54 {dimension_numbers = #tpu.dot_dimension_numbers<[1], [0], [0], [1], [0, 0, 1, 1], [], []>} : vector<1x128xf32>, vector<128x32xf32>, vector<1x32xf32> -> vector<1x32xf32>
    %83 = arith.addf %82, %7 : vector<1x32xf32>
    %cst_55 = arith.constant 0.000000e+00 : f32
    %84 = vector.broadcast %cst_55 : f32 to vector<1x32xf32>
    %85 = arith.maximumf %83, %84 : vector<1x32xf32>
    %86 = math.absf %83 : vector<1x32xf32>
    %cst_56 = arith.constant 0.000000e+00 : f32
    %87 = vector.broadcast %cst_56 : f32 to vector<1x32xf32>
    %88 = arith.subf %87, %86 : vector<1x32xf32>
    %89 = math.exp %88 : vector<1x32xf32>
    %90 = math.log1p %89 : vector<1x32xf32>
    %91 = arith.addf %85, %90 : vector<1x32xf32>
    %92 = math.tanh %91 : vector<1x32xf32>
    %93 = arith.mulf %83, %92 : vector<1x32xf32>
    %94 = vector.broadcast %8 : vector<4x1xf32> to vector<4x32xf32>
    %95 = vector.broadcast %93 : vector<1x32xf32> to vector<4x32xf32>
    %96 = arith.mulf %94, %95 : vector<4x32xf32>
    %97 = vector.broadcast %9 : vector<4x1xf32> to vector<4x32xf32>
    %98 = arith.addf %96, %97 : vector<4x32xf32>
    %cst_57 = arith.constant 0.000000e+00 : f32
    %99 = vector.broadcast %cst_57 : f32 to vector<4x32xf32>
    %100 = arith.maximumf %98, %99 : vector<4x32xf32>
    %101 = math.absf %98 : vector<4x32xf32>
    %cst_58 = arith.constant 0.000000e+00 : f32
    %102 = vector.broadcast %cst_58 : f32 to vector<4x32xf32>
    %103 = arith.subf %102, %101 : vector<4x32xf32>
    %104 = math.exp %103 : vector<4x32xf32>
    %105 = math.log1p %104 : vector<4x32xf32>
    %106 = arith.addf %100, %105 : vector<4x32xf32>
    %107 = math.tanh %106 : vector<4x32xf32>
    %108 = arith.mulf %98, %107 : vector<4x32xf32>
    %109 = vector.broadcast %83 : vector<1x32xf32> to vector<4x32xf32>
    %110 = arith.addf %108, %109 : vector<4x32xf32>
    %cst_59 = arith.constant dense<0.000000e+00> : vector<4x32xf32>
    %111 = tpu.matmul %10, %110, %cst_59 {dimension_numbers = #tpu.dot_dimension_numbers<[1], [0], [0], [1], [0, 0, 1, 1], [], []>} : vector<4x4xf32>, vector<4x32xf32>, vector<4x32xf32> -> vector<4x32xf32>
    %112 = vector.broadcast %11 : vector<4x1xf32> to vector<4x32xf32>
    %113 = arith.addf %111, %112 : vector<4x32xf32>
    %114 = arith.addf %62, %113 : vector<4x32xf32>
    %cst_60 = arith.constant 0.000000e+00 : f32
    %115 = vector.broadcast %cst_60 : f32 to vector<4x2xf32>
    %cst_61 = arith.constant 0.000000e+00 : f32
    %116 = vector.broadcast %cst_61 : f32 to vector<4x2xf32>
    %117 = tpu.concatenate %115, %114, %116 in 1 : vector<4x2xf32>, vector<4x32xf32>, vector<4x2xf32> -> vector<4x36xf32>
    %118 = vector.extract_strided_slice %117 {offsets = [0, 0], sizes = [4, 32], strides = [1, 1]} : vector<4x36xf32> to vector<4x32xf32>
    %119 = vector.extract_strided_slice %117 {offsets = [0, 1], sizes = [4, 32], strides = [1, 1]} : vector<4x36xf32> to vector<4x32xf32>
    %120 = vector.extract_strided_slice %117 {offsets = [0, 2], sizes = [4, 32], strides = [1, 1]} : vector<4x36xf32> to vector<4x32xf32>
    %121 = vector.extract_strided_slice %117 {offsets = [0, 3], sizes = [4, 32], strides = [1, 1]} : vector<4x36xf32> to vector<4x32xf32>
    %122 = vector.extract_strided_slice %117 {offsets = [0, 4], sizes = [4, 32], strides = [1, 1]} : vector<4x36xf32> to vector<4x32xf32>
    %123 = tpu.concatenate %118, %119, %120, %121, %122 in 0 : vector<4x32xf32>, vector<4x32xf32>, vector<4x32xf32>, vector<4x32xf32>, vector<4x32xf32> -> vector<20x32xf32>
    %cst_62 = arith.constant dense<0.000000e+00> : vector<6x32xf32>
    %124 = tpu.matmul %12, %123, %cst_62 {dimension_numbers = #tpu.dot_dimension_numbers<[1], [0], [0], [1], [0, 0, 1, 1], [], []>} : vector<6x20xf32>, vector<20x32xf32>, vector<6x32xf32> -> vector<6x32xf32>
    %125 = vector.broadcast %13 : vector<6x1xf32> to vector<6x32xf32>
    %126 = arith.addf %124, %125 : vector<6x32xf32>
    %cst_63 = arith.constant dense<0.000000e+00> : vector<6xf32>
    %127 = vector.multi_reduction <add>, %126, %cst_63 [1] : vector<6x32xf32> to vector<6xf32>
    %128 = vector.shape_cast %127 : vector<6xf32> to vector<6x1xf32>
    %cst_64 = arith.constant 3.200000e+01 : f32
    %129 = vector.broadcast %cst_64 : f32 to vector<6x1xf32>
    %130 = arith.divf %128, %129 : vector<6x1xf32>
    %131 = vector.broadcast %130 : vector<6x1xf32> to vector<6x32xf32>
    %132 = arith.subf %126, %131 : vector<6x32xf32>
    %133 = arith.mulf %132, %132 : vector<6x32xf32>
    %cst_65 = arith.constant dense<0.000000e+00> : vector<6xf32>
    %134 = vector.multi_reduction <add>, %133, %cst_65 [1] : vector<6x32xf32> to vector<6xf32>
    %135 = vector.shape_cast %134 : vector<6xf32> to vector<6x1xf32>
    %cst_66 = arith.constant 3.200000e+01 : f32
    %136 = vector.broadcast %cst_66 : f32 to vector<6x1xf32>
    %137 = arith.divf %135, %136 : vector<6x1xf32>
    %138 = vector.broadcast %130 : vector<6x1xf32> to vector<6x32xf32>
    %139 = arith.subf %126, %138 : vector<6x32xf32>
    %cst_67 = arith.constant 9.99999974E-6 : f32
    %140 = vector.broadcast %cst_67 : f32 to vector<6x1xf32>
    %141 = arith.addf %137, %140 : vector<6x1xf32>
    %142 = math.rsqrt %141 : vector<6x1xf32>
    %143 = vector.broadcast %142 : vector<6x1xf32> to vector<6x32xf32>
    %144 = arith.mulf %139, %143 : vector<6x32xf32>
    %145 = vector.broadcast %14 : vector<1x32xf32> to vector<6x32xf32>
    %146 = arith.mulf %144, %145 : vector<6x32xf32>
    %147 = vector.broadcast %15 : vector<1x32xf32> to vector<6x32xf32>
    %148 = arith.addf %146, %147 : vector<6x32xf32>
    %cst_68 = arith.constant 0.000000e+00 : f32
    %149 = vector.broadcast %cst_68 : f32 to vector<6x32xf32>
    %150 = arith.maximumf %148, %149 : vector<6x32xf32>
    %151 = math.absf %148 : vector<6x32xf32>
    %cst_69 = arith.constant 0.000000e+00 : f32
    %152 = vector.broadcast %cst_69 : f32 to vector<6x32xf32>
    %153 = arith.subf %152, %151 : vector<6x32xf32>
    %154 = math.exp %153 : vector<6x32xf32>
    %155 = math.log1p %154 : vector<6x32xf32>
    %156 = arith.addf %150, %155 : vector<6x32xf32>
    %157 = math.tanh %156 : vector<6x32xf32>
    %158 = arith.mulf %148, %157 : vector<6x32xf32>
    %cst_70 = arith.constant dense<0.000000e+00> : vector<6x32xf32>
    %159 = tpu.matmul %16, %158, %cst_70 {dimension_numbers = #tpu.dot_dimension_numbers<[1], [0], [0], [1], [0, 0, 1, 1], [], []>} : vector<6x6xf32>, vector<6x32xf32>, vector<6x32xf32> -> vector<6x32xf32>
    %160 = vector.broadcast %17 : vector<6x1xf32> to vector<6x32xf32>
    %161 = arith.addf %159, %160 : vector<6x32xf32>
    %cst_71 = arith.constant dense<0.000000e+00> : vector<6xf32>
    %162 = vector.multi_reduction <add>, %161, %cst_71 [1] : vector<6x32xf32> to vector<6xf32>
    %163 = vector.shape_cast %162 : vector<6xf32> to vector<6x1xf32>
    %cst_72 = arith.constant 3.200000e+01 : f32
    %164 = vector.broadcast %cst_72 : f32 to vector<6x1xf32>
    %165 = arith.divf %163, %164 : vector<6x1xf32>
    %166 = vector.broadcast %165 : vector<6x1xf32> to vector<6x32xf32>
    %167 = arith.subf %161, %166 : vector<6x32xf32>
    %168 = arith.mulf %167, %167 : vector<6x32xf32>
    %cst_73 = arith.constant dense<0.000000e+00> : vector<6xf32>
    %169 = vector.multi_reduction <add>, %168, %cst_73 [1] : vector<6x32xf32> to vector<6xf32>
    %170 = vector.shape_cast %169 : vector<6xf32> to vector<6x1xf32>
    %cst_74 = arith.constant 3.200000e+01 : f32
    %171 = vector.broadcast %cst_74 : f32 to vector<6x1xf32>
    %172 = arith.divf %170, %171 : vector<6x1xf32>
    %173 = vector.broadcast %165 : vector<6x1xf32> to vector<6x32xf32>
    %174 = arith.subf %161, %173 : vector<6x32xf32>
    %cst_75 = arith.constant 9.99999974E-6 : f32
    %175 = vector.broadcast %cst_75 : f32 to vector<6x1xf32>
    %176 = arith.addf %172, %175 : vector<6x1xf32>
    %177 = math.rsqrt %176 : vector<6x1xf32>
    %178 = vector.broadcast %177 : vector<6x1xf32> to vector<6x32xf32>
    %179 = arith.mulf %174, %178 : vector<6x32xf32>
    %180 = vector.broadcast %18 : vector<1x32xf32> to vector<6x32xf32>
    %181 = arith.mulf %179, %180 : vector<6x32xf32>
    %182 = vector.broadcast %19 : vector<1x32xf32> to vector<6x32xf32>
    %183 = arith.addf %181, %182 : vector<6x32xf32>
    %cst_76 = arith.constant dense<0.000000e+00> : vector<48x32xf32>
    %184 = tpu.matmul %20, %183, %cst_76 {dimension_numbers = #tpu.dot_dimension_numbers<[1], [0], [0], [1], [0, 0, 1, 1], [], []>} : vector<48x6xf32>, vector<6x32xf32>, vector<48x32xf32> -> vector<48x32xf32>
    %185 = vector.extract_strided_slice %184 {offsets = [0, 0], sizes = [16, 32], strides = [1, 1]} : vector<48x32xf32> to vector<16x32xf32>
    %186 = vector.extract_strided_slice %184 {offsets = [16, 0], sizes = [16, 32], strides = [1, 1]} : vector<48x32xf32> to vector<16x32xf32>
    %187 = vector.extract_strided_slice %184 {offsets = [32, 0], sizes = [16, 32], strides = [1, 1]} : vector<48x32xf32> to vector<16x32xf32>
    %cst_77 = arith.constant dense<0.000000e+00> : vector<16x32xf32>
    %188 = tpu.matmul %185, %21, %cst_77 {dimension_numbers = #tpu.dot_dimension_numbers<[1], [0], [0], [1], [0, 0, 1, 1], [], []>} : vector<16x32xf32>, vector<32x32xf32>, vector<16x32xf32> -> vector<16x32xf32>
    %189 = vector.broadcast %24 : vector<1x32xf32> to vector<16x32xf32>
    %190 = arith.addf %188, %189 : vector<16x32xf32>
    %cst_78 = arith.constant dense<0.000000e+00> : vector<16x32xf32>
    %191 = tpu.matmul %186, %22, %cst_78 {dimension_numbers = #tpu.dot_dimension_numbers<[1], [0], [0], [1], [0, 0, 1, 1], [], []>} : vector<16x32xf32>, vector<32x32xf32>, vector<16x32xf32> -> vector<16x32xf32>
    %192 = vector.broadcast %25 : vector<1x32xf32> to vector<16x32xf32>
    %193 = arith.addf %191, %192 : vector<16x32xf32>
    %cst_79 = arith.constant dense<0.000000e+00> : vector<16x32xf32>
    %194 = tpu.matmul %187, %23, %cst_79 {dimension_numbers = #tpu.dot_dimension_numbers<[1], [0], [0], [1], [0, 0, 1, 1], [], []>} : vector<16x32xf32>, vector<32x32xf32>, vector<16x32xf32> -> vector<16x32xf32>
    %195 = vector.broadcast %26 : vector<1x32xf32> to vector<16x32xf32>
    %196 = arith.addf %194, %195 : vector<16x32xf32>
    %197 = vector.extract_strided_slice %190 {offsets = [0, 0], sizes = [16, 8], strides = [1, 1]} : vector<16x32xf32> to vector<16x8xf32>
    %198 = vector.extract_strided_slice %193 {offsets = [0, 0], sizes = [16, 8], strides = [1, 1]} : vector<16x32xf32> to vector<16x8xf32>
    %199 = vector.extract_strided_slice %196 {offsets = [0, 0], sizes = [16, 8], strides = [1, 1]} : vector<16x32xf32> to vector<16x8xf32>
    %cst_80 = arith.constant dense<0.000000e+00> : vector<16x16xf32>
    %200 = tpu.matmul %197, %198, %cst_80 {dimension_numbers = #tpu.dot_dimension_numbers<[1], [1], [0], [0], [0, 0, 1, 0], [], []>} : vector<16x8xf32>, vector<16x8xf32>, vector<16x16xf32> -> vector<16x16xf32>
    %cst_81 = arith.constant 0.353553385 : f32
    %201 = vector.broadcast %cst_81 : f32 to vector<16x16xf32>
    %202 = arith.mulf %200, %201 : vector<16x16xf32>
    %cst_82 = arith.constant dense<0xFF800000> : vector<16xf32>
    %203 = vector.multi_reduction <maximumf>, %202, %cst_82 [1] : vector<16x16xf32> to vector<16xf32>
    %204 = vector.shape_cast %203 : vector<16xf32> to vector<16x1xf32>
    %205 = vector.broadcast %204 : vector<16x1xf32> to vector<16x16xf32>
    %206 = arith.subf %202, %205 : vector<16x16xf32>
    %207 = math.exp %206 : vector<16x16xf32>
    %cst_83 = arith.constant dense<0.000000e+00> : vector<16xf32>
    %208 = vector.multi_reduction <add>, %207, %cst_83 [1] : vector<16x16xf32> to vector<16xf32>
    %209 = vector.shape_cast %208 : vector<16xf32> to vector<16x1xf32>
    %210 = tpu.reciprocal %209 {approx = true} : vector<16x1xf32> -> vector<16x1xf32>
    %211 = vector.broadcast %210 : vector<16x1xf32> to vector<16x16xf32>
    %212 = arith.mulf %207, %211 : vector<16x16xf32>
    %cst_84 = arith.constant dense<0.000000e+00> : vector<16x8xf32>
    %213 = tpu.matmul %212, %199, %cst_84 {dimension_numbers = #tpu.dot_dimension_numbers<[1], [0], [0], [1], [0, 0, 1, 1], [], []>} : vector<16x16xf32>, vector<16x8xf32>, vector<16x8xf32> -> vector<16x8xf32>
    %214 = vector.extract_strided_slice %190 {offsets = [0, 8], sizes = [16, 8], strides = [1, 1]} : vector<16x32xf32> to vector<16x8xf32>
    %215 = vector.extract_strided_slice %193 {offsets = [0, 8], sizes = [16, 8], strides = [1, 1]} : vector<16x32xf32> to vector<16x8xf32>
    %216 = vector.extract_strided_slice %196 {offsets = [0, 8], sizes = [16, 8], strides = [1, 1]} : vector<16x32xf32> to vector<16x8xf32>
    %cst_85 = arith.constant dense<0.000000e+00> : vector<16x16xf32>
    %217 = tpu.matmul %214, %215, %cst_85 {dimension_numbers = #tpu.dot_dimension_numbers<[1], [1], [0], [0], [0, 0, 1, 0], [], []>} : vector<16x8xf32>, vector<16x8xf32>, vector<16x16xf32> -> vector<16x16xf32>
    %cst_86 = arith.constant 0.353553385 : f32
    %218 = vector.broadcast %cst_86 : f32 to vector<16x16xf32>
    %219 = arith.mulf %217, %218 : vector<16x16xf32>
    %cst_87 = arith.constant dense<0xFF800000> : vector<16xf32>
    %220 = vector.multi_reduction <maximumf>, %219, %cst_87 [1] : vector<16x16xf32> to vector<16xf32>
    %221 = vector.shape_cast %220 : vector<16xf32> to vector<16x1xf32>
    %222 = vector.broadcast %221 : vector<16x1xf32> to vector<16x16xf32>
    %223 = arith.subf %219, %222 : vector<16x16xf32>
    %224 = math.exp %223 : vector<16x16xf32>
    %cst_88 = arith.constant dense<0.000000e+00> : vector<16xf32>
    %225 = vector.multi_reduction <add>, %224, %cst_88 [1] : vector<16x16xf32> to vector<16xf32>
    %226 = vector.shape_cast %225 : vector<16xf32> to vector<16x1xf32>
    %227 = tpu.reciprocal %226 {approx = true} : vector<16x1xf32> -> vector<16x1xf32>
    %228 = vector.broadcast %227 : vector<16x1xf32> to vector<16x16xf32>
    %229 = arith.mulf %224, %228 : vector<16x16xf32>
    %cst_89 = arith.constant dense<0.000000e+00> : vector<16x8xf32>
    %230 = tpu.matmul %229, %216, %cst_89 {dimension_numbers = #tpu.dot_dimension_numbers<[1], [0], [0], [1], [0, 0, 1, 1], [], []>} : vector<16x16xf32>, vector<16x8xf32>, vector<16x8xf32> -> vector<16x8xf32>
    %231 = vector.extract_strided_slice %190 {offsets = [0, 16], sizes = [16, 8], strides = [1, 1]} : vector<16x32xf32> to vector<16x8xf32>
    %232 = vector.extract_strided_slice %193 {offsets = [0, 16], sizes = [16, 8], strides = [1, 1]} : vector<16x32xf32> to vector<16x8xf32>
    %233 = vector.extract_strided_slice %196 {offsets = [0, 16], sizes = [16, 8], strides = [1, 1]} : vector<16x32xf32> to vector<16x8xf32>
    %cst_90 = arith.constant dense<0.000000e+00> : vector<16x16xf32>
    %234 = tpu.matmul %231, %232, %cst_90 {dimension_numbers = #tpu.dot_dimension_numbers<[1], [1], [0], [0], [0, 0, 1, 0], [], []>} : vector<16x8xf32>, vector<16x8xf32>, vector<16x16xf32> -> vector<16x16xf32>
    %cst_91 = arith.constant 0.353553385 : f32
    %235 = vector.broadcast %cst_91 : f32 to vector<16x16xf32>
    %236 = arith.mulf %234, %235 : vector<16x16xf32>
    %cst_92 = arith.constant dense<0xFF800000> : vector<16xf32>
    %237 = vector.multi_reduction <maximumf>, %236, %cst_92 [1] : vector<16x16xf32> to vector<16xf32>
    %238 = vector.shape_cast %237 : vector<16xf32> to vector<16x1xf32>
    %239 = vector.broadcast %238 : vector<16x1xf32> to vector<16x16xf32>
    %240 = arith.subf %236, %239 : vector<16x16xf32>
    %241 = math.exp %240 : vector<16x16xf32>
    %cst_93 = arith.constant dense<0.000000e+00> : vector<16xf32>
    %242 = vector.multi_reduction <add>, %241, %cst_93 [1] : vector<16x16xf32> to vector<16xf32>
    %243 = vector.shape_cast %242 : vector<16xf32> to vector<16x1xf32>
    %244 = tpu.reciprocal %243 {approx = true} : vector<16x1xf32> -> vector<16x1xf32>
    %245 = vector.broadcast %244 : vector<16x1xf32> to vector<16x16xf32>
    %246 = arith.mulf %241, %245 : vector<16x16xf32>
    %cst_94 = arith.constant dense<0.000000e+00> : vector<16x8xf32>
    %247 = tpu.matmul %246, %233, %cst_94 {dimension_numbers = #tpu.dot_dimension_numbers<[1], [0], [0], [1], [0, 0, 1, 1], [], []>} : vector<16x16xf32>, vector<16x8xf32>, vector<16x8xf32> -> vector<16x8xf32>
    %248 = vector.extract_strided_slice %190 {offsets = [0, 24], sizes = [16, 8], strides = [1, 1]} : vector<16x32xf32> to vector<16x8xf32>
    %249 = vector.extract_strided_slice %193 {offsets = [0, 24], sizes = [16, 8], strides = [1, 1]} : vector<16x32xf32> to vector<16x8xf32>
    %250 = vector.extract_strided_slice %196 {offsets = [0, 24], sizes = [16, 8], strides = [1, 1]} : vector<16x32xf32> to vector<16x8xf32>
    %cst_95 = arith.constant dense<0.000000e+00> : vector<16x16xf32>
    %251 = tpu.matmul %248, %249, %cst_95 {dimension_numbers = #tpu.dot_dimension_numbers<[1], [1], [0], [0], [0, 0, 1, 0], [], []>} : vector<16x8xf32>, vector<16x8xf32>, vector<16x16xf32> -> vector<16x16xf32>
    %cst_96 = arith.constant 0.353553385 : f32
    %252 = vector.broadcast %cst_96 : f32 to vector<16x16xf32>
    %253 = arith.mulf %251, %252 : vector<16x16xf32>
    %cst_97 = arith.constant dense<0xFF800000> : vector<16xf32>
    %254 = vector.multi_reduction <maximumf>, %253, %cst_97 [1] : vector<16x16xf32> to vector<16xf32>
    %255 = vector.shape_cast %254 : vector<16xf32> to vector<16x1xf32>
    %256 = vector.broadcast %255 : vector<16x1xf32> to vector<16x16xf32>
    %257 = arith.subf %253, %256 : vector<16x16xf32>
    %258 = math.exp %257 : vector<16x16xf32>
    %cst_98 = arith.constant dense<0.000000e+00> : vector<16xf32>
    %259 = vector.multi_reduction <add>, %258, %cst_98 [1] : vector<16x16xf32> to vector<16xf32>
    %260 = vector.shape_cast %259 : vector<16xf32> to vector<16x1xf32>
    %261 = tpu.reciprocal %260 {approx = true} : vector<16x1xf32> -> vector<16x1xf32>
    %262 = vector.broadcast %261 : vector<16x1xf32> to vector<16x16xf32>
    %263 = arith.mulf %258, %262 : vector<16x16xf32>
    %cst_99 = arith.constant dense<0.000000e+00> : vector<16x8xf32>
    %264 = tpu.matmul %263, %250, %cst_99 {dimension_numbers = #tpu.dot_dimension_numbers<[1], [0], [0], [1], [0, 0, 1, 1], [], []>} : vector<16x16xf32>, vector<16x8xf32>, vector<16x8xf32> -> vector<16x8xf32>
    %265 = tpu.concatenate %213, %230, %247, %264 in 1 : vector<16x8xf32>, vector<16x8xf32>, vector<16x8xf32>, vector<16x8xf32> -> vector<16x32xf32>
    %cst_100 = arith.constant dense<0.000000e+00> : vector<16x32xf32>
    %266 = tpu.matmul %265, %27, %cst_100 {dimension_numbers = #tpu.dot_dimension_numbers<[1], [0], [0], [1], [0, 0, 1, 1], [], []>} : vector<16x32xf32>, vector<32x32xf32>, vector<16x32xf32> -> vector<16x32xf32>
    %267 = vector.broadcast %28 : vector<1x32xf32> to vector<16x32xf32>
    %268 = arith.addf %266, %267 : vector<16x32xf32>
    %cst_101 = arith.constant dense<0.000000e+00> : vector<6x32xf32>
    %269 = tpu.matmul %29, %268, %cst_101 {dimension_numbers = #tpu.dot_dimension_numbers<[1], [0], [0], [1], [0, 0, 1, 1], [], []>} : vector<6x16xf32>, vector<16x32xf32>, vector<6x32xf32> -> vector<6x32xf32>
    %270 = vector.broadcast %30 : vector<6x1xf32> to vector<6x32xf32>
    %271 = arith.addf %269, %270 : vector<6x32xf32>
    %272 = arith.addf %271, %161 : vector<6x32xf32>
    %cst_102 = arith.constant 0.000000e+00 : f32
    %273 = vector.broadcast %cst_102 : f32 to vector<6x2xf32>
    %cst_103 = arith.constant 0.000000e+00 : f32
    %274 = vector.broadcast %cst_103 : f32 to vector<6x2xf32>
    %275 = tpu.concatenate %273, %272, %274 in 1 : vector<6x2xf32>, vector<6x32xf32>, vector<6x2xf32> -> vector<6x36xf32>
    %276 = vector.extract_strided_slice %275 {offsets = [0, 0], sizes = [6, 32], strides = [1, 1]} : vector<6x36xf32> to vector<6x32xf32>
    %277 = vector.extract_strided_slice %275 {offsets = [0, 1], sizes = [6, 32], strides = [1, 1]} : vector<6x36xf32> to vector<6x32xf32>
    %278 = vector.extract_strided_slice %275 {offsets = [0, 2], sizes = [6, 32], strides = [1, 1]} : vector<6x36xf32> to vector<6x32xf32>
    %279 = vector.extract_strided_slice %275 {offsets = [0, 3], sizes = [6, 32], strides = [1, 1]} : vector<6x36xf32> to vector<6x32xf32>
    %280 = vector.extract_strided_slice %275 {offsets = [0, 4], sizes = [6, 32], strides = [1, 1]} : vector<6x36xf32> to vector<6x32xf32>
    %281 = tpu.concatenate %276, %277, %278, %279, %280 in 0 : vector<6x32xf32>, vector<6x32xf32>, vector<6x32xf32>, vector<6x32xf32>, vector<6x32xf32> -> vector<30x32xf32>
    %cst_104 = arith.constant dense<0.000000e+00> : vector<6x32xf32>
    %282 = tpu.matmul %31, %281, %cst_104 {dimension_numbers = #tpu.dot_dimension_numbers<[1], [0], [0], [1], [0, 0, 1, 1], [], []>} : vector<6x30xf32>, vector<30x32xf32>, vector<6x32xf32> -> vector<6x32xf32>
    %283 = vector.broadcast %32 : vector<6x1xf32> to vector<6x32xf32>
    %284 = arith.addf %282, %283 : vector<6x32xf32>
    %cst_105 = arith.constant dense<0.000000e+00> : vector<6xf32>
    %285 = vector.multi_reduction <add>, %284, %cst_105 [1] : vector<6x32xf32> to vector<6xf32>
    %286 = vector.shape_cast %285 : vector<6xf32> to vector<6x1xf32>
    %cst_106 = arith.constant 3.200000e+01 : f32
    %287 = vector.broadcast %cst_106 : f32 to vector<6x1xf32>
    %288 = arith.divf %286, %287 : vector<6x1xf32>
    %289 = vector.broadcast %288 : vector<6x1xf32> to vector<6x32xf32>
    %290 = arith.subf %284, %289 : vector<6x32xf32>
    %291 = arith.mulf %290, %290 : vector<6x32xf32>
    %cst_107 = arith.constant dense<0.000000e+00> : vector<6xf32>
    %292 = vector.multi_reduction <add>, %291, %cst_107 [1] : vector<6x32xf32> to vector<6xf32>
    %293 = vector.shape_cast %292 : vector<6xf32> to vector<6x1xf32>
    %cst_108 = arith.constant 3.200000e+01 : f32
    %294 = vector.broadcast %cst_108 : f32 to vector<6x1xf32>
    %295 = arith.divf %293, %294 : vector<6x1xf32>
    %296 = vector.broadcast %288 : vector<6x1xf32> to vector<6x32xf32>
    %297 = arith.subf %284, %296 : vector<6x32xf32>
    %cst_109 = arith.constant 9.99999974E-6 : f32
    %298 = vector.broadcast %cst_109 : f32 to vector<6x1xf32>
    %299 = arith.addf %295, %298 : vector<6x1xf32>
    %300 = math.rsqrt %299 : vector<6x1xf32>
    %301 = vector.broadcast %300 : vector<6x1xf32> to vector<6x32xf32>
    %302 = arith.mulf %297, %301 : vector<6x32xf32>
    %303 = vector.broadcast %33 : vector<1x32xf32> to vector<6x32xf32>
    %304 = arith.mulf %302, %303 : vector<6x32xf32>
    %305 = vector.broadcast %34 : vector<1x32xf32> to vector<6x32xf32>
    %306 = arith.addf %304, %305 : vector<6x32xf32>
    %cst_110 = arith.constant 0.000000e+00 : f32
    %307 = vector.broadcast %cst_110 : f32 to vector<6x32xf32>
    %308 = arith.maximumf %306, %307 : vector<6x32xf32>
    %309 = math.absf %306 : vector<6x32xf32>
    %cst_111 = arith.constant 0.000000e+00 : f32
    %310 = vector.broadcast %cst_111 : f32 to vector<6x32xf32>
    %311 = arith.subf %310, %309 : vector<6x32xf32>
    %312 = math.exp %311 : vector<6x32xf32>
    %313 = math.log1p %312 : vector<6x32xf32>
    %314 = arith.addf %308, %313 : vector<6x32xf32>
    %315 = math.tanh %314 : vector<6x32xf32>
    %316 = arith.mulf %306, %315 : vector<6x32xf32>
    %cst_112 = arith.constant dense<0.000000e+00> : vector<6x32xf32>
    %317 = tpu.matmul %35, %62, %cst_112 {dimension_numbers = #tpu.dot_dimension_numbers<[1], [0], [0], [1], [0, 0, 1, 1], [], []>} : vector<6x4xf32>, vector<4x32xf32>, vector<6x32xf32> -> vector<6x32xf32>
    %318 = vector.broadcast %36 : vector<6x1xf32> to vector<6x32xf32>
    %319 = arith.addf %317, %318 : vector<6x32xf32>
    %320 = arith.addf %316, %319 : vector<6x32xf32>
    %c0_113 = arith.constant 0 : index
    %c0_114 = arith.constant 0 : index
    %c0_115 = arith.constant 0 : index
    %321 = vector.load %arg5[%c0_113, %c0_114, %c0_115] : memref<2x6x32xf32, #tpu.memory_space<vmem>>, vector<1x6x32xf32>
    %322 = vector.shape_cast %321 : vector<1x6x32xf32> to vector<6x32xf32>
    %323 = vector.shape_cast %320 : vector<6x32xf32> to vector<1x6x32xf32>
    tpu.vector_store %arg5[%c0_113, %c0_114, %c0_115], %323 {strides = array<i32>} : memref<2x6x32xf32, #tpu.memory_space<vmem>>, vector<1x6x32xf32>,
    %c1 = arith.constant 1 : index
    %c0_116 = arith.constant 0 : index
    %c0_117 = arith.constant 0 : index
    %324 = vector.load %arg2[%c1, %c0_116, %c0_117] : memref<2x2x16xf32, #tpu.memory_space<vmem>>, vector<1x2x16xf32>
    %325 = vector.shape_cast %324 : vector<1x2x16xf32> to vector<2x16xf32>
    %c1_118 = arith.constant 1 : index
    %c0_119 = arith.constant 0 : index
    %c0_120 = arith.constant 0 : index
    %326 = vector.load %arg3[%c1_118, %c0_119, %c0_120] : memref<2x2x32xf32, #tpu.memory_space<vmem>>, vector<1x2x32xf32>
    %327 = vector.shape_cast %326 : vector<1x2x32xf32> to vector<2x32xf32>
    %c1_121 = arith.constant 1 : index
    %328 = memref.load %arg1[%c1_121] : memref<2xi32, #tpu.memory_space<smem>>
    %cst_122 = arith.constant dense<0.000000e+00> : vector<8x16xf32>
    %329 = tpu.matmul %0, %325, %cst_122 {dimension_numbers = #tpu.dot_dimension_numbers<[1], [0], [0], [1], [0, 0, 1, 1], [], []>} : vector<8x2xf32>, vector<2x16xf32>, vector<8x16xf32> -> vector<8x16xf32>
    %cst_123 = arith.constant 0.000000e+00 : f32
    %330 = vector.broadcast %cst_123 : f32 to vector<2x32xf32>
    %331 = vector.extract_strided_slice %329 {offsets = [0, 0], sizes = [2, 16], strides = [1, 1]} : vector<8x16xf32> to vector<2x16xf32>
    %332 = vector.extract_strided_slice %2 {offsets = [0, 0], sizes = [16, 32], strides = [1, 1]} : vector<64x32xf32> to vector<16x32xf32>
    %cst_124 = arith.constant dense<0.000000e+00> : vector<2x32xf32>
    %333 = tpu.matmul %331, %332, %cst_124 {dimension_numbers = #tpu.dot_dimension_numbers<[1], [0], [0], [1], [0, 0, 1, 1], [], []>} : vector<2x16xf32>, vector<16x32xf32>, vector<2x32xf32> -> vector<2x32xf32>
    %334 = arith.addf %330, %333 : vector<2x32xf32>
    %335 = vector.extract_strided_slice %329 {offsets = [2, 0], sizes = [2, 16], strides = [1, 1]} : vector<8x16xf32> to vector<2x16xf32>
    %336 = vector.extract_strided_slice %2 {offsets = [16, 0], sizes = [16, 32], strides = [1, 1]} : vector<64x32xf32> to vector<16x32xf32>
    %cst_125 = arith.constant dense<0.000000e+00> : vector<2x32xf32>
    %337 = tpu.matmul %335, %336, %cst_125 {dimension_numbers = #tpu.dot_dimension_numbers<[1], [0], [0], [1], [0, 0, 1, 1], [], []>} : vector<2x16xf32>, vector<16x32xf32>, vector<2x32xf32> -> vector<2x32xf32>
    %338 = arith.addf %334, %337 : vector<2x32xf32>
    %339 = vector.extract_strided_slice %329 {offsets = [4, 0], sizes = [2, 16], strides = [1, 1]} : vector<8x16xf32> to vector<2x16xf32>
    %340 = vector.extract_strided_slice %2 {offsets = [32, 0], sizes = [16, 32], strides = [1, 1]} : vector<64x32xf32> to vector<16x32xf32>
    %cst_126 = arith.constant dense<0.000000e+00> : vector<2x32xf32>
    %341 = tpu.matmul %339, %340, %cst_126 {dimension_numbers = #tpu.dot_dimension_numbers<[1], [0], [0], [1], [0, 0, 1, 1], [], []>} : vector<2x16xf32>, vector<16x32xf32>, vector<2x32xf32> -> vector<2x32xf32>
    %342 = arith.addf %338, %341 : vector<2x32xf32>
    %343 = vector.extract_strided_slice %329 {offsets = [6, 0], sizes = [2, 16], strides = [1, 1]} : vector<8x16xf32> to vector<2x16xf32>
    %344 = vector.extract_strided_slice %2 {offsets = [48, 0], sizes = [16, 32], strides = [1, 1]} : vector<64x32xf32> to vector<16x32xf32>
    %cst_127 = arith.constant dense<0.000000e+00> : vector<2x32xf32>
    %345 = tpu.matmul %343, %344, %cst_127 {dimension_numbers = #tpu.dot_dimension_numbers<[1], [0], [0], [1], [0, 0, 1, 1], [], []>} : vector<2x16xf32>, vector<16x32xf32>, vector<2x32xf32> -> vector<2x32xf32>
    %346 = arith.addf %342, %345 : vector<2x32xf32>
    %347 = vector.broadcast %1 : vector<2x1xf32> to vector<2x32xf32>
    %348 = arith.addf %346, %347 : vector<2x32xf32>
    %349 = tpu.concatenate %348, %327 in 0 : vector<2x32xf32>, vector<2x32xf32> -> vector<4x32xf32>
    %350 = tpu.iota {dimensions = array<i32: 0>} : vector<8x64xi32>
    %351 = vector.broadcast %328 : i32 to vector<8x64xi32>
    %352 = arith.cmpi eq, %350, %351 : vector<8x64xi32>
    %cst_128 = arith.constant 0.000000e+00 : f32
    %353 = vector.broadcast %cst_128 : f32 to vector<8x64xf32>
    %354 = arith.select %352, %3, %353 : vector<8x64xi1>, vector<8x64xf32>
    %cst_129 = arith.constant dense<0.000000e+00> : vector<64xf32>
    %355 = vector.multi_reduction <add>, %354, %cst_129 [0] : vector<8x64xf32> to vector<64xf32>
    %356 = vector.shape_cast %355 : vector<64xf32> to vector<1x64xf32>
    %cst_130 = arith.constant dense<0.000000e+00> : vector<1x128xf32>
    %357 = tpu.matmul %356, %4, %cst_130 {dimension_numbers = #tpu.dot_dimension_numbers<[1], [0], [0], [1], [0, 0, 1, 1], [], []>} : vector<1x64xf32>, vector<64x128xf32>, vector<1x128xf32> -> vector<1x128xf32>
    %358 = arith.addf %357, %5 : vector<1x128xf32>
    %cst_131 = arith.constant 0.000000e+00 : f32
    %359 = vector.broadcast %cst_131 : f32 to vector<1x128xf32>
    %360 = arith.maximumf %358, %359 : vector<1x128xf32>
    %361 = math.absf %358 : vector<1x128xf32>
    %cst_132 = arith.constant 0.000000e+00 : f32
    %362 = vector.broadcast %cst_132 : f32 to vector<1x128xf32>
    %363 = arith.subf %362, %361 : vector<1x128xf32>
    %364 = math.exp %363 : vector<1x128xf32>
    %365 = math.log1p %364 : vector<1x128xf32>
    %366 = arith.addf %360, %365 : vector<1x128xf32>
    %367 = math.tanh %366 : vector<1x128xf32>
    %368 = arith.mulf %358, %367 : vector<1x128xf32>
    %cst_133 = arith.constant dense<0.000000e+00> : vector<1x32xf32>
    %369 = tpu.matmul %368, %6, %cst_133 {dimension_numbers = #tpu.dot_dimension_numbers<[1], [0], [0], [1], [0, 0, 1, 1], [], []>} : vector<1x128xf32>, vector<128x32xf32>, vector<1x32xf32> -> vector<1x32xf32>
    %370 = arith.addf %369, %7 : vector<1x32xf32>
    %cst_134 = arith.constant 0.000000e+00 : f32
    %371 = vector.broadcast %cst_134 : f32 to vector<1x32xf32>
    %372 = arith.maximumf %370, %371 : vector<1x32xf32>
    %373 = math.absf %370 : vector<1x32xf32>
    %cst_135 = arith.constant 0.000000e+00 : f32
    %374 = vector.broadcast %cst_135 : f32 to vector<1x32xf32>
    %375 = arith.subf %374, %373 : vector<1x32xf32>
    %376 = math.exp %375 : vector<1x32xf32>
    %377 = math.log1p %376 : vector<1x32xf32>
    %378 = arith.addf %372, %377 : vector<1x32xf32>
    %379 = math.tanh %378 : vector<1x32xf32>
    %380 = arith.mulf %370, %379 : vector<1x32xf32>
    %381 = vector.broadcast %8 : vector<4x1xf32> to vector<4x32xf32>
    %382 = vector.broadcast %380 : vector<1x32xf32> to vector<4x32xf32>
    %383 = arith.mulf %381, %382 : vector<4x32xf32>
    %384 = vector.broadcast %9 : vector<4x1xf32> to vector<4x32xf32>
    %385 = arith.addf %383, %384 : vector<4x32xf32>
    %cst_136 = arith.constant 0.000000e+00 : f32
    %386 = vector.broadcast %cst_136 : f32 to vector<4x32xf32>
    %387 = arith.maximumf %385, %386 : vector<4x32xf32>
    %388 = math.absf %385 : vector<4x32xf32>
    %cst_137 = arith.constant 0.000000e+00 : f32
    %389 = vector.broadcast %cst_137 : f32 to vector<4x32xf32>
    %390 = arith.subf %389, %388 : vector<4x32xf32>
    %391 = math.exp %390 : vector<4x32xf32>
    %392 = math.log1p %391 : vector<4x32xf32>
    %393 = arith.addf %387, %392 : vector<4x32xf32>
    %394 = math.tanh %393 : vector<4x32xf32>
    %395 = arith.mulf %385, %394 : vector<4x32xf32>
    %396 = vector.broadcast %370 : vector<1x32xf32> to vector<4x32xf32>
    %397 = arith.addf %395, %396 : vector<4x32xf32>
    %cst_138 = arith.constant dense<0.000000e+00> : vector<4x32xf32>
    %398 = tpu.matmul %10, %397, %cst_138 {dimension_numbers = #tpu.dot_dimension_numbers<[1], [0], [0], [1], [0, 0, 1, 1], [], []>} : vector<4x4xf32>, vector<4x32xf32>, vector<4x32xf32> -> vector<4x32xf32>
    %399 = vector.broadcast %11 : vector<4x1xf32> to vector<4x32xf32>
    %400 = arith.addf %398, %399 : vector<4x32xf32>
    %401 = arith.addf %349, %400 : vector<4x32xf32>
    %cst_139 = arith.constant 0.000000e+00 : f32
    %402 = vector.broadcast %cst_139 : f32 to vector<4x2xf32>
    %cst_140 = arith.constant 0.000000e+00 : f32
    %403 = vector.broadcast %cst_140 : f32 to vector<4x2xf32>
    %404 = tpu.concatenate %402, %401, %403 in 1 : vector<4x2xf32>, vector<4x32xf32>, vector<4x2xf32> -> vector<4x36xf32>
    %405 = vector.extract_strided_slice %404 {offsets = [0, 0], sizes = [4, 32], strides = [1, 1]} : vector<4x36xf32> to vector<4x32xf32>
    %406 = vector.extract_strided_slice %404 {offsets = [0, 1], sizes = [4, 32], strides = [1, 1]} : vector<4x36xf32> to vector<4x32xf32>
    %407 = vector.extract_strided_slice %404 {offsets = [0, 2], sizes = [4, 32], strides = [1, 1]} : vector<4x36xf32> to vector<4x32xf32>
    %408 = vector.extract_strided_slice %404 {offsets = [0, 3], sizes = [4, 32], strides = [1, 1]} : vector<4x36xf32> to vector<4x32xf32>
    %409 = vector.extract_strided_slice %404 {offsets = [0, 4], sizes = [4, 32], strides = [1, 1]} : vector<4x36xf32> to vector<4x32xf32>
    %410 = tpu.concatenate %405, %406, %407, %408, %409 in 0 : vector<4x32xf32>, vector<4x32xf32>, vector<4x32xf32>, vector<4x32xf32>, vector<4x32xf32> -> vector<20x32xf32>
    %cst_141 = arith.constant dense<0.000000e+00> : vector<6x32xf32>
    %411 = tpu.matmul %12, %410, %cst_141 {dimension_numbers = #tpu.dot_dimension_numbers<[1], [0], [0], [1], [0, 0, 1, 1], [], []>} : vector<6x20xf32>, vector<20x32xf32>, vector<6x32xf32> -> vector<6x32xf32>
    %412 = vector.broadcast %13 : vector<6x1xf32> to vector<6x32xf32>
    %413 = arith.addf %411, %412 : vector<6x32xf32>
    %cst_142 = arith.constant dense<0.000000e+00> : vector<6xf32>
    %414 = vector.multi_reduction <add>, %413, %cst_142 [1] : vector<6x32xf32> to vector<6xf32>
    %415 = vector.shape_cast %414 : vector<6xf32> to vector<6x1xf32>
    %cst_143 = arith.constant 3.200000e+01 : f32
    %416 = vector.broadcast %cst_143 : f32 to vector<6x1xf32>
    %417 = arith.divf %415, %416 : vector<6x1xf32>
    %418 = vector.broadcast %417 : vector<6x1xf32> to vector<6x32xf32>
    %419 = arith.subf %413, %418 : vector<6x32xf32>
    %420 = arith.mulf %419, %419 : vector<6x32xf32>
    %cst_144 = arith.constant dense<0.000000e+00> : vector<6xf32>
    %421 = vector.multi_reduction <add>, %420, %cst_144 [1] : vector<6x32xf32> to vector<6xf32>
    %422 = vector.shape_cast %421 : vector<6xf32> to vector<6x1xf32>
    %cst_145 = arith.constant 3.200000e+01 : f32
    %423 = vector.broadcast %cst_145 : f32 to vector<6x1xf32>
    %424 = arith.divf %422, %423 : vector<6x1xf32>
    %425 = vector.broadcast %417 : vector<6x1xf32> to vector<6x32xf32>
    %426 = arith.subf %413, %425 : vector<6x32xf32>
    %cst_146 = arith.constant 9.99999974E-6 : f32
    %427 = vector.broadcast %cst_146 : f32 to vector<6x1xf32>
    %428 = arith.addf %424, %427 : vector<6x1xf32>
    %429 = math.rsqrt %428 : vector<6x1xf32>
    %430 = vector.broadcast %429 : vector<6x1xf32> to vector<6x32xf32>
    %431 = arith.mulf %426, %430 : vector<6x32xf32>
    %432 = vector.broadcast %14 : vector<1x32xf32> to vector<6x32xf32>
    %433 = arith.mulf %431, %432 : vector<6x32xf32>
    %434 = vector.broadcast %15 : vector<1x32xf32> to vector<6x32xf32>
    %435 = arith.addf %433, %434 : vector<6x32xf32>
    %cst_147 = arith.constant 0.000000e+00 : f32
    %436 = vector.broadcast %cst_147 : f32 to vector<6x32xf32>
    %437 = arith.maximumf %435, %436 : vector<6x32xf32>
    %438 = math.absf %435 : vector<6x32xf32>
    %cst_148 = arith.constant 0.000000e+00 : f32
    %439 = vector.broadcast %cst_148 : f32 to vector<6x32xf32>
    %440 = arith.subf %439, %438 : vector<6x32xf32>
    %441 = math.exp %440 : vector<6x32xf32>
    %442 = math.log1p %441 : vector<6x32xf32>
    %443 = arith.addf %437, %442 : vector<6x32xf32>
    %444 = math.tanh %443 : vector<6x32xf32>
    %445 = arith.mulf %435, %444 : vector<6x32xf32>
    %cst_149 = arith.constant dense<0.000000e+00> : vector<6x32xf32>
    %446 = tpu.matmul %16, %445, %cst_149 {dimension_numbers = #tpu.dot_dimension_numbers<[1], [0], [0], [1], [0, 0, 1, 1], [], []>} : vector<6x6xf32>, vector<6x32xf32>, vector<6x32xf32> -> vector<6x32xf32>
    %447 = vector.broadcast %17 : vector<6x1xf32> to vector<6x32xf32>
    %448 = arith.addf %446, %447 : vector<6x32xf32>
    %cst_150 = arith.constant dense<0.000000e+00> : vector<6xf32>
    %449 = vector.multi_reduction <add>, %448, %cst_150 [1] : vector<6x32xf32> to vector<6xf32>
    %450 = vector.shape_cast %449 : vector<6xf32> to vector<6x1xf32>
    %cst_151 = arith.constant 3.200000e+01 : f32
    %451 = vector.broadcast %cst_151 : f32 to vector<6x1xf32>
    %452 = arith.divf %450, %451 : vector<6x1xf32>
    %453 = vector.broadcast %452 : vector<6x1xf32> to vector<6x32xf32>
    %454 = arith.subf %448, %453 : vector<6x32xf32>
    %455 = arith.mulf %454, %454 : vector<6x32xf32>
    %cst_152 = arith.constant dense<0.000000e+00> : vector<6xf32>
    %456 = vector.multi_reduction <add>, %455, %cst_152 [1] : vector<6x32xf32> to vector<6xf32>
    %457 = vector.shape_cast %456 : vector<6xf32> to vector<6x1xf32>
    %cst_153 = arith.constant 3.200000e+01 : f32
    %458 = vector.broadcast %cst_153 : f32 to vector<6x1xf32>
    %459 = arith.divf %457, %458 : vector<6x1xf32>
    %460 = vector.broadcast %452 : vector<6x1xf32> to vector<6x32xf32>
    %461 = arith.subf %448, %460 : vector<6x32xf32>
    %cst_154 = arith.constant 9.99999974E-6 : f32
    %462 = vector.broadcast %cst_154 : f32 to vector<6x1xf32>
    %463 = arith.addf %459, %462 : vector<6x1xf32>
    %464 = math.rsqrt %463 : vector<6x1xf32>
    %465 = vector.broadcast %464 : vector<6x1xf32> to vector<6x32xf32>
    %466 = arith.mulf %461, %465 : vector<6x32xf32>
    %467 = vector.broadcast %18 : vector<1x32xf32> to vector<6x32xf32>
    %468 = arith.mulf %466, %467 : vector<6x32xf32>
    %469 = vector.broadcast %19 : vector<1x32xf32> to vector<6x32xf32>
    %470 = arith.addf %468, %469 : vector<6x32xf32>
    %cst_155 = arith.constant dense<0.000000e+00> : vector<48x32xf32>
    %471 = tpu.matmul %20, %470, %cst_155 {dimension_numbers = #tpu.dot_dimension_numbers<[1], [0], [0], [1], [0, 0, 1, 1], [], []>} : vector<48x6xf32>, vector<6x32xf32>, vector<48x32xf32> -> vector<48x32xf32>
    %472 = vector.extract_strided_slice %471 {offsets = [0, 0], sizes = [16, 32], strides = [1, 1]} : vector<48x32xf32> to vector<16x32xf32>
    %473 = vector.extract_strided_slice %471 {offsets = [16, 0], sizes = [16, 32], strides = [1, 1]} : vector<48x32xf32> to vector<16x32xf32>
    %474 = vector.extract_strided_slice %471 {offsets = [32, 0], sizes = [16, 32], strides = [1, 1]} : vector<48x32xf32> to vector<16x32xf32>
    %cst_156 = arith.constant dense<0.000000e+00> : vector<16x32xf32>
    %475 = tpu.matmul %472, %21, %cst_156 {dimension_numbers = #tpu.dot_dimension_numbers<[1], [0], [0], [1], [0, 0, 1, 1], [], []>} : vector<16x32xf32>, vector<32x32xf32>, vector<16x32xf32> -> vector<16x32xf32>
    %476 = vector.broadcast %24 : vector<1x32xf32> to vector<16x32xf32>
    %477 = arith.addf %475, %476 : vector<16x32xf32>
    %cst_157 = arith.constant dense<0.000000e+00> : vector<16x32xf32>
    %478 = tpu.matmul %473, %22, %cst_157 {dimension_numbers = #tpu.dot_dimension_numbers<[1], [0], [0], [1], [0, 0, 1, 1], [], []>} : vector<16x32xf32>, vector<32x32xf32>, vector<16x32xf32> -> vector<16x32xf32>
    %479 = vector.broadcast %25 : vector<1x32xf32> to vector<16x32xf32>
    %480 = arith.addf %478, %479 : vector<16x32xf32>
    %cst_158 = arith.constant dense<0.000000e+00> : vector<16x32xf32>
    %481 = tpu.matmul %474, %23, %cst_158 {dimension_numbers = #tpu.dot_dimension_numbers<[1], [0], [0], [1], [0, 0, 1, 1], [], []>} : vector<16x32xf32>, vector<32x32xf32>, vector<16x32xf32> -> vector<16x32xf32>
    %482 = vector.broadcast %26 : vector<1x32xf32> to vector<16x32xf32>
    %483 = arith.addf %481, %482 : vector<16x32xf32>
    %484 = vector.extract_strided_slice %477 {offsets = [0, 0], sizes = [16, 8], strides = [1, 1]} : vector<16x32xf32> to vector<16x8xf32>
    %485 = vector.extract_strided_slice %480 {offsets = [0, 0], sizes = [16, 8], strides = [1, 1]} : vector<16x32xf32> to vector<16x8xf32>
    %486 = vector.extract_strided_slice %483 {offsets = [0, 0], sizes = [16, 8], strides = [1, 1]} : vector<16x32xf32> to vector<16x8xf32>
    %cst_159 = arith.constant dense<0.000000e+00> : vector<16x16xf32>
    %487 = tpu.matmul %484, %485, %cst_159 {dimension_numbers = #tpu.dot_dimension_numbers<[1], [1], [0], [0], [0, 0, 1, 0], [], []>} : vector<16x8xf32>, vector<16x8xf32>, vector<16x16xf32> -> vector<16x16xf32>
    %cst_160 = arith.constant 0.353553385 : f32
    %488 = vector.broadcast %cst_160 : f32 to vector<16x16xf32>
    %489 = arith.mulf %487, %488 : vector<16x16xf32>
    %cst_161 = arith.constant dense<0xFF800000> : vector<16xf32>
    %490 = vector.multi_reduction <maximumf>, %489, %cst_161 [1] : vector<16x16xf32> to vector<16xf32>
    %491 = vector.shape_cast %490 : vector<16xf32> to vector<16x1xf32>
    %492 = vector.broadcast %491 : vector<16x1xf32> to vector<16x16xf32>
    %493 = arith.subf %489, %492 : vector<16x16xf32>
    %494 = math.exp %493 : vector<16x16xf32>
    %cst_162 = arith.constant dense<0.000000e+00> : vector<16xf32>
    %495 = vector.multi_reduction <add>, %494, %cst_162 [1] : vector<16x16xf32> to vector<16xf32>
    %496 = vector.shape_cast %495 : vector<16xf32> to vector<16x1xf32>
    %497 = tpu.reciprocal %496 {approx = true} : vector<16x1xf32> -> vector<16x1xf32>
    %498 = vector.broadcast %497 : vector<16x1xf32> to vector<16x16xf32>
    %499 = arith.mulf %494, %498 : vector<16x16xf32>
    %cst_163 = arith.constant dense<0.000000e+00> : vector<16x8xf32>
    %500 = tpu.matmul %499, %486, %cst_163 {dimension_numbers = #tpu.dot_dimension_numbers<[1], [0], [0], [1], [0, 0, 1, 1], [], []>} : vector<16x16xf32>, vector<16x8xf32>, vector<16x8xf32> -> vector<16x8xf32>
    %501 = vector.extract_strided_slice %477 {offsets = [0, 8], sizes = [16, 8], strides = [1, 1]} : vector<16x32xf32> to vector<16x8xf32>
    %502 = vector.extract_strided_slice %480 {offsets = [0, 8], sizes = [16, 8], strides = [1, 1]} : vector<16x32xf32> to vector<16x8xf32>
    %503 = vector.extract_strided_slice %483 {offsets = [0, 8], sizes = [16, 8], strides = [1, 1]} : vector<16x32xf32> to vector<16x8xf32>
    %cst_164 = arith.constant dense<0.000000e+00> : vector<16x16xf32>
    %504 = tpu.matmul %501, %502, %cst_164 {dimension_numbers = #tpu.dot_dimension_numbers<[1], [1], [0], [0], [0, 0, 1, 0], [], []>} : vector<16x8xf32>, vector<16x8xf32>, vector<16x16xf32> -> vector<16x16xf32>
    %cst_165 = arith.constant 0.353553385 : f32
    %505 = vector.broadcast %cst_165 : f32 to vector<16x16xf32>
    %506 = arith.mulf %504, %505 : vector<16x16xf32>
    %cst_166 = arith.constant dense<0xFF800000> : vector<16xf32>
    %507 = vector.multi_reduction <maximumf>, %506, %cst_166 [1] : vector<16x16xf32> to vector<16xf32>
    %508 = vector.shape_cast %507 : vector<16xf32> to vector<16x1xf32>
    %509 = vector.broadcast %508 : vector<16x1xf32> to vector<16x16xf32>
    %510 = arith.subf %506, %509 : vector<16x16xf32>
    %511 = math.exp %510 : vector<16x16xf32>
    %cst_167 = arith.constant dense<0.000000e+00> : vector<16xf32>
    %512 = vector.multi_reduction <add>, %511, %cst_167 [1] : vector<16x16xf32> to vector<16xf32>
    %513 = vector.shape_cast %512 : vector<16xf32> to vector<16x1xf32>
    %514 = tpu.reciprocal %513 {approx = true} : vector<16x1xf32> -> vector<16x1xf32>
    %515 = vector.broadcast %514 : vector<16x1xf32> to vector<16x16xf32>
    %516 = arith.mulf %511, %515 : vector<16x16xf32>
    %cst_168 = arith.constant dense<0.000000e+00> : vector<16x8xf32>
    %517 = tpu.matmul %516, %503, %cst_168 {dimension_numbers = #tpu.dot_dimension_numbers<[1], [0], [0], [1], [0, 0, 1, 1], [], []>} : vector<16x16xf32>, vector<16x8xf32>, vector<16x8xf32> -> vector<16x8xf32>
    %518 = vector.extract_strided_slice %477 {offsets = [0, 16], sizes = [16, 8], strides = [1, 1]} : vector<16x32xf32> to vector<16x8xf32>
    %519 = vector.extract_strided_slice %480 {offsets = [0, 16], sizes = [16, 8], strides = [1, 1]} : vector<16x32xf32> to vector<16x8xf32>
    %520 = vector.extract_strided_slice %483 {offsets = [0, 16], sizes = [16, 8], strides = [1, 1]} : vector<16x32xf32> to vector<16x8xf32>
    %cst_169 = arith.constant dense<0.000000e+00> : vector<16x16xf32>
    %521 = tpu.matmul %518, %519, %cst_169 {dimension_numbers = #tpu.dot_dimension_numbers<[1], [1], [0], [0], [0, 0, 1, 0], [], []>} : vector<16x8xf32>, vector<16x8xf32>, vector<16x16xf32> -> vector<16x16xf32>
    %cst_170 = arith.constant 0.353553385 : f32
    %522 = vector.broadcast %cst_170 : f32 to vector<16x16xf32>
    %523 = arith.mulf %521, %522 : vector<16x16xf32>
    %cst_171 = arith.constant dense<0xFF800000> : vector<16xf32>
    %524 = vector.multi_reduction <maximumf>, %523, %cst_171 [1] : vector<16x16xf32> to vector<16xf32>
    %525 = vector.shape_cast %524 : vector<16xf32> to vector<16x1xf32>
    %526 = vector.broadcast %525 : vector<16x1xf32> to vector<16x16xf32>
    %527 = arith.subf %523, %526 : vector<16x16xf32>
    %528 = math.exp %527 : vector<16x16xf32>
    %cst_172 = arith.constant dense<0.000000e+00> : vector<16xf32>
    %529 = vector.multi_reduction <add>, %528, %cst_172 [1] : vector<16x16xf32> to vector<16xf32>
    %530 = vector.shape_cast %529 : vector<16xf32> to vector<16x1xf32>
    %531 = tpu.reciprocal %530 {approx = true} : vector<16x1xf32> -> vector<16x1xf32>
    %532 = vector.broadcast %531 : vector<16x1xf32> to vector<16x16xf32>
    %533 = arith.mulf %528, %532 : vector<16x16xf32>
    %cst_173 = arith.constant dense<0.000000e+00> : vector<16x8xf32>
    %534 = tpu.matmul %533, %520, %cst_173 {dimension_numbers = #tpu.dot_dimension_numbers<[1], [0], [0], [1], [0, 0, 1, 1], [], []>} : vector<16x16xf32>, vector<16x8xf32>, vector<16x8xf32> -> vector<16x8xf32>
    %535 = vector.extract_strided_slice %477 {offsets = [0, 24], sizes = [16, 8], strides = [1, 1]} : vector<16x32xf32> to vector<16x8xf32>
    %536 = vector.extract_strided_slice %480 {offsets = [0, 24], sizes = [16, 8], strides = [1, 1]} : vector<16x32xf32> to vector<16x8xf32>
    %537 = vector.extract_strided_slice %483 {offsets = [0, 24], sizes = [16, 8], strides = [1, 1]} : vector<16x32xf32> to vector<16x8xf32>
    %cst_174 = arith.constant dense<0.000000e+00> : vector<16x16xf32>
    %538 = tpu.matmul %535, %536, %cst_174 {dimension_numbers = #tpu.dot_dimension_numbers<[1], [1], [0], [0], [0, 0, 1, 0], [], []>} : vector<16x8xf32>, vector<16x8xf32>, vector<16x16xf32> -> vector<16x16xf32>
    %cst_175 = arith.constant 0.353553385 : f32
    %539 = vector.broadcast %cst_175 : f32 to vector<16x16xf32>
    %540 = arith.mulf %538, %539 : vector<16x16xf32>
    %cst_176 = arith.constant dense<0xFF800000> : vector<16xf32>
    %541 = vector.multi_reduction <maximumf>, %540, %cst_176 [1] : vector<16x16xf32> to vector<16xf32>
    %542 = vector.shape_cast %541 : vector<16xf32> to vector<16x1xf32>
    %543 = vector.broadcast %542 : vector<16x1xf32> to vector<16x16xf32>
    %544 = arith.subf %540, %543 : vector<16x16xf32>
    %545 = math.exp %544 : vector<16x16xf32>
    %cst_177 = arith.constant dense<0.000000e+00> : vector<16xf32>
    %546 = vector.multi_reduction <add>, %545, %cst_177 [1] : vector<16x16xf32> to vector<16xf32>
    %547 = vector.shape_cast %546 : vector<16xf32> to vector<16x1xf32>
    %548 = tpu.reciprocal %547 {approx = true} : vector<16x1xf32> -> vector<16x1xf32>
    %549 = vector.broadcast %548 : vector<16x1xf32> to vector<16x16xf32>
    %550 = arith.mulf %545, %549 : vector<16x16xf32>
    %cst_178 = arith.constant dense<0.000000e+00> : vector<16x8xf32>
    %551 = tpu.matmul %550, %537, %cst_178 {dimension_numbers = #tpu.dot_dimension_numbers<[1], [0], [0], [1], [0, 0, 1, 1], [], []>} : vector<16x16xf32>, vector<16x8xf32>, vector<16x8xf32> -> vector<16x8xf32>
    %552 = tpu.concatenate %500, %517, %534, %551 in 1 : vector<16x8xf32>, vector<16x8xf32>, vector<16x8xf32>, vector<16x8xf32> -> vector<16x32xf32>
    %cst_179 = arith.constant dense<0.000000e+00> : vector<16x32xf32>
    %553 = tpu.matmul %552, %27, %cst_179 {dimension_numbers = #tpu.dot_dimension_numbers<[1], [0], [0], [1], [0, 0, 1, 1], [], []>} : vector<16x32xf32>, vector<32x32xf32>, vector<16x32xf32> -> vector<16x32xf32>
    %554 = vector.broadcast %28 : vector<1x32xf32> to vector<16x32xf32>
    %555 = arith.addf %553, %554 : vector<16x32xf32>
    %cst_180 = arith.constant dense<0.000000e+00> : vector<6x32xf32>
    %556 = tpu.matmul %29, %555, %cst_180 {dimension_numbers = #tpu.dot_dimension_numbers<[1], [0], [0], [1], [0, 0, 1, 1], [], []>} : vector<6x16xf32>, vector<16x32xf32>, vector<6x32xf32> -> vector<6x32xf32>
    %557 = vector.broadcast %30 : vector<6x1xf32> to vector<6x32xf32>
    %558 = arith.addf %556, %557 : vector<6x32xf32>
    %559 = arith.addf %558, %448 : vector<6x32xf32>
    %cst_181 = arith.constant 0.000000e+00 : f32
    %560 = vector.broadcast %cst_181 : f32 to vector<6x2xf32>
    %cst_182 = arith.constant 0.000000e+00 : f32
    %561 = vector.broadcast %cst_182 : f32 to vector<6x2xf32>
    %562 = tpu.concatenate %560, %559, %561 in 1 : vector<6x2xf32>, vector<6x32xf32>, vector<6x2xf32> -> vector<6x36xf32>
    %563 = vector.extract_strided_slice %562 {offsets = [0, 0], sizes = [6, 32], strides = [1, 1]} : vector<6x36xf32> to vector<6x32xf32>
    %564 = vector.extract_strided_slice %562 {offsets = [0, 1], sizes = [6, 32], strides = [1, 1]} : vector<6x36xf32> to vector<6x32xf32>
    %565 = vector.extract_strided_slice %562 {offsets = [0, 2], sizes = [6, 32], strides = [1, 1]} : vector<6x36xf32> to vector<6x32xf32>
    %566 = vector.extract_strided_slice %562 {offsets = [0, 3], sizes = [6, 32], strides = [1, 1]} : vector<6x36xf32> to vector<6x32xf32>
    %567 = vector.extract_strided_slice %562 {offsets = [0, 4], sizes = [6, 32], strides = [1, 1]} : vector<6x36xf32> to vector<6x32xf32>
    %568 = tpu.concatenate %563, %564, %565, %566, %567 in 0 : vector<6x32xf32>, vector<6x32xf32>, vector<6x32xf32>, vector<6x32xf32>, vector<6x32xf32> -> vector<30x32xf32>
    %cst_183 = arith.constant dense<0.000000e+00> : vector<6x32xf32>
    %569 = tpu.matmul %31, %568, %cst_183 {dimension_numbers = #tpu.dot_dimension_numbers<[1], [0], [0], [1], [0, 0, 1, 1], [], []>} : vector<6x30xf32>, vector<30x32xf32>, vector<6x32xf32> -> vector<6x32xf32>
    %570 = vector.broadcast %32 : vector<6x1xf32> to vector<6x32xf32>
    %571 = arith.addf %569, %570 : vector<6x32xf32>
    %cst_184 = arith.constant dense<0.000000e+00> : vector<6xf32>
    %572 = vector.multi_reduction <add>, %571, %cst_184 [1] : vector<6x32xf32> to vector<6xf32>
    %573 = vector.shape_cast %572 : vector<6xf32> to vector<6x1xf32>
    %cst_185 = arith.constant 3.200000e+01 : f32
    %574 = vector.broadcast %cst_185 : f32 to vector<6x1xf32>
    %575 = arith.divf %573, %574 : vector<6x1xf32>
    %576 = vector.broadcast %575 : vector<6x1xf32> to vector<6x32xf32>
    %577 = arith.subf %571, %576 : vector<6x32xf32>
    %578 = arith.mulf %577, %577 : vector<6x32xf32>
    %cst_186 = arith.constant dense<0.000000e+00> : vector<6xf32>
    %579 = vector.multi_reduction <add>, %578, %cst_186 [1] : vector<6x32xf32> to vector<6xf32>
    %580 = vector.shape_cast %579 : vector<6xf32> to vector<6x1xf32>
    %cst_187 = arith.constant 3.200000e+01 : f32
    %581 = vector.broadcast %cst_187 : f32 to vector<6x1xf32>
    %582 = arith.divf %580, %581 : vector<6x1xf32>
    %583 = vector.broadcast %575 : vector<6x1xf32> to vector<6x32xf32>
    %584 = arith.subf %571, %583 : vector<6x32xf32>
    %cst_188 = arith.constant 9.99999974E-6 : f32
    %585 = vector.broadcast %cst_188 : f32 to vector<6x1xf32>
    %586 = arith.addf %582, %585 : vector<6x1xf32>
    %587 = math.rsqrt %586 : vector<6x1xf32>
    %588 = vector.broadcast %587 : vector<6x1xf32> to vector<6x32xf32>
    %589 = arith.mulf %584, %588 : vector<6x32xf32>
    %590 = vector.broadcast %33 : vector<1x32xf32> to vector<6x32xf32>
    %591 = arith.mulf %589, %590 : vector<6x32xf32>
    %592 = vector.broadcast %34 : vector<1x32xf32> to vector<6x32xf32>
    %593 = arith.addf %591, %592 : vector<6x32xf32>
    %cst_189 = arith.constant 0.000000e+00 : f32
    %594 = vector.broadcast %cst_189 : f32 to vector<6x32xf32>
    %595 = arith.maximumf %593, %594 : vector<6x32xf32>
    %596 = math.absf %593 : vector<6x32xf32>
    %cst_190 = arith.constant 0.000000e+00 : f32
    %597 = vector.broadcast %cst_190 : f32 to vector<6x32xf32>
    %598 = arith.subf %597, %596 : vector<6x32xf32>
    %599 = math.exp %598 : vector<6x32xf32>
    %600 = math.log1p %599 : vector<6x32xf32>
    %601 = arith.addf %595, %600 : vector<6x32xf32>
    %602 = math.tanh %601 : vector<6x32xf32>
    %603 = arith.mulf %593, %602 : vector<6x32xf32>
    %cst_191 = arith.constant dense<0.000000e+00> : vector<6x32xf32>
    %604 = tpu.matmul %35, %349, %cst_191 {dimension_numbers = #tpu.dot_dimension_numbers<[1], [0], [0], [1], [0, 0, 1, 1], [], []>} : vector<6x4xf32>, vector<4x32xf32>, vector<6x32xf32> -> vector<6x32xf32>
    %605 = vector.broadcast %36 : vector<6x1xf32> to vector<6x32xf32>
    %606 = arith.addf %604, %605 : vector<6x32xf32>
    %607 = arith.addf %603, %606 : vector<6x32xf32>
    %c1_192 = arith.constant 1 : index
    %c0_193 = arith.constant 0 : index
    %c0_194 = arith.constant 0 : index
    %608 = vector.load %arg5[%c1_192, %c0_193, %c0_194] : memref<2x6x32xf32, #tpu.memory_space<vmem>>, vector<1x6x32xf32>
    %609 = vector.shape_cast %608 : vector<1x6x32xf32> to vector<6x32xf32>
    %610 = vector.shape_cast %607 : vector<6x32xf32> to vector<1x6x32xf32>
    tpu.vector_store %arg5[%c1_192, %c0_193, %c0_194], %610 {strides = array<i32>} : memref<2x6x32xf32, #tpu.memory_space<vmem>>, vector<1x6x32xf32>,
    return
  }
  func.func @transform_0(%arg0: i32, %arg1: memref<2xi32, #tpu.memory_space<smem>>) -> (i32, i32, i32) {
    %c0_i32 = arith.constant 0 : i32
    %c0_i32_0 = arith.constant 0 : i32
    %c0_i32_1 = arith.constant 0 : i32
    %c0_i32_2 = arith.constant 0 : i32
    return %c0_i32, %c0_i32_0, %c0_i32_1 : i32, i32, i32
  }
  func.func @transform_1(%arg0: i32, %arg1: memref<2xi32, #tpu.memory_space<smem>>) -> (i32, i32, i32) {
    %c0_i32 = arith.constant 0 : i32
    %c0_i32_0 = arith.constant 0 : i32
    %c0_i32_1 = arith.constant 0 : i32
    %c0_i32_2 = arith.constant 0 : i32
    return %c0_i32, %c0_i32_0, %c0_i32_1 : i32, i32, i32
  }
  func.func @transform_2(%arg0: i32, %arg1: memref<2xi32, #tpu.memory_space<smem>>) -> (i32, i32) {
    %c0_i32 = arith.constant 0 : i32
    %c0_i32_0 = arith.constant 0 : i32
    %c0_i32_1 = arith.constant 0 : i32
    return %c0_i32, %c0_i32_0 : i32, i32
  }
  func.func @transform_3(%arg0: i32, %arg1: memref<2xi32, #tpu.memory_space<smem>>) -> (i32, i32, i32) {
    %c0_i32 = arith.constant 0 : i32
    %c0_i32_0 = arith.constant 0 : i32
    %c0_i32_1 = arith.constant 0 : i32
    %c0_i32_2 = arith.constant 0 : i32
    return %c0_i32, %c0_i32_0, %c0_i32_1 : i32, i32, i32
  }
}

</mosaic_0001>

<bundles_post_ra>
// kernel: tpu_custom_call.1
= control target key start
LH: loop header
LB: loop body
LE: loop exit
PB: predicated region body
PF: predicated region fallthrough
CT: control target
= control target key end

     0   :  { %s6250_s15 = smov [#allocation3]   ;;  %s6952_s0 = inlined_call_operand.hbm [shape: s32[2], index: 0, kind: input, shape index: {}]   ;;  %s6953_s1 = inlined_call_operand.hbm [shape: f32[2,2,16], index: 1, kind: input, shape index: {}]   ;;  %s6954_s2 = inlined_call_operand.hbm [shape: f32[2,2,32], index: 2, kind: input, shape index: {}]   ;;  %s6955_s3 = inlined_call_operand.hbm [shape: f32[664,128], index: 3, kind: input, shape index: {}]   ;;  %s6956_s4 = inlined_call_operand.vmem [shape: f32[2,6,32], index: 4, kind: output, shape index: {}]  }
   0x1   :  { %10 = dma.hbm_to_smem %s6952_s0, 16, %s6250_s15, [#allocation2] }
   0x2   :  { %6244 = dma.done.wait [#allocation2], 16 }
   0x3   :  { %6245 = vsyncadd [#allocation2], 4294967280 }
   0x4   :  { %12 = sfence }
   0x5   :  { %13 = vsyncpa [#allocation5], 0 }
   0x6   :  { %14 = vsyncpa [#allocation7], 0  ;;  %s6251_s18 = smov [#allocation6]   ;;  %s6252_s20 = smov [#allocation4]  }
   0x7   :  { %s32_s19 = sshll.u32 %s6251_s18, 4  ;;  %s20_s21 = sshll.u32 %s6252_s20, 4  ;;  %s33_s19 = int_to_ptr.vmem [resolvable:$true] %s32_s19  ;;  %s21_s21 = int_to_ptr.vmem [resolvable:$true] %s20_s21 }
   0x8   :  { %s6192_s22 = scalar_lea.vmem %s33_s19, 64  ;;  %p6197_p1 = scmp.lt.s32.totalorder %s33_s19, %s33_s19 }
   0x9   :  { %p6193_p0 = scmp.ne.s32.totalorder %s33_s19, %s6192_s22  ;;  %p6198_p2 = scmp.lt.s32.totalorder %s6192_s22, %s6192_s22 }
   0xb   :  { %p6199_p3 = por %p6198_p2, %p6197_p1 }
   0xd   :  { %p6200_p4 = pnand %p6199_p3, %p6193_p0 }
   0xf   :  { %6203 = shalt.err (!%p6200_p4)
}
  0x10   :  { %s6253_s23 = smov 32   ;;  %s6254_s0 = smov 2  }
  0x11   :  { %38 = dma.hbm_to_vmem [thread:$0]  %s6954_s2, 64, %s33_s19, [#allocation7], %s6253_s23, %s6253_s23, %s6254_s0  }
  0x12   :  { %s6212_s26 = scalar_lea.vmem %s21_s21, 64  ;;  %p6217_p6 = scmp.lt.s32.totalorder %s21_s21, %s21_s21 }
  0x13   :  { %p6213_p5 = scmp.ne.s32.totalorder %s21_s21, %s6212_s26  ;;  %p6218_p7 = scmp.lt.s32.totalorder %s6212_s26, %s6212_s26 }
  0x15   :  { %p6219_p8 = por %p6218_p7, %p6217_p6 }
  0x17   :  { %p6220_p9 = pnand %p6219_p8, %p6213_p5 }
  0x19   :  { %6223 = shalt.err (!%p6220_p9)
}
  0x1a   :  { %26 = dma.hbm_to_vmem [thread:$0]  %s6953_s1, 64, %s21_s21, [#allocation5], %s6253_s23, %s6253_s23, %s6254_s0  }
  0x1b   :  { %s6255_s29 = smov [#allocation8]  }
  0x1c   :  { %s44_s30 = sshll.u32 %s6255_s29, 4  ;;  %s45_s30 = int_to_ptr.vmem [resolvable:$true] %s44_s30 }
  0x1d   :  { %s6232_s5 = scalar_lea.vmem %s45_s30, 10624  ;;  %p6237_p11 = scmp.lt.s32.totalorder %s45_s30, %s45_s30 }
  0x1e   :  { %p6233_p10 = scmp.ne.s32.totalorder %s45_s30, %s6232_s5  ;;  %p6238_p12 = scmp.lt.s32.totalorder %s6232_s5, %s6232_s5 }
  0x20   :  { %p6239_p13 = por %p6238_p12, %p6237_p11 }
  0x22   :  { %p6240_p0 = pnand %p6239_p13, %p6233_p10 }
  0x24   :  { %6243 = shalt.err (!%p6240_p0)
}
  0x25   :  { %s6256_s2 = smov 128   ;;  %s6257_s6 = smov 8  }
  0x26   :  { %50 = dma.hbm_to_vmem [thread:$0]  %s6955_s3, 10624, %s45_s30, [#allocation7], %s6256_s2, %s6256_s2, %s6257_s6  }
  0x27   :  { %6246 = dma.done.wait [#allocation5], 64  }
  0x28   :  { %6247 = vsyncadd [#allocation5], 4294967232 }
  0x29   :  { %6248 = dma.done.wait [#allocation7], 10688  }
  0x2a   :  { %6249 = vsyncadd [#allocation7], 4294956608  ;;  %v6258_v0 = vmov 0.0   ;;  %vm6259_vm0 = vmmov 0   ;;  %vm150_vm1 = vcmask 1041408   ;;  %vm146_vm2 = vcmask 15360  }
  0x2b   :  { %5468 = vmatprep.subr.mxu0 %v6258_v0  ;;  %5470 = vmatprep.mubr.msk.f32.mxu0 %vm6259_vm0, %v6258_v0  ;;  %v143_v1 = vld [vmem:[#allocation4] sm:$0x3]  ;;  %v60_v2 = vld [vmem:[#allocation8] sm:$0xff]  ;;  %v65_v4 = vld [vmem:[#allocation8 + $0x28] sm:$0xff]  ;;  %v6260_v8 = vmov 0   ;;  %s145_s1 = sld [smem:[#allocation3]]  ;;  %v529_v9 = vlaneseq }
  0x2c   :  { %5473 = vmatprep.subr.mxu1 %v6258_v0  ;;  %5477 = vmatprep.mubr.msk.f32.mxu1 %vm6259_vm0, %v6258_v0  ;;  %v63_v3 = vld [vmem:[#allocation8 + $0x18] sm:$0xff]  ;;  %v62_v5 = vld [vmem:[#allocation8 + $0x10] sm:$0xff]  ;;  %v64_v6 = vld [vmem:[#allocation8 + $0x20] sm:$0xff]  ;;  %vm534_vm4 = vcmask 523264   ;;  %vm226_vm5 = vcmask 130048   ;;  %vm766_vm9 = vcmask 1043456  }
  0x2d   :  { %5469 = vmatpush3.msk.msra.mxu0 %vm150_vm1, %v143_v1  ;;  %5474 = vmatpush3.msra.mxu1 %v65_v4  ;;  %v61_v7 = vld [vmem:[#allocation8 + $0x8] sm:$0x3]  ;;  %v6325_v10 = vshrl.u32 %v529_v9, 7  ;;  %v70_v12 = vld [vmem:[#allocation8 + $0x50] sm:$0xff]  ;;  %v67_v19 = vld [vmem:[#allocation8 + $0x38] sm:$0xff]  ;;  %vm762_vm10 = vcmask 31744  }
  0x2e   :  { %5471 = vmatmul.mubr.msk.f32.vlgmr.msra.gmra.mxu0 %vm146_vm2, %v60_v2  ;;  %5480 = vmatprep.subr.mxu0 %v6258_v0  ;;  %v69_v15 = vld [vmem:[#allocation8 + $0x48] sm:$0xff]  ;;  %v68_v20 = vld [vmem:[#allocation8 + $0x40] sm:$0xff]  ;;  %v66_v23 = vld [vmem:[#allocation8 + $0x30] sm:$0xff]  ;;  %vm846_vm11 = vcmask 277504   ;;  %s6261_s3 = smov 126   ;;  %s6262_s9 = smov 124  }
  0x2f   :  { %5481 = vmatpush3.msra.mxu0 %v63_v3  ;;  %5475 = vmatprep.subr.mxu1 %v6258_v0  ;;  %v78_v26 = vld [vmem:[#allocation8 + $0x90] sm:$0xff]  ;;  %v77_v27 = vld [vmem:[#allocation8 + $0x88] sm:$0xff]  ;;  %v76_v29 = vld [vmem:[#allocation8 + $0x80] sm:$0xff]  ;;  %s6263_s10 = smov 127   ;;  %s6264_s11 = smov 125   ;;  %vm868_vm12 = vcmask 162816  }
  0x30   :  { %5482 = vmatprep.subr.mxu0 %v6258_v0  ;;  %5484 = vmatprep.mubr.msk.f32.mxu0 %vm6259_vm0, %v6258_v0  ;;  %v75_v30 = vld [vmem:[#allocation8 + $0x78] sm:$0xff]  ;;  %v74_v32 = vld [vmem:[#allocation8 + $0x70] sm:$0xff]  ;;  %v73_v33 = vld [vmem:[#allocation8 + $0x68] sm:$0xff]  ;;  %vm944_vm13 = vcmask 259072   ;;  %vm995_vm15 = vcmask 1045504   ;;  %s6265_s12 = smov 120  }
  0x31   :  { %5483 = vmatpush3.msra.mxu0 %v62_v5  ;;  %5476 = vmatpush3.msra.mxu1 %v64_v6  ;;  %v531_v11 = vstv %s145_s1  ;;  %v72_v35 = vld [vmem:[#allocation8 + $0x60] sm:$0xff]  ;;  %v71_v36 = vld [vmem:[#allocation8 + $0x58] sm:$0xff]  ;;  %v94_v39 = vld [vmem:[#allocation8 + $0x110] sm:$0xff]  ;;  %s6266_s13 = smov 112   ;;  %s6267_s14 = smov 104  }
  0x32   :  { %5494 = vmatprep.subr.mxu0 %v6258_v0  ;;  %5487 = vmatprep.subr.mxu1 %v6258_v0  ;;  %vm532_vm3 = vcmp.eq.s32.totalorder %v6325_v10, %v531_v11  ;;  %v95_v38 = vld [vmem:[#allocation8 + $0x118] sm:$0xff]  ;;  %v93_v40 = vld [vmem:[#allocation8 + $0x108] sm:$0xff]  ;;  %v92_v41 = vld [vmem:[#allocation8 + $0x100] sm:$0xff]  ;;  %s6268_s15 = smov 16   ;;  %s6269_s16 = smov 24  }
  0x33   :  { %5969 = vset.pattern.permute.xlu1 %v6260_v8  ;;  %5968 = vset.pattern.permute.xlu0 %v6260_v8  ;;  %v533_v13 = vsel %vm532_vm3, %v70_v12, 0.0  ;;  %v91_v42 = vld [vmem:[#allocation8 + $0xf8] sm:$0xff]  ;;  %v90_v43 = vld [vmem:[#allocation8 + $0xf0] sm:$0xff]  ;;  %v89_v44 = vld [vmem:[#allocation8 + $0xe8] sm:$0xff]  ;;  %vm991_vm3 = vcmask 48128   ;;  %s5167_s17 = sld [smem:[#allocation3 + $0x1]] }
  0x34   :  { %521 = vperm.xlu1 %5969, %v61_v7   ;;  %v535_v14 = vsel %vm534_vm4, %v533_v13, 0.0  ;;  %v88_v45 = vld [vmem:[#allocation8 + $0xe0] sm:$0xff]  ;;  %v87_v46 = vld [vmem:[#allocation8 + $0xd8] sm:$0xff]  ;;  %v86_v47 = vld [vmem:[#allocation8 + $0xd0] sm:$0xff] }
  0x35   :  { %v536_v16 = vrot.slane %v535_v14, 4  ;;  %v85_v48 = vld [vmem:[#allocation8 + $0xc8] sm:$0xff]  ;;  %v84_v49 = vld [vmem:[#allocation8 + $0xc0] sm:$0xff]  ;;  %v83_v50 = vld [vmem:[#allocation8 + $0xb8] sm:$0xff] }
  0x36   :  { %v82_v51 = vld [vmem:[#allocation8 + $0xb0] sm:$0xff]  ;;  %v81_v52 = vld [vmem:[#allocation8 + $0xa8] sm:$0xff]  ;;  %v80_v53 = vld [vmem:[#allocation8 + $0xa0] sm:$0xff] }
  0x37   :  { %v537_v24 = vadd.f32 %v536_v16, %v535_v14  ;;  %v97_v54 = vld [vmem:[#allocation8 + $0x128] sm:$0xf]  ;;  %v98_v55 = vld [vmem:[#allocation8 + $0x130] sm:$0xf]  ;;  %v79_v4 = vld [vmem:[#allocation8 + $0x98] sm:$0x1] }
  0x38   :  { %721 = vperm.xlu0 %5968, %v97_v54  }
  0x39   :  { %v538_v28 = vrot.slane %v537_v24, 2 }
  0x3b   :  { %v539_v31 = vadd.f32 %v538_v28, %v537_v24 }
  0x3c   :  { %731 = vperm.xlu0 %5968, %v98_v55  }
  0x3d   :  { %v540_v34 = vrot.slane %v539_v31, 1 }
  0x3f   :  { %v541_v37 = vadd.f32 %v540_v34, %v539_v31 }
  0xee   :  { %v220_v17 = vpop.f32.mrf.mxu0 }
  0xef   :  { %v225_v18 = vrot.slane %v220_v17, 2  ;;  %5485 = vmatmul.mubr.msk.f32.vlgmr.msra.gmra.mxu0 %vm226_vm5, %v220_v17  ;;  %v445_v22 = vrot.slane %v220_v17, 6  ;;  %v371_v25 = vrot.slane %v220_v17, 4 }
  0xf0   :  { %v5472_v21 = vpop.f32.mrf.mxu0  ;;  %5495 = vmatpush3.msra.mxu0 %v69_v15  ;;  %5498 = vmatprep.mubr.msk.f32.mxu0 %vm6259_vm0, %v6258_v0 }
  0xf1   :  { %5478 = vmatmul.mubr.msk.f32.vlgmr.msra.gmra.mxu1 %vm226_vm5, %v225_v18  ;;  %5496 = vmatprep.subr.mxu0 %v6258_v0 }
  0xf2   :  { %5488 = vmatpush3.msra.mxu1 %v67_v19  ;;  %5497 = vmatpush3.msra.mxu0 %v68_v20 }
  0xf3   :  { %5489 = vmatprep.subr.mxu1 %v6258_v0  ;;  %5499 = vmatmul.mubr.msk.f32.vlgmr.msra.gmra.mxu0 %vm226_vm5, %v445_v22 }
  0xf4   :  { %5490 = vmatpush3.msra.mxu1 %v66_v23  ;;  %5491 = vmatprep.mubr.msk.f32.mxu1 %vm6259_vm0, %v6258_v0 }
  0xf5   :  { %5501 = vmatprep.subr.mxu1 %v6258_v0  ;;  %5492 = vmatmul.mubr.msk.f32.vlgmr.msra.gmra.mxu1 %vm226_vm5, %v371_v25  ;;  %v96_v25 = vld [vmem:[#allocation8 + $0x120] sm:$0x1] }
  0xf6   :  { %5502 = vmatpush3.msra.mxu1 %v78_v26  ;;  %5517 = vmatprep.mubr.msk.f32.mxu1 %vm6259_vm0, %v6258_v0  ;;  %v100_v26 = vld [vmem:[#allocation8 + $0x140] sm:$0xf] }
  0xf7   :  { %5503 = vmatprep.subr.mxu1 %v6258_v0  ;;  %5520 = vmatprep.subr.mxu0 %v6258_v0 }
  0xf8   :  { %5504 = vmatpush3.msra.mxu1 %v77_v27  ;;  %5552 = vmatprep.mubr.msk.f32.mxu0 %vm6259_vm0, %v6258_v0 }
  0xf9   :  { %5505 = vmatprep.subr.mxu1 %v6258_v0  ;;  %5521 = vmatpush3.msra.mxu0 %v95_v38 }
  0xfa   :  { %5506 = vmatpush3.msra.mxu1 %v76_v29  ;;  %5522 = vmatprep.subr.mxu0 %v6258_v0 }
  0xfb   :  { %5507 = vmatprep.subr.mxu1 %v6258_v0  ;;  %5523 = vmatpush3.msra.mxu0 %v94_v39 }
  0xfc   :  { %5508 = vmatpush3.msra.mxu1 %v75_v30  ;;  %5524 = vmatprep.subr.mxu0 %v6258_v0 }
  0xfd   :  { %5509 = vmatprep.subr.mxu1 %v6258_v0  ;;  %5525 = vmatpush3.msra.mxu0 %v93_v40 }
  0xfe   :  { %5510 = vmatpush3.msra.mxu1 %v74_v32  ;;  %5526 = vmatprep.subr.mxu0 %v6258_v0 }
  0xff   :  { %5511 = vmatprep.subr.mxu1 %v6258_v0  ;;  %5527 = vmatpush3.msra.mxu0 %v92_v41 }
 0x100   :  { %5512 = vmatpush3.msra.mxu1 %v73_v33  ;;  %5528 = vmatprep.subr.mxu0 %v6258_v0 }
 0x101   :  { %5513 = vmatprep.subr.mxu1 %v6258_v0  ;;  %5529 = vmatpush3.msra.mxu0 %v91_v42 }
 0x102   :  { %5514 = vmatpush3.msra.mxu1 %v72_v35  ;;  %5530 = vmatprep.subr.mxu0 %v6258_v0 }
 0x103   :  { %5515 = vmatprep.subr.mxu1 %v6258_v0  ;;  %5531 = vmatpush3.msra.mxu0 %v90_v43 }
 0x104   :  { %5516 = vmatpush3.msra.mxu1 %v71_v36  ;;  %5532 = vmatprep.subr.mxu0 %v6258_v0 }
 0x105   :  { %5518 = vmatmul.mubr.msk.f32.vlgmr.msra.gmra.mxu1 %vm534_vm4, %v541_v37  ;;  %5555 = vmatprep.subr.mxu1 %v6258_v0 }
 0x106   :  { %5557 = vmatprep.mubr.msk.f32.mxu1 %vm6259_vm0, %v6258_v0  ;;  %5533 = vmatpush3.msra.mxu0 %v89_v44 }
 0x107   :  { %5534 = vmatprep.subr.mxu0 %v6258_v0  ;;  %759 = vperm.xlu1 %5969, %v100_v26  }
 0x108   :  { %5535 = vmatpush3.msra.mxu0 %v88_v45  ;;  %v6373_v45 = vpop.permute.xlu0 %721 }
 0x109   :  { %5536 = vmatprep.subr.mxu0 %v6258_v0 }
 0x10a   :  { %5537 = vmatpush3.msra.mxu0 %v87_v46  ;;  %v6376_v46 = vsub.s32 0, %v6325_v10 }
 0x10b   :  { %5538 = vmatprep.subr.mxu0 %v6258_v0 }
 0x10c   :  { %5539 = vmatpush3.msra.mxu0 %v86_v47 }
 0x10d   :  { %5540 = vmatprep.subr.mxu0 %v6258_v0 }
 0x10e   :  { %5541 = vmatpush3.msra.mxu0 %v85_v48 }
 0x10f   :  { %5542 = vmatprep.subr.mxu0 %v6258_v0 }
 0x110   :  { %5543 = vmatpush3.msra.mxu0 %v84_v49 }
 0x111   :  { %5544 = vmatprep.subr.mxu0 %v6258_v0 }
 0x112   :  { %5545 = vmatpush3.msra.mxu0 %v83_v50  ;;  %v6380_v50 = vpop.permute.xlu0 %731 }
 0x113   :  { %5546 = vmatprep.subr.mxu0 %v6258_v0 }
 0x114   :  { %5547 = vmatpush3.msra.mxu0 %v82_v51 }
 0x115   :  { %5548 = vmatprep.subr.mxu0 %v6258_v0 }
 0x116   :  { %5549 = vmatpush3.msra.mxu0 %v81_v52 }
 0x117   :  { %5550 = vmatprep.subr.mxu0 %v6258_v0 }
 0x118   :  { %5551 = vmatpush3.msra.mxu0 %v80_v53 }
 0x1af   :  { %v367_v56 = vpop.f32.mrf.mxu0 }
 0x1b1   :  { %v295_v57 = vpop.f32.mrf.mxu1  ;;  %v5486_v58 = vpop.f32.mrf.mxu0 }
 0x1b2   :  { %v368_v59 = vadd.f32 %v367_v56, %v295_v57 }
 0x1b3   :  { %v5479_v60 = vpop.f32.mrf.mxu1  ;;  %v514_v61 = vpop.f32.mrf.mxu0 }
 0x1b5   :  { %v440_v62 = vpop.f32.mrf.mxu1  ;;  %v5500_v63 = vpop.f32.mrf.mxu0 }
 0x1b6   :  { %v444_v1 = vadd.f32 %v440_v62, %v368_v59 }
 0x1b7   :  { %v5493_v2 = vpop.f32.mrf.mxu1 }
 0x1b8   :  { %v6371_v3 = vadd.f32 %v514_v61, %v444_v1 }
 0x1c5   :  { %v611_v5 = vpop.f32.mrf.mxu1 }
 0x1c6   :  { %v612_v6 = vadd.f32 %v611_v5, %v79_v4 }
 0x1c7   :  { %v5519_v7 = vpop.f32.mrf.mxu1 }
 0x1c8   :  { %v616_v8 = vand.u32 2147483647, %v612_v6  ;;  %v615_v20 = vmax.f32 %v612_v6, 0.0 }
 0x1ca   :  { %v617_v9 = vsub.f32 0.0, %v616_v8  ;;  %v99_v8 = vld [vmem:[#allocation8 + $0x138] sm:$0xf] }
 0x1cc   :  { %v618_v11 = vmul.f32 1.442695, %v617_v9  ;;  %v6389_v9 = vpop.permute.xlu1 %521 }
 0x1ce   :  { %5970 = vpow2.f32 %v618_v11  ;;  %v144_v11 = vld [vmem:[#allocation6] sm:$0x3] }
 0x1db   :  { %v5971_v12 = vpop.eup %5970 }
 0x1dc   :  { %v620_v13 = vadd.f32 1.0, %v5971_v12  ;;  %v623_v14 = vmul.f32 -0.5, %v5971_v12  ;;  %v626_v16 = vand.u32 2147483647, %v5971_v12 }
 0x1de   :  { %5972 = vlog2.f32 %v620_v13  ;;  %v624_v15 = vadd.f32 1.0, %v623_v14  ;;  %vm627_vm6 = vcmp.lt.f32.partialorder %v626_v16, 0.0004427343  ;;  %v526_v13 = vrot.slane %v144_v11, 6  ;;  %v6393_v14 = vpop.permute.xlu1 %759 }
 0x1e0   :  { %v625_v19 = vmul.f32 %v5971_v12, %v624_v15  ;;  %v524_v12 = vadd.f32 %v6389_v9, %v6371_v3 }
 0x1eb   :  { %v5973_v17 = vpop.eup %5972 }
 0x1ec   :  { %v622_v18 = vmul.f32 0.6931472, %v5973_v17 }
 0x1ee   :  { %v628_v21 = vsel %vm627_vm6, %v625_v19, %v622_v18  ;;  %v6397_v18 = vsel %vm150_vm1, %v524_v12, %v526_v13  ;;  %vm1212_vm6 = vcmask 261120  }
 0x1ef   :  { %v629_v22 = vadd.f32 %v628_v21, %v615_v20 }
 0x1f1   :  { %5974 = vtanh.f32 %v629_v22 }
 0x1fe   :  { %v5975_v23 = vpop.eup %5974 }
 0x1ff   :  { %v631_v24 = vmul.f32 %v5975_v23, %v612_v6  ;;  %v102_v23 = vld [vmem:[#allocation8 + $0x150] sm:$0x3f] }
 0x201   :  { %5553 = vmatmul.mubr.f32.vlgmr.msra.gmra.mxu0 %v631_v24 }
 0x2c1   :  { %v698_v27 = vpop.f32.mrf.mxu0 }
 0x2c2   :  { %v699_v28 = vadd.f32 %v698_v27, %v96_v25 }
 0x2c3   :  { %v5554_v29 = vpop.f32.mrf.mxu0 }
 0x2c4   :  { %v703_v30 = vand.u32 2147483647, %v699_v28  ;;  %v702_v41 = vmax.f32 %v699_v28, 0.0  ;;  %v755_v5 = vrot.slane %v699_v28, %v6376_v46  ;;  %v101_v29 = vld [vmem:[#allocation8 + $0x148] sm:$0x3f] }
 0x2c6   :  { %v704_v31 = vsub.f32 0.0, %v703_v30 }
 0x2c8   :  { %v705_v32 = vmul.f32 1.442695, %v704_v31 }
 0x2ca   :  { %5976 = vpow2.f32 %v705_v32 }
 0x2d7   :  { %v5977_v33 = vpop.eup %5976 }
 0x2d8   :  { %v707_v34 = vadd.f32 1.0, %v5977_v33  ;;  %v710_v35 = vmul.f32 -0.5, %v5977_v33  ;;  %v713_v37 = vand.u32 2147483647, %v5977_v33 }
 0x2da   :  { %5978 = vlog2.f32 %v707_v34  ;;  %v711_v36 = vadd.f32 1.0, %v710_v35  ;;  %vm714_vm7 = vcmp.lt.f32.partialorder %v713_v37, 0.0004427343 }
 0x2dc   :  { %v712_v40 = vmul.f32 %v5977_v33, %v711_v36  ;;  %v106_v36 = vld [vmem:[#allocation8 + $0x170] sm:$0x3f] }
 0x2e7   :  { %v5979_v38 = vpop.eup %5978 }
 0x2e8   :  { %v709_v39 = vmul.f32 0.6931472, %v5979_v38 }
 0x2ea   :  { %v715_v42 = vsel %vm714_vm7, %v712_v40, %v709_v39  ;;  %vm1464_vm7 = vcmask 64512  }
 0x2eb   :  { %v716_v43 = vadd.f32 %v715_v42, %v702_v41 }
 0x2ed   :  { %5980 = vtanh.f32 %v716_v43 }
 0x2fa   :  { %v5981_v44 = vpop.eup %5980 }
 0x2fb   :  { %v718_v47 = vmul.f32 %v5981_v44, %v699_v28 }
 0x2fd   :  { %v727_v48 = vrot.slane %v718_v47, %v6376_v46 }
 0x2ff   :  { %v728_v49 = vmul.f32 %v727_v48, %v6373_v45  ;;  %v5111_v48 = vld [vmem:[#allocation8 + $0x158] ss:$0 sm:$0xff] }
 0x301   :  { %v734_v51 = vadd.f32 %v6380_v50, %v728_v49 }
 0x303   :  { %v736_v52 = vand.u32 2147483647, %v734_v51  ;;  %v735_v63 = vmax.f32 %v734_v51, 0.0 }
 0x305   :  { %v737_v53 = vsub.f32 0.0, %v736_v52 }
 0x307   :  { %v738_v54 = vmul.f32 1.442695, %v737_v53 }
 0x309   :  { %5982 = vpow2.f32 %v738_v54 }
 0x316   :  { %v5983_v55 = vpop.eup %5982 }
 0x317   :  { %v740_v56 = vadd.f32 1.0, %v5983_v55  ;;  %v743_v57 = vmul.f32 -0.5, %v5983_v55  ;;  %v746_v59 = vand.u32 2147483647, %v5983_v55 }
 0x319   :  { %5984 = vlog2.f32 %v740_v56  ;;  %v744_v58 = vadd.f32 1.0, %v743_v57  ;;  %vm747_vm8 = vcmp.lt.f32.partialorder %v746_v59, 0.0004427343 }
 0x31b   :  { %v745_v62 = vmul.f32 %v5983_v55, %v744_v58 }
 0x326   :  { %v5985_v60 = vpop.eup %5984 }
 0x327   :  { %v742_v61 = vmul.f32 0.6931472, %v5985_v60 }
 0x329   :  { %v748_v1 = vsel %vm747_vm8, %v745_v62, %v742_v61  ;;  %vm6957_vm8 = vcmask 195584  }
 0x32a   :  { %v749_v2 = vadd.f32 %v748_v1, %v735_v63 }
 0x32c   :  { %5986 = vtanh.f32 %v749_v2 }
 0x339   :  { %v5987_v4 = vpop.eup %5986 }
 0x33a   :  { %v751_v6 = vmul.f32 %v5987_v4, %v734_v51  ;;  %v5112_v51 = vld [vmem:[#allocation8 + $0x160] ss:$0 sm:$0xff] }
 0x33c   :  { %v756_v7 = vadd.f32 %v755_v5, %v751_v6 }
 0x33e   :  { %5556 = vmatpush3.msk.msra.mxu1 %vm766_vm9, %v756_v7 }
 0x33f   :  { %5558 = vmatmul.mubr.msk.f32.vlgmr.msra.gmra.mxu1 %vm762_vm10, %v99_v8  ;;  %5560 = vmatprep.subr.mxu1 %v6258_v0  ;;  %v105_v8 = vld [vmem:[#allocation8 + $0x168] sm:$0x3f] }
 0x340   :  { %5566 = vmatprep.mubr.msk.f32.mxu1 %vm6259_vm0, %v6258_v0 }
 0x3ff   :  { %v836_v15 = vpop.f32.mrf.mxu1 }
 0x400   :  { %v837_v16 = vadd.f32 %v836_v15, %v6393_v14 }
 0x401   :  { %v5559_v17 = vpop.f32.mrf.mxu1 }
 0x402   :  { %v840_v19 = vadd.f32 %v837_v16, %v6397_v18 }
 0x404   :  { %842 = vrot.lane.b32.xlu0 %v840_v19, %s6254_s0 }
 0x476   :  { %v843_v20 = vpop.permute.xlu0 %842 }
 0x477   :  { %v845_v21 = vsel %vm146_vm2, 0.0, %v843_v20 }
 0x478   :  { %v847_v3 = vsel %vm846_vm11, %v845_v21, 0.0 }
 0x479   :  { %853 = vrot.lane.b32.xlu0 %v847_v3, %s6261_s3  ;;  %859 = vrot.lane.b32.xlu1 %v847_v3, %s6262_s9  ;;  %v849_v22 = vrot.slane %v847_v3, 4 }
 0x47d   :  { %850 = vrot.lane.b32.xlu0 %v849_v22, %s6263_s10  ;;  %856 = vrot.lane.b32.xlu1 %v849_v22, %s6264_s11  ;;  %v109_v22 = vld [vmem:[#allocation8 + $0x188] sm:$0xff] }
 0x481   :  { %865 = vperm.xlu1 %5969, %v102_v23   ;;  %v6433_v23 = vld [vmem:[#allocation8 + $0x1d0] sm:$0xff] }
 0x482   :  { %5585 = vmatprep.subr.mxu0 %v6433_v23 }
 0x483   :  { %5586 = vmatpush3.msra.mxu0 %v6433_v23 }
 0x4eb   :  { %v854_v24 = vpop.permute.xlu0 %853  ;;  %v860_v25 = vpop.permute.xlu1 %859 }
 0x4ec   :  { %5561 = vmatpush3.msk.msra.mxu1 %vm766_vm9, %v860_v25 }
 0x4ed   :  { %5562 = vmatprep.subr.mxu1 %v6258_v0 }
 0x4ef   :  { %v851_v26 = vpop.permute.xlu0 %850  ;;  %v857_v27 = vpop.permute.xlu1 %856 }
 0x4f0   :  { %v862_v28 = vsel %vm766_vm9, %v854_v24, %v857_v27  ;;  %v861_v30 = vsel %vm766_vm9, %v847_v3, %v851_v26  ;;  %v117_v24 = vld [vmem:[#allocation8 + $0x1c8] sm:$0xff] }
 0x4f1   :  { %5563 = vmatpush3.msra.mxu1 %v862_v28  ;;  %5587 = vmatprep.subr.mxu0 %v117_v24 }
 0x4f2   :  { %5564 = vmatprep.subr.mxu1 %v6258_v0  ;;  %5588 = vmatpush3.msra.mxu0 %v117_v24 }
 0x4f3   :  { %5565 = vmatpush3.msra.mxu1 %v861_v30 }
 0x4f4   :  { %5567 = vmatmul.mubr.msk.f32.vlgmr.msra.gmra.mxu1 %vm868_vm12, %v101_v29  ;;  %5569 = vmatprep.subr.mxu1 %v6258_v0  ;;  %v5115_v29 = vld [vmem:[#allocation8 + $0x178] ss:$0 sm:$0xff] }
 0x4f5   :  { %5571 = vmatprep.mubr.msk.f32.mxu1 %vm6259_vm0, %v6258_v0 }
 0x4fc   :  { %v6416_v31 = vpop.permute.xlu1 %865 }
 0x5b4   :  { %v940_v32 = vpop.f32.mrf.mxu1 }
 0x5b5   :  { %v941_v33 = vadd.f32 %v940_v32, %v6416_v31  ;;  %v5116_v32 = vld [vmem:[#allocation8 + $0x180] ss:$0 sm:$0xff] }
 0x5b6   :  { %v5568_v34 = vpop.f32.mrf.mxu1 }
 0x5b7   :  { %v945_v35 = vsel %vm944_vm13, %v941_v33, 0.0 }
 0x5b8   :  { %946 = vadd.xlane.f32.xlu0 %v945_v35  ;;  %v110_v35 = vld [vmem:[#allocation8 + $0x190] sm:$0xff] }
 0x5ce   :  { %988 = vperm.xlu0 %5968, %v106_v36   ;;  %v122_v36 = vld [vmem:[#allocation8 + $0x1f0] sm:$0xff] }
 0x641   :  { %v947_v37 = vpop.xlane.xlu0 %946 }
 0x642   :  { %v949_v38 = vmul.f32 0.03125, %v947_v37  ;;  %v111_v37 = vld [vmem:[#allocation8 + $0x198] sm:$0xff] }
 0x644   :  { %v950_v39 = vsub.f32 %v941_v33, %v949_v38  ;;  %v112_v38 = vld [vmem:[#allocation8 + $0x1a0] sm:$0xff] }
 0x646   :  { %v951_v40 = vmul.f32 %v950_v39, %v950_v39 }
 0x648   :  { %v952_v41 = vsel %vm944_vm13, %v951_v40, 0.0  ;;  %v114_v40 = vld [vmem:[#allocation8 + $0x1b0] sm:$0xff] }
 0x649   :  { %953 = vadd.xlane.f32.xlu1 %v952_v41  ;;  %v6423_v11 = vpop.permute.xlu0 %988  ;;  %v6444_v41 = vld [vmem:[#allocation8 + $0x1c0] sm:$0xff] }
 0x64a   :  { %5589 = vmatprep.subr.mxu0 %v6444_v41 }
 0x64b   :  { %5590 = vmatpush3.msra.mxu0 %v6444_v41 }
 0x6d2   :  { %v954_v42 = vpop.xlane.xlu1 %953 }
 0x6d3   :  { %v955_v43 = vmul.f32 0.03125, %v954_v42  ;;  %v121_v42 = vld [vmem:[#allocation8 + $0x1e8] sm:$0xff] }
 0x6d5   :  { %v956_v44 = vadd.f32 1e-05, %v955_v43  ;;  %v6448_v43 = vld [vmem:[#allocation8 + $0x1b8] sm:$0xff] }
 0x6d6   :  { %5591 = vmatprep.subr.mxu0 %v6448_v43 }
 0x6d7   :  { %5988 = vrsqrt.f32 %v956_v44  ;;  %5592 = vmatpush3.msra.mxu0 %v6448_v43  ;;  %v120_v44 = vld [vmem:[#allocation8 + $0x1e0] sm:$0xff] }
 0x6e4   :  { %v5989_v47 = vpop.eup %5988 }
 0x6e5   :  { %v958_v49 = vmul.f32 %v5989_v47, %v950_v39  ;;  %v113_v39 = vld [vmem:[#allocation8 + $0x1a8] sm:$0xff]  ;;  %v119_v47 = vld [vmem:[#allocation8 + $0x1d8] sm:$0xff] }
 0x6e7   :  { %v963_v52 = vmul.f32 %v5111_v48, %v958_v49  ;;  %v6452_v48 = vld [vmem:[#allocation8 + $0x210] sm:$0xff] }
 0x6e8   :  { %5607 = vmatprep.subr.mxu0 %v6452_v48 }
 0x6e9   :  { %v968_v53 = vadd.f32 %v5112_v51, %v963_v52  ;;  %v125_v52 = vld [vmem:[#allocation8 + $0x208] sm:$0xff] }
 0x6eb   :  { %v970_v54 = vand.u32 2147483647, %v968_v53  ;;  %v969_v2 = vmax.f32 %v968_v53, 0.0 }
 0x6ed   :  { %v971_v55 = vsub.f32 0.0, %v970_v54  ;;  %v124_v54 = vld [vmem:[#allocation8 + $0x200] sm:$0xff] }
 0x6ef   :  { %v972_v56 = vmul.f32 1.442695, %v971_v55 }
 0x6f1   :  { %5990 = vpow2.f32 %v972_v56  ;;  %v123_v56 = vld [vmem:[#allocation8 + $0x1f8] sm:$0xff] }
 0x6fe   :  { %v5991_v57 = vpop.eup %5990 }
 0x6ff   :  { %v974_v58 = vadd.f32 1.0, %v5991_v57  ;;  %v977_v59 = vmul.f32 -0.5, %v5991_v57  ;;  %v980_v61 = vand.u32 2147483647, %v5991_v57 }
 0x701   :  { %5992 = vlog2.f32 %v974_v58  ;;  %v978_v60 = vadd.f32 1.0, %v977_v59  ;;  %vm981_vm14 = vcmp.lt.f32.partialorder %v980_v61, 0.0004427343 }
 0x703   :  { %v979_v1 = vmul.f32 %v5991_v57, %v978_v60  ;;  %v5124_v60 = vld [vmem:[#allocation8 + $0x218] ss:$0 sm:$0xff] }
 0x70e   :  { %v5993_v62 = vpop.eup %5992 }
 0x70f   :  { %v976_v63 = vmul.f32 0.6931472, %v5993_v62  ;;  %v5127_v62 = vld [vmem:[#allocation8 + $0x220] ss:$0 sm:$0xff] }
 0x711   :  { %v982_v4 = vsel %vm981_vm14, %v979_v1, %v976_v63 }
 0x712   :  { %v983_v5 = vadd.f32 %v982_v4, %v969_v2 }
 0x714   :  { %5994 = vtanh.f32 %v983_v5  ;;  %v5130_v5 = vld [vmem:[#allocation8 + $0x228] ss:$0 sm:$0xff] }
 0x721   :  { %v5995_v6 = vpop.eup %5994 }
 0x722   :  { %v985_v7 = vmul.f32 %v5995_v6, %v968_v53 }
 0x724   :  { %5570 = vmatpush3.msk.msra.mxu1 %vm995_vm15, %v985_v7 }
 0x725   :  { %5572 = vmatmul.mubr.msk.f32.vlgmr.msra.gmra.mxu1 %vm991_vm3, %v105_v8 }
 0x726   :  { %5576 = vmatprep.mubr.msk.f32.mxu1 %vm991_vm3, %v109_v22 }
 0x7e5   :  { %v1065_v12 = vpop.f32.mrf.mxu1 }
 0x7e6   :  { %v6426_v13 = vadd.f32 %v1065_v12, %v6423_v11 }
 0x7e7   :  { %v5573_v15 = vpop.f32.mrf.mxu1 }
 0x7e8   :  { %v1069_v16 = vsel %vm944_vm13, %v6426_v13, 0.0 }
 0x7e9   :  { %1070 = vadd.xlane.f32.xlu1 %v1069_v16 }
 0x872   :  { %v1071_v17 = vpop.xlane.xlu1 %1070 }
 0x873   :  { %v1072_v19 = vmul.f32 0.03125, %v1071_v17 }
 0x875   :  { %v1073_v20 = vsub.f32 %v6426_v13, %v1072_v19 }
 0x877   :  { %v1074_v21 = vmul.f32 %v1073_v20, %v1073_v20 }
 0x879   :  { %v1075_v3 = vsel %vm944_vm13, %v1074_v21, 0.0 }
 0x87a   :  { %1076 = vadd.xlane.f32.xlu1 %v1075_v3 }
 0x903   :  { %v1077_v25 = vpop.xlane.xlu1 %1076 }
 0x904   :  { %v1078_v26 = vmul.f32 0.03125, %v1077_v25 }
 0x906   :  { %v1079_v27 = vadd.f32 1e-05, %v1078_v26 }
 0x908   :  { %5996 = vrsqrt.f32 %v1079_v27 }
 0x915   :  { %v5997_v28 = vpop.eup %5996 }
 0x916   :  { %v1081_v30 = vmul.f32 %v5997_v28, %v1073_v20 }
 0x918   :  { %v1086_v33 = vmul.f32 %v5115_v29, %v1081_v30 }
 0x91a   :  { %v1091_v34 = vadd.f32 %v5116_v32, %v1086_v33 }
 0x91c   :  { %5574 = vmatprep.subr.msk.mxu1 %vm995_vm15, %v1091_v34 }
 0x91d   :  { %5575 = vmatpush3.msk.msra.mxu1 %vm995_vm15, %v1091_v34 }
 0x91e   :  { %5577 = vmatmul.mubr.msk.f32.vlgmr.msra.gmra.mxu1 %vm991_vm3, %v110_v35  ;;  %5596 = vmatprep.subr.mxu1 %v122_v36 }
 0x91f   :  { %5579 = vmatprep.mubr.msk.f32.mxu1 %vm991_vm3, %v111_v37  ;;  %5597 = vmatpush3.msra.mxu1 %v122_v36 }
 0x920   :  { %5598 = vmatprep.subr.mxu1 %v121_v42 }
 0x921   :  { %5599 = vmatpush3.msra.mxu1 %v121_v42 }
 0x922   :  { %5580 = vmatmul.mubr.msk.f32.gmra.mxu1 %vm991_vm3, %v112_v38  ;;  %5600 = vmatprep.subr.mxu1 %v120_v44 }
 0x923   :  { %5582 = vmatprep.mubr.msk.f32.mxu1 %vm991_vm3, %v113_v39  ;;  %5601 = vmatpush3.msra.mxu1 %v120_v44 }
 0x924   :  { %5602 = vmatprep.subr.mxu1 %v119_v47 }
 0x925   :  { %5603 = vmatpush3.msra.mxu1 %v119_v47 }
 0x926   :  { %5583 = vmatmul.mubr.msk.f32.gmra.mxu1 %vm991_vm3, %v114_v40 }
 0x9de   :  { %v5578_v49 = vpop.f32.mrf.mxu1 }
 0x9e0   :  { %v1179_v51 = vpop.f32.mrf.mxu1 }
 0x9e1   :  { %5593 = vmatprep.mubr.msk.f32.mxu0 %vm1212_vm6, %v1179_v51 }
 0x9e2   :  { %v5581_v53 = vpop.f32.mrf.mxu1  ;;  %5594 = vmatmul.mubr.msk.f32.vlgmr.msra.gmra.mxu0 %vm1212_vm6, %v5578_v49 }
 0x9e3   :  { %5608 = vmatpush3.msra.mxu0 %v6452_v48 }
 0x9e4   :  { %v1189_v55 = vpop.f32.mrf.mxu1  ;;  %5609 = vmatprep.subr.mxu0 %v125_v52 }
 0x9e5   :  { %5604 = vmatprep.mubr.msk.f32.mxu1 %vm1212_vm6, %v1189_v55  ;;  %5610 = vmatpush3.msra.mxu0 %v125_v52 }
 0x9e6   :  { %5605 = vmatmul.mubr.msk.f32.vlgmr.msra.gmra.mxu1 %vm1212_vm6, %v5581_v53  ;;  %v5584_v57 = vpop.f32.mrf.mxu1  ;;  %5611 = vmatprep.subr.mxu0 %v124_v54 }
 0x9e7   :  { %5612 = vmatpush3.msra.mxu0 %v124_v54 }
 0x9e8   :  { %v1199_v58 = vpop.f32.mrf.mxu1  ;;  %5613 = vmatprep.subr.mxu0 %v123_v56 }
 0x9e9   :  { %5614 = vmatpush3.msra.mxu0 %v123_v56  ;;  %5615 = vmatprep.mubr.msk.f32.mxu0 %vm1212_vm6, %v1199_v58 }
 0x9ea   :  { %5616 = vmatmul.mubr.msk.f32.vlgmr.msra.gmra.mxu0 %vm1212_vm6, %v5584_v57 }
 0xaa2   :  { %v5595_v59 = vpop.f32.mrf.mxu0 }
 0xaa3   :  { %v6484_v16 = vadd.f32 %v5595_v59, %v5124_v60 }
 0xaa4   :  { %v1285_v61 = vpop.f32.mrf.mxu0 }
 0xaa5   :  { %v6462_v63 = vadd.f32 %v5124_v60, %v1285_v61 }
 0xaa6   :  { %v5606_v1 = vpop.f32.mrf.mxu1 }
 0xaa7   :  { %v6464_v2 = vadd.f32 %v5606_v1, %v5127_v62  ;;  %5622 = vmatprep.mubr.msk.f32.mxu1 %vm1464_vm7, %v6462_v63 }
 0xaa8   :  { %v1370_v4 = vpop.f32.mrf.mxu1 }
 0xaa9   :  { %v6468_v6 = vadd.f32 %v5127_v62, %v1370_v4  ;;  %5618 = vmatprep.subr.msk.mxu1 %vm1464_vm7, %v6464_v2 }
 0xaaa   :  { %5619 = vmatpush3.xpose.msk.msra.mxu1 %vm1464_vm7, %v6464_v2  ;;  %v5617_v7 = vpop.f32.mrf.mxu0 }
 0xaab   :  { %5620 = vmatprep.subr.msk.mxu1 %vm1464_vm7, %v6468_v6  ;;  %v6476_v8 = vadd.f32 %v5617_v7, %v5130_v5 }
 0xaac   :  { %v1455_v12 = vpop.f32.mrf.mxu0 }
 0xaad   :  { %v6478_v15 = vadd.f32 %v5130_v5, %v1455_v12  ;;  %5625 = vmatprep.subr.mxu0 %v6476_v8 }
 0xaae   :  { %5621 = vmatpush3.xpose.msk.msra.mxu1 %vm1464_vm7, %v6468_v6  ;;  %5626 = vmatpush3.msra.mxu0 %v6476_v8 }
 0xaaf   :  { %5627 = vmatprep.subr.mxu0 %v6478_v15 }
 0xab0   :  { %5628 = vmatpush3.msra.mxu0 %v6478_v15 }
 0xab1   :  { %5623 = vmatmul.mubr.msk.f32.vlgmr.msra.gmra.mxu1 %vm1464_vm7, %v6484_v16 }
 0xb71   :  { %v5624_v17 = vpop.f32.mrf.mxu1 }
 0xb72   :  { %v1553_v21 = vmul.f32 0.35355338, %v5624_v17 }
 0xb73   :  { %v1543_v19 = vpop.f32.mrf.mxu1 }
 0xb74   :  { %v1552_v20 = vmul.f32 0.35355338, %v1543_v19  ;;  %v1557_v22 = vsel %vm226_vm5, %v1553_v21, -inf }
 0xb76   :  { %v1554_v3 = vsel %vm226_vm5, %v1552_v20, -inf }
 0xb77   :  { %1555 = vmax.xlane.f32.xlu1 %v1554_v3 }
 0xb7b   :  { %1558 = vmax.xlane.f32.xlu1 %v1557_v22 }
 0xb8c   :  { %1663 = vrot.lane.b32.xlu1 %v6464_v2, %s6265_s12 }
 0xb90   :  { %1661 = vrot.lane.b32.xlu1 %v6468_v6, %s6265_s12 }
 0xb94   :  { %1657 = vrot.lane.b32.xlu1 %v6462_v63, %s6265_s12 }
 0xc00   :  { %v1556_v24 = vpop.xlane.xlu1 %1555 }
 0xc01   :  { %v1560_v25 = vsub.f32 %v1552_v20, %v1556_v24 }
 0xc03   :  { %v1562_v26 = vmul.f32 1.442695, %v1560_v25 }
 0xc04   :  { %v1559_v27 = vpop.xlane.xlu1 %1558 }
 0xc05   :  { %5998 = vpow2.f32 %v1562_v26  ;;  %v1561_v28 = vsub.f32 %v1553_v21, %v1559_v27 }
 0xc07   :  { %v1564_v29 = vmul.f32 1.442695, %v1561_v28 }
 0xc08   :  { %v1664_v30 = vpop.permute.xlu1 %1663 }
 0xc09   :  { %6000 = vpow2.f32 %v1564_v29  ;;  %5632 = vmatprep.subr.msk.mxu0 %vm1464_vm7, %v1664_v30 }
 0xc0c   :  { %v1662_v36 = vpop.permute.xlu1 %1661 }
 0xc10   :  { %v1658_v37 = vpop.permute.xlu1 %1657 }
 0xc12   :  { %v5999_v32 = vpop.eup %5998 }
 0xc13   :  { %v1566_v33 = vsel %vm226_vm5, %v5999_v32, 0.0 }
 0xc14   :  { %1567 = vadd.xlane.f32.xlu1 %v1566_v33 }
 0xc16   :  { %v6001_v34 = vpop.eup %6000 }
 0xc17   :  { %v1569_v35 = vsel %vm226_vm5, %v6001_v34, 0.0 }
 0xc18   :  { %1570 = vadd.xlane.f32.xlu0 %v1569_v35 }
 0xc25   :  { %1659 = vrot.lane.b32.xlu1 %v6484_v16, %s6265_s12 }
 0xc9d   :  { %v1568_v38 = vpop.xlane.xlu1 %1567 }
 0xc9e   :  { %6002 = vrcp.f32 %v1568_v38 }
 0xca1   :  { %v1571_v39 = vpop.xlane.xlu0 %1570  ;;  %v1660_v49 = vpop.permute.xlu1 %1659 }
 0xca2   :  { %6004 = vrcp.f32 %v1571_v39 }
 0xcab   :  { %v6003_v40 = vpop.eup %6002 }
 0xcac   :  { %v1574_v42 = vmul.f32 %v6003_v40, %v5999_v32 }
 0xcae   :  { %5629 = vmatprep.mubr.msk.f32.mxu0 %vm226_vm5, %v1574_v42 }
 0xcaf   :  { %v6005_v44 = vpop.eup %6004 }
 0xcb0   :  { %v1575_v47 = vmul.f32 %v6005_v44, %v6001_v34 }
 0xcb2   :  { %5630 = vmatmul.mubr.msk.f32.vlgmr.msra.gmra.mxu0 %vm226_vm5, %v1575_v47 }
 0xcb3   :  { %5633 = vmatpush3.xpose.msk.msra.mxu0 %vm1464_vm7, %v1664_v30  ;;  %5636 = vmatprep.mubr.msk.f32.mxu0 %vm1464_vm7, %v1658_v37 }
 0xcb4   :  { %5634 = vmatprep.subr.msk.mxu0 %vm1464_vm7, %v1662_v36 }
 0xcb7   :  { %5635 = vmatpush3.xpose.msk.msra.mxu0 %vm1464_vm7, %v1662_v36 }
 0xcba   :  { %5637 = vmatmul.mubr.msk.f32.vlgmr.msra.gmra.mxu0 %vm1464_vm7, %v1660_v49 }
 0xd72   :  { %v6510_v51 = vpop.f32.mrf.mxu0 }
 0xd74   :  { %v6512_v52 = vpop.f32.mrf.mxu0 }
 0xd7a   :  { %v5638_v53 = vpop.f32.mrf.mxu0 }
 0xd7b   :  { %v1749_v54 = vmul.f32 0.35355338, %v5638_v53 }
 0xd7c   :  { %v1739_v55 = vpop.f32.mrf.mxu0 }
 0xd7d   :  { %v1748_v56 = vmul.f32 0.35355338, %v1739_v55  ;;  %v1753_v57 = vsel %vm226_vm5, %v1749_v54, -inf }
 0xd7e   :  { %1754 = vmax.xlane.f32.xlu1 %v1753_v57 }
 0xd7f   :  { %v1750_v58 = vsel %vm226_vm5, %v1748_v56, -inf }
 0xd80   :  { %1751 = vmax.xlane.f32.xlu0 %v1750_v58 }
 0xd8f   :  { %1867 = vrot.lane.b32.xlu1 %v6464_v2, %s6266_s13 }
 0xd96   :  { %1776 = vrot.lane.b32.xlu0 %v6476_v8, %s6265_s12 }
 0xd9a   :  { %1774 = vrot.lane.b32.xlu0 %v6478_v15, %s6265_s12 }
 0xe07   :  { %v1755_v59 = vpop.xlane.xlu1 %1754 }
 0xe08   :  { %v1757_v60 = vsub.f32 %v1749_v54, %v1755_v59 }
 0xe09   :  { %v1752_v61 = vpop.xlane.xlu0 %1751 }
 0xe0a   :  { %v1760_v62 = vmul.f32 1.442695, %v1757_v60  ;;  %v1756_v1 = vsub.f32 %v1748_v56, %v1752_v61 }
 0xe0b   :  { %v1868_v12 = vpop.permute.xlu1 %1867 }
 0xe0c   :  { %6006 = vpow2.f32 %v1760_v62  ;;  %v1758_v4 = vmul.f32 1.442695, %v1756_v1 }
 0xe0d   :  { %v1777_v5 = vpop.permute.xlu0 %1776 }
 0xe0e   :  { %6008 = vpow2.f32 %v1758_v4  ;;  %5639 = vmatprep.subr.mxu1 %v1777_v5 }
 0xe0f   :  { %5640 = vmatpush3.msra.mxu1 %v1777_v5 }
 0xe11   :  { %v1775_v7 = vpop.permute.xlu0 %1774 }
 0xe12   :  { %5641 = vmatprep.subr.mxu1 %v1775_v7 }
 0xe13   :  { %5642 = vmatpush3.msra.mxu1 %v1775_v7 }
 0xe14   :  { %5646 = vmatprep.subr.msk.mxu1 %vm1464_vm7, %v1868_v12 }
 0xe19   :  { %v6007_v17 = vpop.eup %6006 }
 0xe1a   :  { %v1765_v19 = vsel %vm226_vm5, %v6007_v17, 0.0 }
 0xe1b   :  { %v6009_v20 = vpop.eup %6008  ;;  %1766 = vadd.xlane.f32.xlu0 %v1765_v19 }
 0xe1c   :  { %v1762_v21 = vsel %vm226_vm5, %v6009_v20, 0.0 }
 0xe1f   :  { %1763 = vadd.xlane.f32.xlu0 %v1762_v21 }
 0xe35   :  { %1865 = vrot.lane.b32.xlu0 %v6468_v6, %s6266_s13 }
 0xe39   :  { %1861 = vrot.lane.b32.xlu0 %v6462_v63, %s6266_s13 }
 0xe3d   :  { %1863 = vrot.lane.b32.xlu0 %v6484_v16, %s6266_s13 }
 0xea4   :  { %v1767_v3 = vpop.xlane.xlu0 %1766 }
 0xea5   :  { %6010 = vrcp.f32 %v1767_v3 }
 0xea8   :  { %v1764_v22 = vpop.xlane.xlu0 %1763 }
 0xea9   :  { %6012 = vrcp.f32 %v1764_v22 }
 0xeac   :  { %v1866_v24 = vpop.permute.xlu0 %1865 }
 0xeb0   :  { %v1862_v29 = vpop.permute.xlu0 %1861 }
 0xeb2   :  { %v6011_v25 = vpop.eup %6010 }
 0xeb3   :  { %v1771_v28 = vmul.f32 %v6011_v25, %v6007_v17 }
 0xeb4   :  { %v1864_v30 = vpop.permute.xlu0 %1863 }
 0xeb6   :  { %v6013_v26 = vpop.eup %6012 }
 0xeb7   :  { %v1770_v27 = vmul.f32 %v6013_v26, %v6009_v20 }
 0xeb9   :  { %5643 = vmatprep.mubr.msk.f32.mxu1 %vm226_vm5, %v1770_v27 }
 0xeba   :  { %5644 = vmatmul.mubr.msk.f32.vlgmr.msra.gmra.mxu1 %vm226_vm5, %v1771_v28 }
 0xebb   :  { %5647 = vmatpush3.xpose.msk.msra.mxu1 %vm1464_vm7, %v1868_v12  ;;  %5650 = vmatprep.mubr.msk.f32.mxu1 %vm1464_vm7, %v1862_v29 }
 0xebc   :  { %5648 = vmatprep.subr.msk.mxu1 %vm1464_vm7, %v1866_v24 }
 0xebf   :  { %5649 = vmatpush3.xpose.msk.msra.mxu1 %vm1464_vm7, %v1866_v24 }
 0xec2   :  { %5651 = vmatmul.mubr.msk.f32.vlgmr.msra.gmra.mxu1 %vm1464_vm7, %v1864_v30 }
 0xf7a   :  { %v6538_v32 = vpop.f32.mrf.mxu1 }
 0xf7c   :  { %v6540_v33 = vpop.f32.mrf.mxu1 }
 0xf82   :  { %v5652_v34 = vpop.f32.mrf.mxu1 }
 0xf83   :  { %v1953_v35 = vmul.f32 0.35355338, %v5652_v34 }
 0xf84   :  { %v1943_v36 = vpop.f32.mrf.mxu1 }
 0xf85   :  { %v1952_v37 = vmul.f32 0.35355338, %v1943_v36  ;;  %v1957_v38 = vsel %vm226_vm5, %v1953_v35, -inf }
 0xf86   :  { %1958 = vmax.xlane.f32.xlu1 %v1957_v38 }
 0xf87   :  { %v1954_v39 = vsel %vm226_vm5, %v1952_v37, -inf }
 0xf88   :  { %1955 = vmax.xlane.f32.xlu0 %v1954_v39 }
 0xf97   :  { %1976 = vrot.lane.b32.xlu1 %v6478_v15, %s6266_s13 }
 0xf9b   :  { %2069 = vrot.lane.b32.xlu1 %v6464_v2, %s6267_s14 }
 0xf9f   :  { %2063 = vrot.lane.b32.xlu1 %v6462_v63, %s6267_s14 }
0x100f   :  { %v1959_v40 = vpop.xlane.xlu1 %1958 }
0x1010   :  { %v1961_v42 = vsub.f32 %v1953_v35, %v1959_v40 }
0x1011   :  { %v1956_v44 = vpop.xlane.xlu0 %1955 }
0x1012   :  { %v1964_v47 = vmul.f32 1.442695, %v1961_v42  ;;  %v1960_v49 = vsub.f32 %v1952_v37, %v1956_v44  ;;  %v132_v44 = vld [vmem:[#allocation8 + $0x240] sm:$0xff] }
0x1013   :  { %v1977_v58 = vpop.permute.xlu1 %1976 }
0x1014   :  { %6014 = vpow2.f32 %v1964_v47  ;;  %v1962_v53 = vmul.f32 1.442695, %v1960_v49  ;;  %v131_v47 = vld [vmem:[#allocation8 + $0x238] sm:$0xff]  ;;  %v130_v49 = vld [vmem:[#allocation8 + $0x230] sm:$0xff] }
0x1016   :  { %6016 = vpow2.f32 %v1962_v53 }
0x1017   :  { %v2070_v60 = vpop.permute.xlu1 %2069 }
0x1021   :  { %v6015_v54 = vpop.eup %6014 }
0x1022   :  { %v1969_v55 = vsel %vm226_vm5, %v6015_v54, 0.0 }
0x1023   :  { %v6017_v56 = vpop.eup %6016  ;;  %1970 = vadd.xlane.f32.xlu0 %v1969_v55  ;;  %v136_v55 = vld [vmem:[#allocation8 + $0x260] sm:$0x3f] }
0x1024   :  { %v1966_v57 = vsel %vm226_vm5, %v6017_v56, 0.0 }
0x1027   :  { %1967 = vadd.xlane.f32.xlu0 %v1966_v57 }
0x103d   :  { %1978 = vrot.lane.b32.xlu0 %v6476_v8, %s6266_s13 }
0x1041   :  { %2067 = vrot.lane.b32.xlu0 %v6468_v6, %s6267_s14 }
0x1045   :  { %2065 = vrot.lane.b32.xlu0 %v6484_v16, %s6267_s14  ;;  %v2064_v16 = vpop.permute.xlu1 %2063 }
0x10ac   :  { %v1971_v63 = vpop.xlane.xlu0 %1970 }
0x10ad   :  { %6018 = vrcp.f32 %v1971_v63 }
0x10b0   :  { %v1968_v2 = vpop.xlane.xlu0 %1967 }
0x10b1   :  { %6020 = vrcp.f32 %v1968_v2 }
0x10b4   :  { %v1979_v59 = vpop.permute.xlu0 %1978 }
0x10b5   :  { %5653 = vmatprep.subr.mxu0 %v1979_v59 }
0x10b6   :  { %5654 = vmatpush3.msra.mxu0 %v1979_v59 }
0x10b7   :  { %5655 = vmatprep.subr.mxu0 %v1977_v58 }
0x10b8   :  { %5656 = vmatpush3.msra.mxu0 %v1977_v58  ;;  %v2068_v4 = vpop.permute.xlu0 %2067 }
0x10b9   :  { %5660 = vmatprep.subr.msk.mxu0 %vm1464_vm7, %v2070_v60 }
0x10ba   :  { %v6019_v61 = vpop.eup %6018 }
0x10bb   :  { %v1975_v6 = vmul.f32 %v6019_v61, %v6015_v54 }
0x10bc   :  { %v2066_v5 = vpop.permute.xlu0 %2065 }
0x10be   :  { %v6021_v62 = vpop.eup %6020 }
0x10bf   :  { %v1974_v1 = vmul.f32 %v6021_v62, %v6017_v56 }
0x10c1   :  { %5657 = vmatprep.mubr.msk.f32.mxu0 %vm226_vm5, %v1974_v1 }
0x10c2   :  { %5658 = vmatmul.mubr.msk.f32.vlgmr.msra.gmra.mxu0 %vm226_vm5, %v1975_v6 }
0x10c3   :  { %5661 = vmatpush3.xpose.msk.msra.mxu0 %vm1464_vm7, %v2070_v60  ;;  %5664 = vmatprep.mubr.msk.f32.mxu0 %vm1464_vm7, %v2064_v16 }
0x10c4   :  { %5662 = vmatprep.subr.msk.mxu0 %vm1464_vm7, %v2068_v4 }
0x10c7   :  { %5663 = vmatpush3.xpose.msk.msra.mxu0 %vm1464_vm7, %v2068_v4 }
0x10c8   :  { %5685 = vmatprep.subr.mxu0 %v6258_v0 }
0x10ca   :  { %5665 = vmatmul.mubr.msk.f32.vlgmr.msra.gmra.mxu0 %vm1464_vm7, %v2066_v5 }
0x10cb   :  { %5689 = vmatprep.mubr.msk.f32.mxu0 %vm6259_vm0, %v6258_v0 }
0x1182   :  { %v5659_v7 = vpop.f32.mrf.mxu0 }
0x1184   :  { %v2054_v12 = vpop.f32.mrf.mxu0 }
0x118a   :  { %v5666_v17 = vpop.f32.mrf.mxu0 }
0x118b   :  { %v2155_v19 = vmul.f32 0.35355338, %v5666_v17  ;;  %v2689_v17 = vld [vmem:[#allocation4 + $0x2] sm:$0x3] }
0x118c   :  { %v2145_v20 = vpop.f32.mrf.mxu0 }
0x118d   :  { %v2154_v21 = vmul.f32 0.35355338, %v2145_v20  ;;  %v2159_v3 = vsel %vm226_vm5, %v2155_v19, -inf  ;;  %v6107_v20 = vld [vmem:[#allocation8 + $0x18] sm:$0xff] }
0x118e   :  { %2160 = vmax.xlane.f32.xlu0 %v2159_v3 }
0x118f   :  { %v2156_v22 = vsel %vm226_vm5, %v2154_v21, -inf }
0x1190   :  { %2157 = vmax.xlane.f32.xlu1 %v2156_v22 }
0x1217   :  { %v2161_v24 = vpop.xlane.xlu0 %2160 }
0x1218   :  { %v2163_v25 = vsub.f32 %v2155_v19, %v2161_v24  ;;  %v6106_v19 = vld [vmem:[#allocation8] sm:$0xff] }
0x1219   :  { %v2158_v26 = vpop.xlane.xlu1 %2157 }
0x121a   :  { %v2166_v27 = vmul.f32 1.442695, %v2163_v25  ;;  %v2162_v28 = vsub.f32 %v2154_v21, %v2158_v26  ;;  %v6108_v21 = vld [vmem:[#allocation8 + $0x10] sm:$0xff] }
0x121c   :  { %6022 = vpow2.f32 %v2166_v27  ;;  %v2164_v29 = vmul.f32 1.442695, %v2162_v28 }
0x121e   :  { %6024 = vpow2.f32 %v2164_v29 }
0x1229   :  { %v6023_v30 = vpop.eup %6022 }
0x122a   :  { %v2171_v34 = vsel %vm226_vm5, %v6023_v30, 0.0 }
0x122b   :  { %v6025_v35 = vpop.eup %6024  ;;  %2172 = vadd.xlane.f32.xlu1 %v2171_v34 }
0x122c   :  { %v2168_v36 = vsel %vm226_vm5, %v6025_v35, 0.0 }
0x122d   :  { %2169 = vadd.xlane.f32.xlu0 %v2168_v36 }
0x123c   :  { %2178 = vrot.lane.b32.xlu1 %v6478_v15, %s6267_s14 }
0x1240   :  { %2267 = vrot.lane.b32.xlu1 %v6540_v33, %s6257_s6 }
0x1243   :  { %2180 = vrot.lane.b32.xlu0 %v6476_v8, %s6267_s14 }
0x1244   :  { %2275 = vrot.lane.b32.xlu1 %v2054_v12, %s6268_s15  ;;  %v135_v12 = vld [vmem:[#allocation8 + $0x258] sm:$0x3f] }
0x1247   :  { %2269 = vrot.lane.b32.xlu0 %v6538_v32, %s6257_s6  ;;  %v133_v32 = vld [vmem:[#allocation8 + $0x248] sm:$0xff] }
0x124b   :  { %2277 = vrot.lane.b32.xlu0 %v5659_v7, %s6268_s15 }
0x12b4   :  { %v2173_v37 = vpop.xlane.xlu1 %2172 }
0x12b5   :  { %6026 = vrcp.f32 %v2173_v37 }
0x12b6   :  { %v2170_v38 = vpop.xlane.xlu0 %2169 }
0x12b7   :  { %6028 = vrcp.f32 %v2170_v38  ;;  %v6110_v38 = vld [vmem:[#allocation8 + $0x40] sm:$0xff] }
0x12b8   :  { %v2179_v15 = vpop.permute.xlu1 %2178 }
0x12ba   :  { %v2181_v39 = vpop.permute.xlu0 %2180 }
0x12bb   :  { %5667 = vmatprep.subr.mxu1 %v2181_v39 }
0x12bc   :  { %5668 = vmatpush3.msra.mxu1 %v2181_v39  ;;  %v2268_v57 = vpop.permute.xlu1 %2267 }
0x12bd   :  { %5669 = vmatprep.subr.mxu1 %v2179_v15  ;;  %v2289_v58 = vsel %vm1464_vm7, %v6512_v52, %v2268_v57  ;;  %v6122_v57 = vld [vmem:[#allocation8 + $0xc0] sm:$0xff] }
0x12be   :  { %5670 = vmatpush3.msra.mxu1 %v2179_v15  ;;  %v2270_v56 = vpop.permute.xlu0 %2269 }
0x12bf   :  { %5674 = vmatprep.subr.mxu1 %v133_v32  ;;  %v2290_v60 = vsel %vm1464_vm7, %v6510_v51, %v2270_v56  ;;  %v5157_v51 = vld [vmem:[#allocation8 + $0x250] ss:$0 sm:$0xff]  ;;  %v6121_v56 = vld [vmem:[#allocation8 + $0xc8] sm:$0xff] }
0x12c0   :  { %v2276_v2 = vpop.permute.xlu1 %2275 }
0x12c1   :  { %v2291_v61 = vsel %vm226_vm5, %v2289_v58, %v2276_v2  ;;  %v6124_v2 = vld [vmem:[#allocation8 + $0xb0] sm:$0xff]  ;;  %v6125_v58 = vld [vmem:[#allocation8 + $0xa8] sm:$0xff] }
0x12c2   :  { %v6027_v33 = vpop.eup %6026  ;;  %v2278_v63 = vpop.permute.xlu0 %2277 }
0x12c3   :  { %v2177_v42 = vmul.f32 %v6027_v33, %v6023_v30  ;;  %v2292_v1 = vsel %vm226_vm5, %v2290_v60, %v2278_v63  ;;  %v6111_v33 = vld [vmem:[#allocation8 + $0x118] sm:$0xff]  ;;  %v3065_v60 = vstv %s5167_s17 }
0x12c4   :  { %v6029_v8 = vpop.eup %6028  ;;  %v6123_v63 = vld [vmem:[#allocation8 + $0xb8] sm:$0xff]  ;;  %vm3066_vm14 = vcmp.eq.s32.totalorder %v6325_v10, %v3065_v60 }
0x12c5   :  { %v2176_v40 = vmul.f32 %v6029_v8, %v6025_v35  ;;  %v6109_v35 = vld [vmem:[#allocation8 + $0x48] sm:$0xff] }
0x12c7   :  { %5671 = vmatprep.mubr.msk.f32.mxu1 %vm226_vm5, %v2176_v40  ;;  %v6112_v40 = vld [vmem:[#allocation8 + $0x110] sm:$0xff] }
0x12c8   :  { %5672 = vmatmul.mubr.msk.f32.vlgmr.msra.gmra.mxu1 %vm226_vm5, %v2177_v42  ;;  %v6113_v42 = vld [vmem:[#allocation8 + $0x108] sm:$0xff] }
0x12c9   :  { %5675 = vmatpush3.msra.mxu1 %v133_v32  ;;  %v6114_v32 = vld [vmem:[#allocation8 + $0x100] sm:$0xff] }
0x12ca   :  { %5676 = vmatprep.subr.mxu1 %v132_v44 }
0x12cb   :  { %5677 = vmatpush3.msra.mxu1 %v132_v44  ;;  %v6115_v44 = vld [vmem:[#allocation8 + $0xf8] sm:$0xff] }
0x12cc   :  { %5678 = vmatprep.subr.mxu1 %v131_v47 }
0x12cd   :  { %5679 = vmatpush3.msra.mxu1 %v131_v47  ;;  %v6116_v47 = vld [vmem:[#allocation8 + $0xf0] sm:$0xff] }
0x12ce   :  { %5680 = vmatprep.subr.mxu1 %v130_v49 }
0x12cf   :  { %5681 = vmatpush3.msra.mxu1 %v130_v49  ;;  %v6117_v49 = vld [vmem:[#allocation8 + $0xe8] sm:$0xff] }
0x12d0   :  { %5703 = vmatprep.subr.mxu1 %v6258_v0 }
0x1388   :  { %v5673_v53 = vpop.f32.mrf.mxu1 }
0x1389   :  { %2285 = vrot.lane.b32.xlu0 %v5673_v53, %s6269_s16  ;;  %v6118_v53 = vld [vmem:[#allocation8 + $0xe0] sm:$0xff] }
0x138a   :  { %v2256_v54 = vpop.f32.mrf.mxu1 }
0x138b   :  { %2283 = vrot.lane.b32.xlu1 %v2256_v54, %s6269_s16  ;;  %v6119_v54 = vld [vmem:[#allocation8 + $0xd8] sm:$0xff] }
0x138f   :  { %2383 = vperm.xlu1 %5969, %v136_v55   ;;  %v6120_v55 = vld [vmem:[#allocation8 + $0xd0] sm:$0xff] }
0x13fb   :  { %v2286_v59 = vpop.permute.xlu0 %2285 }
0x13fc   :  { %v2295_v16 = vsel %vm6957_vm8, %v2292_v1, %v2286_v59  ;;  %v6126_v59 = vld [vmem:[#allocation8 + $0xa0] sm:$0xff] }
0x13fd   :  { %v2284_v62 = vpop.permute.xlu1 %2283 }
0x13fe   :  { %v2294_v6 = vsel %vm6957_vm8, %v2291_v61, %v2284_v62  ;;  %vm2489_vm8 = vcmask 244736  }
0x13ff   :  { %5682 = vmatprep.mubr.msk.f32.mxu1 %vm1212_vm6, %v2294_v6  ;;  %v6127_v6 = vld [vmem:[#allocation8 + $0x50] sm:$0xff] }
0x1400   :  { %5683 = vmatmul.mubr.msk.f32.vlgmr.msra.gmra.mxu1 %vm1212_vm6, %v2295_v16  ;;  %v3067_v16 = vsel %vm3066_vm14, %v6127_v6, 0.0 }
0x1401   :  { %5704 = vmatpush3.msk.msra.mxu1 %vm766_vm9, %v6397_v18  ;;  %5705 = vmatprep.mubr.msk.f32.mxu1 %vm6259_vm0, %v6258_v0  ;;  %v141_v18 = vld [vmem:[#allocation8 + $0x288] sm:$0x3f] }
0x1402   :  { %5708 = vmatprep.subr.mxu1 %v6258_v0 }
0x1404   :  { %5706 = vmatmul.mubr.msk.f32.vlgmr.msra.gmra.mxu1 %vm762_vm10, %v141_v18  ;;  %v6128_v18 = vld [vmem:[#allocation8 + $0x28] sm:$0xff] }
0x1405   :  { %5709 = vmatpush3.msk.msra.mxu1 %vm150_vm1, %v2689_v17  ;;  %5710 = vmatprep.mubr.msk.f32.mxu1 %vm6259_vm0, %v6258_v0  ;;  %v6129_v17 = vld [vmem:[#allocation8 + $0x20] sm:$0xff] }
0x1406   :  { %5720 = vmatprep.subr.mxu1 %v6258_v0 }
0x1408   :  { %5711 = vmatmul.mubr.msk.f32.vlgmr.msra.gmra.mxu1 %vm146_vm2, %v6106_v19 }
0x1409   :  { %5721 = vmatpush3.msra.mxu1 %v6107_v20  ;;  %5724 = vmatprep.mubr.msk.f32.mxu1 %vm6259_vm0, %v6258_v0  ;;  %v6130_v20 = vld [vmem:[#allocation8 + $0x38] sm:$0xff] }
0x140a   :  { %5722 = vmatprep.subr.mxu1 %v6258_v0  ;;  %v6618_v3 = vpop.permute.xlu1 %2383 }
0x140b   :  { %5723 = vmatpush3.msra.mxu1 %v6108_v21 }
0x140c   :  { %5734 = vmatprep.subr.mxu1 %v6258_v0 }
0x14c0   :  { %v5684_v52 = vpop.f32.mrf.mxu1 }
0x14c1   :  { %v2378_v4 = vadd.f32 %v5684_v52, %v5157_v51 }
0x14c2   :  { %v2372_v5 = vpop.f32.mrf.mxu1 }
0x14c3   :  { %v2373_v7 = vadd.f32 %v5157_v51, %v2372_v5  ;;  %5686 = vmatpush3.msra.mxu0 %v2378_v4  ;;  %v137_v5 = vld [vmem:[#allocation8 + $0x268] sm:$0x3f] }
0x14c4   :  { %5687 = vmatprep.subr.mxu0 %v6258_v0  ;;  %v6623_v27 = vpop.f32.mrf.mxu1 }
0x14c5   :  { %5688 = vmatpush3.msra.mxu0 %v2373_v7 }
0x14c6   :  { %5690 = vmatmul.mubr.msk.f32.vlgmr.msra.gmra.mxu0 %vm226_vm5, %v135_v12  ;;  %5692 = vmatprep.subr.mxu0 %v6258_v0  ;;  %v5707_v28 = vpop.f32.mrf.mxu1 }
0x14c7   :  { %5700 = vmatprep.mubr.msk.f32.mxu0 %vm6259_vm0, %v6258_v0 }
0x14c8   :  { %v6625_v29 = vpop.f32.mrf.mxu1 }
0x14c9   :  { %v2986_v30 = vrot.slane %v6625_v29, 6  ;;  %5725 = vmatmul.mubr.msk.f32.vlgmr.msra.gmra.mxu1 %vm226_vm5, %v6625_v29  ;;  %v2767_v12 = vrot.slane %v6625_v29, 2  ;;  %v2912_v21 = vrot.slane %v6625_v29, 4  ;;  %v6134_v29 = vld [vmem:[#allocation8 + $0x80] sm:$0xff] }
0x14ca   :  { %5735 = vmatpush3.msra.mxu1 %v6109_v35  ;;  %v5712_v36 = vpop.f32.mrf.mxu1  ;;  %5738 = vmatprep.mubr.msk.f32.mxu1 %vm6259_vm0, %v6258_v0  ;;  %v6136_v35 = vld [vmem:[#allocation8 + $0x70] sm:$0xff] }
0x14cb   :  { %5736 = vmatprep.subr.mxu1 %v6258_v0  ;;  %v6137_v36 = vld [vmem:[#allocation8 + $0x68] sm:$0xff] }
0x14cc   :  { %5737 = vmatpush3.msra.mxu1 %v6110_v38  ;;  %v6139_v38 = vld [vmem:[#allocation8 + $0x58] sm:$0xff] }
0x14cd   :  { %5739 = vmatmul.mubr.msk.f32.vlgmr.msra.gmra.mxu1 %vm226_vm5, %v2986_v30  ;;  %5760 = vmatprep.subr.mxu1 %v6258_v0  ;;  %v6135_v30 = vld [vmem:[#allocation8 + $0x78] sm:$0xff] }
0x14ce   :  { %5792 = vmatprep.mubr.msk.f32.mxu1 %vm6259_vm0, %v6258_v0  ;;  %5761 = vmatpush3.msra.mxu1 %v6111_v33 }
0x14cf   :  { %5762 = vmatprep.subr.mxu1 %v6258_v0 }
0x14d0   :  { %5763 = vmatpush3.msra.mxu1 %v6112_v40 }
0x14d1   :  { %5764 = vmatprep.subr.mxu1 %v6258_v0 }
0x14d2   :  { %5765 = vmatpush3.msra.mxu1 %v6113_v42 }
0x14d3   :  { %5766 = vmatprep.subr.mxu1 %v6258_v0 }
0x14d4   :  { %5767 = vmatpush3.msra.mxu1 %v6114_v32 }
0x14d5   :  { %5768 = vmatprep.subr.mxu1 %v6258_v0 }
0x14d6   :  { %5769 = vmatpush3.msra.mxu1 %v6115_v44 }
0x14d7   :  { %5770 = vmatprep.subr.mxu1 %v6258_v0 }
0x14d8   :  { %5771 = vmatpush3.msra.mxu1 %v6116_v47 }
0x14d9   :  { %5772 = vmatprep.subr.mxu1 %v6258_v0 }
0x14da   :  { %5773 = vmatpush3.msra.mxu1 %v6117_v49 }
0x14db   :  { %5774 = vmatprep.subr.mxu1 %v6258_v0 }
0x14dc   :  { %5775 = vmatpush3.msra.mxu1 %v6118_v53 }
0x14dd   :  { %5776 = vmatprep.subr.mxu1 %v6258_v0 }
0x14de   :  { %5777 = vmatpush3.msra.mxu1 %v6119_v54 }
0x14df   :  { %5778 = vmatprep.subr.mxu1 %v6258_v0 }
0x14e0   :  { %5779 = vmatpush3.msra.mxu1 %v6120_v55 }
0x14e1   :  { %5780 = vmatprep.subr.mxu1 %v6258_v0 }
0x14e2   :  { %5781 = vmatpush3.msra.mxu1 %v6121_v56  ;;  %v6140_v56 = vld [vmem:[#allocation8 + $0x98] sm:$0x1] }
0x14e3   :  { %5782 = vmatprep.subr.mxu1 %v6258_v0 }
0x14e4   :  { %5783 = vmatpush3.msra.mxu1 %v6122_v57 }
0x14e5   :  { %5784 = vmatprep.subr.mxu1 %v6258_v0 }
0x14e6   :  { %5785 = vmatpush3.msra.mxu1 %v6123_v63 }
0x14e7   :  { %5786 = vmatprep.subr.mxu1 %v6258_v0 }
0x14e8   :  { %5787 = vmatpush3.msra.mxu1 %v6124_v2 }
0x14e9   :  { %5788 = vmatprep.subr.mxu1 %v6258_v0 }
0x14ea   :  { %5789 = vmatpush3.msra.mxu1 %v6125_v58 }
0x14eb   :  { %5790 = vmatprep.subr.mxu1 %v6258_v0 }
0x14ec   :  { %5791 = vmatpush3.msra.mxu1 %v6126_v59 }
0x14ed   :  { %5825 = vmatprep.subr.mxu1 %v6433_v23  ;;  %v3068_v23 = vsel %vm534_vm4, %v3067_v16, 0.0 }
0x14ee   :  { %v3069_v7 = vrot.slane %v3068_v23, 4 }
0x14f0   :  { %v3070_v19 = vadd.f32 %v3069_v7, %v3068_v23 }
0x1586   :  { %v2455_v22 = vpop.f32.mrf.mxu0 }
0x1587   :  { %v2456_v24 = vadd.f32 %v2455_v22, %v6618_v3  ;;  %v6131_v22 = vld [vmem:[#allocation8 + $0x30] sm:$0xff] }
0x1588   :  { %v5691_v25 = vpop.f32.mrf.mxu0 }
0x1589   :  { %v2459_v26 = vadd.f32 %v2456_v24, %v6426_v13  ;;  %v3071_v24 = vrot.slane %v3070_v19, 2  ;;  %v6132_v25 = vld [vmem:[#allocation8 + $0x90] sm:$0xff] }
0x158b   :  { %2461 = vrot.lane.b32.xlu0 %v2459_v26, %s6254_s0  ;;  %v6133_v26 = vld [vmem:[#allocation8 + $0x88] sm:$0xff]  ;;  %v3072_v28 = vadd.f32 %v3071_v24, %v3070_v19  ;;  %v6143_v19 = vld [vmem:[#allocation8 + $0x120] sm:$0x1] }
0x15fd   :  { %v2462_v34 = vpop.permute.xlu0 %2461 }
0x15fe   :  { %v2464_v13 = vsel %vm146_vm2, 0.0, %v2462_v34  ;;  %v3073_v34 = vrot.slane %v3072_v28, 1 }
0x15ff   :  { %v6635_v37 = vsel %vm846_vm11, %v2464_v13, 0.0 }
0x1600   :  { %2479 = vrot.lane.b32.xlu1 %v6635_v37, %s6262_s9  ;;  %v2471_v39 = vrot.slane %v6635_v37, 4  ;;  %v2475_v15 = vrot.slane %v6635_v37, 6  ;;  %v2467_v8 = vrot.slane %v6635_v37, 2  ;;  %v3074_v13 = vadd.f32 %v3073_v34, %v3072_v28 }
0x1602   :  { %2472 = vrot.lane.b32.xlu0 %v2471_v39, %s6261_s3  ;;  %v2908_v39 = vpop.f32.mrf.mxu1 }
0x1604   :  { %2476 = vrot.lane.b32.xlu1 %v2475_v15, %s6264_s11  ;;  %v5726_v15 = vpop.f32.mrf.mxu1 }
0x1606   :  { %2468 = vrot.lane.b32.xlu0 %v2467_v8, %s6263_s10  ;;  %v6702_v33 = vpop.f32.mrf.mxu1 }
0x1608   :  { %v5740_v8 = vpop.f32.mrf.mxu1 }
0x1672   :  { %v2480_v61 = vpop.permute.xlu1 %2479 }
0x1673   :  { %5693 = vmatpush3.msk.msra.mxu0 %vm995_vm15, %v2480_v61 }
0x1674   :  { %v2473_v62 = vpop.permute.xlu0 %2472  ;;  %5694 = vmatprep.subr.mxu0 %v6258_v0 }
0x1676   :  { %v2477_v1 = vpop.permute.xlu1 %2476 }
0x1677   :  { %v2483_v51 = vsel %vm150_vm1, %v2473_v62, %v2477_v1 }
0x1678   :  { %5695 = vmatpush3.msra.mxu0 %v2483_v51  ;;  %v2469_v52 = vpop.permute.xlu0 %2468 }
0x1679   :  { %v2482_v4 = vsel %vm766_vm9, %v2469_v52, %v2473_v62  ;;  %5696 = vmatprep.subr.mxu0 %v6258_v0  ;;  %v2481_v10 = vsel %vm995_vm15, %v6635_v37, %v2469_v52  ;;  %v6138_v37 = vld [vmem:[#allocation8 + $0x60] sm:$0xff] }
0x167a   :  { %5697 = vmatpush3.msra.mxu0 %v2482_v4 }
0x167b   :  { %5698 = vmatprep.subr.mxu0 %v6258_v0 }
0x167c   :  { %5699 = vmatpush3.msra.mxu0 %v2481_v10 }
0x167d   :  { %5701 = vmatmul.mubr.msk.f32.vlgmr.msra.gmra.mxu0 %vm2489_vm8, %v137_v5  ;;  %5713 = vmatprep.subr.mxu0 %v6258_v0 }
0x167e   :  { %5714 = vmatpush3.msra.mxu0 %v6128_v18  ;;  %5717 = vmatprep.mubr.msk.f32.mxu0 %vm6259_vm0, %v6258_v0  ;;  %v6142_v18 = vld [vmem:[#allocation8 + $0x1c8] sm:$0xff] }
0x167f   :  { %5715 = vmatprep.subr.mxu0 %v6258_v0 }
0x1680   :  { %5716 = vmatpush3.msra.mxu0 %v6129_v17 }
0x1681   :  { %5718 = vmatmul.mubr.msk.f32.vlgmr.msra.gmra.mxu0 %vm226_vm5, %v2767_v12  ;;  %5727 = vmatprep.subr.mxu0 %v6258_v0  ;;  %v6141_v12 = vld [vmem:[#allocation8 + $0x1d0] sm:$0xff] }
0x1682   :  { %5728 = vmatpush3.msra.mxu0 %v6130_v20  ;;  %5731 = vmatprep.mubr.msk.f32.mxu0 %vm6259_vm0, %v6258_v0 }
0x1683   :  { %5729 = vmatprep.subr.mxu0 %v6258_v0 }
0x1684   :  { %5730 = vmatpush3.msra.mxu0 %v6131_v22 }
0x1685   :  { %5732 = vmatmul.mubr.msk.f32.vlgmr.msra.gmra.mxu0 %vm226_vm5, %v2912_v21  ;;  %5741 = vmatprep.subr.mxu0 %v6258_v0 }
0x1686   :  { %5742 = vmatpush3.msra.mxu0 %v6132_v25  ;;  %5757 = vmatprep.mubr.msk.f32.mxu0 %vm6259_vm0, %v6258_v0 }
0x1687   :  { %5743 = vmatprep.subr.mxu0 %v6258_v0 }
0x1688   :  { %5744 = vmatpush3.msra.mxu0 %v6133_v26 }
0x1689   :  { %5745 = vmatprep.subr.mxu0 %v6258_v0 }
0x168a   :  { %5746 = vmatpush3.msra.mxu0 %v6134_v29 }
0x168b   :  { %5747 = vmatprep.subr.mxu0 %v6258_v0 }
0x168c   :  { %5748 = vmatpush3.msra.mxu0 %v6135_v30 }
0x168d   :  { %5749 = vmatprep.subr.mxu0 %v6258_v0 }
0x168e   :  { %5750 = vmatpush3.msra.mxu0 %v6136_v35 }
0x168f   :  { %5751 = vmatprep.subr.mxu0 %v6258_v0 }
0x1690   :  { %5752 = vmatpush3.msra.mxu0 %v6137_v36 }
0x1691   :  { %5753 = vmatprep.subr.mxu0 %v6258_v0 }
0x1692   :  { %5754 = vmatpush3.msra.mxu0 %v6138_v37 }
0x1693   :  { %5755 = vmatprep.subr.mxu0 %v6258_v0 }
0x1694   :  { %5756 = vmatpush3.msra.mxu0 %v6139_v38 }
0x1695   :  { %5758 = vmatmul.mubr.msk.f32.vlgmr.msra.gmra.mxu0 %vm534_vm4, %v3074_v13  ;;  %5795 = vmatprep.subr.mxu0 %v6258_v0 }
0x1696   :  { %5797 = vmatprep.mubr.msk.f32.mxu0 %vm6259_vm0, %v6258_v0 }
0x173d   :  { %v6704_v40 = vpop.f32.mrf.mxu0 }
0x173f   :  { %v5702_v42 = vpop.f32.mrf.mxu0 }
0x1741   :  { %v2836_v32 = vpop.f32.mrf.mxu0 }
0x1742   :  { %v2909_v47 = vadd.f32 %v2908_v39, %v2836_v32 }
0x1743   :  { %v5719_v44 = vpop.f32.mrf.mxu0 }
0x1745   :  { %v2981_v49 = vpop.f32.mrf.mxu0 }
0x1746   :  { %v6706_v53 = vadd.f32 %v2981_v49, %v2909_v47 }
0x1747   :  { %v5733_v54 = vpop.f32.mrf.mxu0 }
0x1755   :  { %v3144_v55 = vpop.f32.mrf.mxu0 }
0x1756   :  { %v3145_v57 = vadd.f32 %v6140_v56, %v3144_v55 }
0x1757   :  { %v5759_v63 = vpop.f32.mrf.mxu0 }
0x1758   :  { %v3149_v2 = vand.u32 2147483647, %v3145_v57  ;;  %v3148_v4 = vmax.f32 %v3145_v57, 0.0 }
0x175a   :  { %v3150_v58 = vsub.f32 0.0, %v3149_v2 }
0x175c   :  { %v3151_v59 = vmul.f32 1.442695, %v3150_v58 }
0x175e   :  { %6030 = vpow2.f32 %v3151_v59 }
0x176b   :  { %v6031_v60 = vpop.eup %6030 }
0x176c   :  { %v3153_v61 = vadd.f32 1.0, %v6031_v60  ;;  %v3156_v62 = vmul.f32 -0.5, %v6031_v60  ;;  %v3159_v6 = vand.u32 2147483647, %v6031_v60 }
0x176e   :  { %6032 = vlog2.f32 %v3153_v61  ;;  %v3157_v1 = vadd.f32 1.0, %v3156_v62  ;;  %vm3160_vm4 = vcmp.lt.f32.partialorder %v3159_v6, 0.0004427343  ;;  %v3059_v6 = vadd.f32 %v6702_v33, %v6706_v53 }
0x1770   :  { %v3158_v52 = vmul.f32 %v6031_v60, %v3157_v1  ;;  %v6144_v1 = vld [vmem:[#allocation8 + $0x138] sm:$0xf] }
0x177b   :  { %v6033_v16 = vpop.eup %6032 }
0x177c   :  { %v3155_v51 = vmul.f32 0.6931472, %v6033_v16  ;;  %v2691_v16 = vld [vmem:[#allocation6 + $0x2] sm:$0x3] }
0x177e   :  { %v3161_v23 = vsel %vm3160_vm4, %v3158_v52, %v3155_v51  ;;  %v3060_v51 = vadd.f32 %v3059_v6, %v6389_v9  ;;  %v3062_v52 = vrot.slane %v2691_v16, 6 }
0x177f   :  { %v3162_v5 = vadd.f32 %v3161_v23, %v3148_v4 }
0x1781   :  { %6034 = vtanh.f32 %v3162_v5  ;;  %v6727_v5 = vsel %vm150_vm1, %v3060_v51, %v3062_v52 }
0x178e   :  { %v6035_v10 = vpop.eup %6034 }
0x178f   :  { %v3164_v7 = vmul.f32 %v6035_v10, %v3145_v57 }
0x1791   :  { %5793 = vmatmul.mubr.f32.vlgmr.msra.gmra.mxu1 %v3164_v7 }
0x1792   :  { %5826 = vmatpush3.msra.mxu1 %v6141_v12 }
0x1793   :  { %5827 = vmatprep.subr.mxu1 %v6142_v18 }
0x1794   :  { %5828 = vmatpush3.msra.mxu1 %v6142_v18 }
0x1795   :  { %5829 = vmatprep.subr.mxu1 %v6444_v41 }
0x1796   :  { %5830 = vmatpush3.msra.mxu1 %v6444_v41 }
0x1797   :  { %5831 = vmatprep.subr.mxu1 %v6448_v43 }
0x1798   :  { %5832 = vmatpush3.msra.mxu1 %v6448_v43 }
0x1799   :  { %5847 = vmatprep.subr.mxu1 %v6452_v48 }
0x1851   :  { %v3231_v17 = vpop.f32.mrf.mxu1 }
0x1852   :  { %v3232_v20 = vadd.f32 %v6143_v19, %v3231_v17 }
0x1853   :  { %v5794_v21 = vpop.f32.mrf.mxu1 }
0x1854   :  { %v3236_v22 = vand.u32 2147483647, %v3232_v20  ;;  %v3235_v43 = vmax.f32 %v3232_v20, 0.0  ;;  %v3278_v61 = vrot.slane %v3232_v20, %v6376_v46  ;;  %v6145_v21 = vld [vmem:[#allocation8 + $0x148] sm:$0x3f] }
0x1856   :  { %v3237_v24 = vsub.f32 0.0, %v3236_v22 }
0x1858   :  { %v3238_v25 = vmul.f32 1.442695, %v3237_v24 }
0x185a   :  { %6036 = vpow2.f32 %v3238_v25 }
0x1867   :  { %v6037_v26 = vpop.eup %6036 }
0x1868   :  { %v3240_v28 = vadd.f32 1.0, %v6037_v26  ;;  %v3243_v29 = vmul.f32 -0.5, %v6037_v26  ;;  %v3246_v41 = vand.u32 2147483647, %v6037_v26 }
0x186a   :  { %6038 = vlog2.f32 %v3240_v28  ;;  %v3244_v30 = vadd.f32 1.0, %v3243_v29  ;;  %vm3247_vm14 = vcmp.lt.f32.partialorder %v3246_v41, 0.0004427343 }
0x186c   :  { %v3245_v36 = vmul.f32 %v6037_v26, %v3244_v30 }
0x1877   :  { %v6039_v34 = vpop.eup %6038 }
0x1878   :  { %v3242_v35 = vmul.f32 0.6931472, %v6039_v34 }
0x187a   :  { %v3248_v48 = vsel %vm3247_vm14, %v3245_v36, %v3242_v35 }
0x187b   :  { %v3249_v13 = vadd.f32 %v3248_v48, %v3235_v43 }
0x187d   :  { %6040 = vtanh.f32 %v3249_v13 }
0x188a   :  { %v6041_v37 = vpop.eup %6040 }
0x188b   :  { %v3251_v38 = vmul.f32 %v6041_v37, %v3232_v20  ;;  %v6146_v37 = vld [vmem:[#allocation8 + $0x158] ss:$0 sm:$0xff] }
0x188d   :  { %v3255_v39 = vrot.slane %v3251_v38, %v6376_v46 }
0x188f   :  { %v3256_v15 = vmul.f32 %v3255_v39, %v6373_v45 }
0x1891   :  { %v3257_v8 = vadd.f32 %v3256_v15, %v6380_v50 }
0x1893   :  { %v3259_v42 = vand.u32 2147483647, %v3257_v8  ;;  %v3258_v58 = vmax.f32 %v3257_v8, 0.0 }
0x1895   :  { %v3260_v32 = vsub.f32 0.0, %v3259_v42 }
0x1897   :  { %v3261_v44 = vmul.f32 1.442695, %v3260_v32 }
0x1899   :  { %6042 = vpow2.f32 %v3261_v44 }
0x18a6   :  { %v6043_v47 = vpop.eup %6042 }
0x18a7   :  { %v3263_v49 = vadd.f32 1.0, %v6043_v47  ;;  %v3266_v54 = vmul.f32 -0.5, %v6043_v47  ;;  %v3269_v56 = vand.u32 2147483647, %v6043_v47 }
0x18a9   :  { %6044 = vlog2.f32 %v3263_v49  ;;  %v3267_v55 = vadd.f32 1.0, %v3266_v54  ;;  %vm3270_vm4 = vcmp.lt.f32.partialorder %v3269_v56, 0.0004427343 }
0x18ab   :  { %v3268_v2 = vmul.f32 %v6043_v47, %v3267_v55 }
0x18b6   :  { %v6045_v57 = vpop.eup %6044 }
0x18b7   :  { %v3265_v63 = vmul.f32 0.6931472, %v6045_v57 }
0x18b9   :  { %v3271_v59 = vsel %vm3270_vm4, %v3268_v2, %v3265_v63 }
0x18ba   :  { %v3272_v60 = vadd.f32 %v3271_v59, %v3258_v58 }
0x18bc   :  { %6046 = vtanh.f32 %v3272_v60 }
0x18c9   :  { %v6047_v45 = vpop.eup %6046 }
0x18ca   :  { %v3274_v50 = vmul.f32 %v6047_v45, %v3257_v8  ;;  %v6148_v45 = vld [vmem:[#allocation8 + $0x168] sm:$0x3f] }
0x18cc   :  { %v3279_v62 = vadd.f32 %v3278_v61, %v3274_v50  ;;  %v6149_v50 = vld [vmem:[#allocation8 + $0x188] sm:$0xff] }
0x18ce   :  { %5796 = vmatpush3.msk.msra.mxu0 %vm766_vm9, %v3279_v62 }
0x18cf   :  { %5798 = vmatmul.mubr.msk.f32.vlgmr.msra.gmra.mxu0 %vm762_vm10, %v6144_v1  ;;  %5800 = vmatprep.subr.mxu0 %v6258_v0 }
0x18d0   :  { %5806 = vmatprep.mubr.msk.f32.mxu0 %vm6259_vm0, %v6258_v0 }
0x198f   :  { %v3349_v4 = vpop.f32.mrf.mxu0 }
0x1990   :  { %v3350_v46 = vadd.f32 %v3349_v4, %v6393_v14 }
0x1991   :  { %v5799_v23 = vpop.f32.mrf.mxu0 }
0x1992   :  { %v3353_v10 = vadd.f32 %v3350_v46, %v6727_v5 }
0x1994   :  { %3355 = vrot.lane.b32.xlu1 %v3353_v10, %s6254_s0 }
0x1a06   :  { %v3356_v7 = vpop.permute.xlu1 %3355 }
0x1a07   :  { %v3358_v12 = vsel %vm146_vm2, 0.0, %v3356_v7 }
0x1a08   :  { %v3359_v33 = vsel %vm846_vm11, %v3358_v12, 0.0 }
0x1a09   :  { %3365 = vrot.lane.b32.xlu1 %v3359_v33, %s6261_s3  ;;  %3371 = vrot.lane.b32.xlu0 %v3359_v33, %s6262_s9  ;;  %v3361_v9 = vrot.slane %v3359_v33, 4 }
0x1a0d   :  { %3362 = vrot.lane.b32.xlu1 %v3361_v9, %s6263_s10  ;;  %3368 = vrot.lane.b32.xlu0 %v3361_v9, %s6264_s11 }
0x1a7b   :  { %v3366_v14 = vpop.permute.xlu1 %3365  ;;  %v3372_v53 = vpop.permute.xlu0 %3371 }
0x1a7c   :  { %5801 = vmatpush3.msk.msra.mxu0 %vm766_vm9, %v3372_v53 }
0x1a7d   :  { %5802 = vmatprep.subr.mxu0 %v6258_v0 }
0x1a7f   :  { %v3363_v18 = vpop.permute.xlu1 %3362  ;;  %v3369_v17 = vpop.permute.xlu0 %3368 }
0x1a80   :  { %v3374_v19 = vsel %vm766_vm9, %v3366_v14, %v3369_v17  ;;  %v3373_v20 = vsel %vm766_vm9, %v3359_v33, %v3363_v18  ;;  %v6150_v33 = vld [vmem:[#allocation8 + $0x178] ss:$0 sm:$0xff]  ;;  %v6151_v14 = vld [vmem:[#allocation8 + $0x180] ss:$0 sm:$0xff]  ;;  %v6152_v18 = vld [vmem:[#allocation8 + $0x190] sm:$0xff] }
0x1a81   :  { %5803 = vmatpush3.msra.mxu0 %v3374_v19  ;;  %v6153_v17 = vld [vmem:[#allocation8 + $0x1f0] sm:$0xff]  ;;  %v6154_v19 = vld [vmem:[#allocation8 + $0x198] sm:$0xff] }
0x1a82   :  { %5804 = vmatprep.subr.mxu0 %v6258_v0 }
0x1a83   :  { %5805 = vmatpush3.msra.mxu0 %v3373_v20  ;;  %v6155_v20 = vld [vmem:[#allocation8 + $0x1e8] sm:$0xff] }
0x1a84   :  { %5807 = vmatmul.mubr.msk.f32.vlgmr.msra.gmra.mxu0 %vm868_vm12, %v6145_v21  ;;  %5809 = vmatprep.subr.mxu0 %v6258_v0  ;;  %v6156_v21 = vld [vmem:[#allocation8 + $0x1a0] sm:$0xff] }
0x1a85   :  { %5811 = vmatprep.mubr.msk.f32.mxu0 %vm6259_vm0, %v6258_v0 }
0x1b44   :  { %v3443_v22 = vpop.f32.mrf.mxu0 }
0x1b45   :  { %v3444_v24 = vadd.f32 %v3443_v22, %v6416_v31  ;;  %v6147_v31 = vld [vmem:[#allocation8 + $0x160] ss:$0 sm:$0xff] }
0x1b46   :  { %v5808_v25 = vpop.f32.mrf.mxu0  ;;  %v6157_v22 = vld [vmem:[#allocation8 + $0x1e0] sm:$0xff] }
0x1b47   :  { %v3447_v26 = vsel %vm944_vm13, %v3444_v24, 0.0  ;;  %v6159_v25 = vld [vmem:[#allocation8 + $0x1d8] sm:$0xff] }
0x1b48   :  { %3448 = vadd.xlane.f32.xlu0 %v3447_v26  ;;  %v6160_v26 = vld [vmem:[#allocation8 + $0x1b0] sm:$0xff] }
0x1bd1   :  { %v3449_v28 = vpop.xlane.xlu0 %3448 }
0x1bd2   :  { %v3450_v29 = vmul.f32 0.03125, %v3449_v28 }
0x1bd4   :  { %v3451_v30 = vsub.f32 %v3444_v24, %v3450_v29  ;;  %v6158_v24 = vld [vmem:[#allocation8 + $0x1a8] sm:$0xff] }
0x1bd6   :  { %v3452_v41 = vmul.f32 %v3451_v30, %v3451_v30 }
0x1bd8   :  { %v3453_v34 = vsel %vm944_vm13, %v3452_v41, 0.0  ;;  %v6161_v41 = vld [vmem:[#allocation8 + $0x210] sm:$0xff] }
0x1bd9   :  { %3454 = vadd.xlane.f32.xlu1 %v3453_v34 }
0x1c62   :  { %v3455_v35 = vpop.xlane.xlu1 %3454 }
0x1c63   :  { %v3456_v36 = vmul.f32 0.03125, %v3455_v35  ;;  %v6162_v35 = vld [vmem:[#allocation8 + $0x208] sm:$0xff] }
0x1c65   :  { %v3457_v43 = vadd.f32 1e-05, %v3456_v36 }
0x1c67   :  { %6048 = vrsqrt.f32 %v3457_v43  ;;  %v6163_v43 = vld [vmem:[#allocation8 + $0x200] sm:$0xff] }
0x1c74   :  { %v6049_v48 = vpop.eup %6048 }
0x1c75   :  { %v3459_v13 = vmul.f32 %v6049_v48, %v3451_v30 }
0x1c77   :  { %v3460_v38 = vmul.f32 %v6146_v37, %v3459_v13  ;;  %v6164_v13 = vld [vmem:[#allocation8 + $0x1f8] sm:$0xff] }
0x1c79   :  { %v3461_v39 = vadd.f32 %v6147_v31, %v3460_v38  ;;  %v6165_v31 = vld [vmem:[#allocation8 + $0x218] ss:$0 sm:$0xff] }
0x1c7b   :  { %v3463_v15 = vand.u32 2147483647, %v3461_v39  ;;  %v3462_v63 = vmax.f32 %v3461_v39, 0.0 }
0x1c7d   :  { %v3464_v8 = vsub.f32 0.0, %v3463_v15 }
0x1c7f   :  { %v3465_v42 = vmul.f32 1.442695, %v3464_v8  ;;  %v6166_v8 = vld [vmem:[#allocation8 + $0x220] ss:$0 sm:$0xff] }
0x1c81   :  { %6050 = vpow2.f32 %v3465_v42 }
0x1c8e   :  { %v6051_v32 = vpop.eup %6050 }
0x1c8f   :  { %v3467_v44 = vadd.f32 1.0, %v6051_v32  ;;  %v3470_v47 = vmul.f32 -0.5, %v6051_v32  ;;  %v3473_v54 = vand.u32 2147483647, %v6051_v32 }
0x1c91   :  { %6052 = vlog2.f32 %v3467_v44  ;;  %v3471_v49 = vadd.f32 1.0, %v3470_v47  ;;  %vm3474_vm12 = vcmp.lt.f32.partialorder %v3473_v54, 0.0004427343 }
0x1c93   :  { %v3472_v57 = vmul.f32 %v6051_v32, %v3471_v49  ;;  %v6167_v49 = vld [vmem:[#allocation8 + $0x228] ss:$0 sm:$0xff] }
0x1c9e   :  { %v6053_v55 = vpop.eup %6052 }
0x1c9f   :  { %v3469_v56 = vmul.f32 0.6931472, %v6053_v55 }
0x1ca1   :  { %v3475_v2 = vsel %vm3474_vm12, %v3472_v57, %v3469_v56 }
0x1ca2   :  { %v3476_v58 = vadd.f32 %v3475_v2, %v3462_v63 }
0x1ca4   :  { %6054 = vtanh.f32 %v3476_v58 }
0x1cb1   :  { %v6055_v59 = vpop.eup %6054 }
0x1cb2   :  { %v3478_v60 = vmul.f32 %v6055_v59, %v3461_v39 }
0x1cb4   :  { %5810 = vmatpush3.msk.msra.mxu0 %vm995_vm15, %v3478_v60 }
0x1cb5   :  { %5812 = vmatmul.mubr.msk.f32.vlgmr.msra.gmra.mxu0 %vm991_vm3, %v6148_v45 }
0x1cb6   :  { %5816 = vmatprep.mubr.msk.f32.mxu0 %vm991_vm3, %v6149_v50 }
0x1d75   :  { %v3548_v61 = vpop.f32.mrf.mxu0 }
0x1d76   :  { %v6753_v62 = vadd.f32 %v3548_v61, %v6423_v11 }
0x1d77   :  { %v5813_v1 = vpop.f32.mrf.mxu0 }
0x1d78   :  { %v3552_v6 = vsel %vm944_vm13, %v6753_v62, 0.0 }
0x1d79   :  { %3553 = vadd.xlane.f32.xlu0 %v3552_v6 }
0x1e02   :  { %v3554_v16 = vpop.xlane.xlu0 %3553 }
0x1e03   :  { %v3555_v51 = vmul.f32 0.03125, %v3554_v16 }
0x1e05   :  { %v3556_v52 = vsub.f32 %v6753_v62, %v3555_v51 }
0x1e07   :  { %v3557_v4 = vmul.f32 %v3556_v52, %v3556_v52 }
0x1e09   :  { %v3558_v46 = vsel %vm944_vm13, %v3557_v4, 0.0 }
0x1e0a   :  { %3559 = vadd.xlane.f32.xlu0 %v3558_v46 }
0x1e93   :  { %v3560_v23 = vpop.xlane.xlu0 %3559 }
0x1e94   :  { %v3561_v10 = vmul.f32 0.03125, %v3560_v23 }
0x1e96   :  { %v3562_v7 = vadd.f32 1e-05, %v3561_v10 }
0x1e98   :  { %6056 = vrsqrt.f32 %v3562_v7 }
0x1ea5   :  { %v6057_v12 = vpop.eup %6056 }
0x1ea6   :  { %v3564_v11 = vmul.f32 %v6057_v12, %v3556_v52 }
0x1ea8   :  { %v3565_v9 = vmul.f32 %v6150_v33, %v3564_v11 }
0x1eaa   :  { %v3566_v53 = vadd.f32 %v6151_v14, %v3565_v9 }
0x1eac   :  { %5814 = vmatprep.subr.msk.mxu0 %vm995_vm15, %v3566_v53 }
0x1ead   :  { %5815 = vmatpush3.msk.msra.mxu0 %vm995_vm15, %v3566_v53 }
0x1eae   :  { %5817 = vmatmul.mubr.msk.f32.vlgmr.msra.gmra.mxu0 %vm991_vm3, %v6152_v18  ;;  %5836 = vmatprep.subr.mxu0 %v6153_v17 }
0x1eaf   :  { %5819 = vmatprep.mubr.msk.f32.mxu0 %vm991_vm3, %v6154_v19  ;;  %5837 = vmatpush3.msra.mxu0 %v6153_v17 }
0x1eb0   :  { %5838 = vmatprep.subr.mxu0 %v6155_v20 }
0x1eb1   :  { %5839 = vmatpush3.msra.mxu0 %v6155_v20 }
0x1eb2   :  { %5820 = vmatmul.mubr.msk.f32.gmra.mxu0 %vm991_vm3, %v6156_v21  ;;  %5840 = vmatprep.subr.mxu0 %v6157_v22 }
0x1eb3   :  { %5822 = vmatprep.mubr.msk.f32.mxu0 %vm991_vm3, %v6158_v24  ;;  %5841 = vmatpush3.msra.mxu0 %v6157_v22 }
0x1eb4   :  { %5842 = vmatprep.subr.mxu0 %v6159_v25 }
0x1eb5   :  { %5843 = vmatpush3.msra.mxu0 %v6159_v25 }
0x1eb6   :  { %5823 = vmatmul.mubr.msk.f32.gmra.mxu0 %vm991_vm3, %v6160_v26  ;;  %vm6958_vm3 = vcmask 195584  }
0x1eb7   :  { %vm6959_vm14 = vmmov %vm6958_vm3 }
0x1f6e   :  { %v5818_v28 = vpop.f32.mrf.mxu0 }
0x1f70   :  { %v3636_v29 = vpop.f32.mrf.mxu0 }
0x1f71   :  { %5833 = vmatprep.mubr.msk.f32.mxu1 %vm1212_vm6, %v3636_v29 }
0x1f72   :  { %v5821_v30 = vpop.f32.mrf.mxu0  ;;  %5834 = vmatmul.mubr.msk.f32.vlgmr.msra.gmra.mxu1 %vm1212_vm6, %v5818_v28 }
0x1f73   :  { %5848 = vmatpush3.msra.mxu1 %v6161_v41 }
0x1f74   :  { %v3646_v34 = vpop.f32.mrf.mxu0  ;;  %5849 = vmatprep.subr.mxu1 %v6162_v35 }
0x1f75   :  { %5844 = vmatprep.mubr.msk.f32.mxu0 %vm1212_vm6, %v3646_v34  ;;  %5850 = vmatpush3.msra.mxu1 %v6162_v35 }
0x1f76   :  { %5845 = vmatmul.mubr.msk.f32.vlgmr.msra.gmra.mxu0 %vm1212_vm6, %v5821_v30  ;;  %v5824_v36 = vpop.f32.mrf.mxu0  ;;  %5851 = vmatprep.subr.mxu1 %v6163_v43 }
0x1f77   :  { %5852 = vmatpush3.msra.mxu1 %v6163_v43 }
0x1f78   :  { %v3656_v48 = vpop.f32.mrf.mxu0  ;;  %5853 = vmatprep.subr.mxu1 %v6164_v13 }
0x1f79   :  { %5854 = vmatpush3.msra.mxu1 %v6164_v13  ;;  %5855 = vmatprep.mubr.msk.f32.mxu1 %vm1212_vm6, %v3656_v48 }
0x1f7a   :  { %5856 = vmatmul.mubr.msk.f32.vlgmr.msra.gmra.mxu1 %vm1212_vm6, %v5824_v36 }
0x2032   :  { %v5835_v37 = vpop.f32.mrf.mxu1 }
0x2033   :  { %v6794_v57 = vadd.f32 %v6165_v31, %v5835_v37 }
0x2034   :  { %v3737_v38 = vpop.f32.mrf.mxu1 }
0x2035   :  { %v6772_v39 = vadd.f32 %v6165_v31, %v3737_v38 }
0x2036   :  { %v5846_v15 = vpop.f32.mrf.mxu0 }
0x2037   :  { %v6774_v42 = vadd.f32 %v6166_v8, %v5846_v15  ;;  %5862 = vmatprep.mubr.msk.f32.mxu0 %vm1464_vm7, %v6772_v39 }
0x2038   :  { %v3818_v32 = vpop.f32.mrf.mxu0 }
0x2039   :  { %v6778_v44 = vadd.f32 %v6166_v8, %v3818_v32  ;;  %5858 = vmatprep.subr.msk.mxu0 %vm1464_vm7, %v6774_v42 }
0x203a   :  { %5859 = vmatpush3.xpose.msk.msra.mxu0 %vm1464_vm7, %v6774_v42  ;;  %v5857_v47 = vpop.f32.mrf.mxu1 }
0x203b   :  { %5860 = vmatprep.subr.msk.mxu0 %vm1464_vm7, %v6778_v44  ;;  %v6786_v54 = vadd.f32 %v6167_v49, %v5857_v47 }
0x203c   :  { %v3899_v55 = vpop.f32.mrf.mxu1 }
0x203d   :  { %v6788_v56 = vadd.f32 %v6167_v49, %v3899_v55  ;;  %5865 = vmatprep.subr.mxu1 %v6786_v54 }
0x203e   :  { %5861 = vmatpush3.xpose.msk.msra.mxu0 %vm1464_vm7, %v6778_v44  ;;  %5866 = vmatpush3.msra.mxu1 %v6786_v54 }
0x203f   :  { %5867 = vmatprep.subr.mxu1 %v6788_v56 }
0x2040   :  { %5868 = vmatpush3.msra.mxu1 %v6788_v56 }
0x2041   :  { %5863 = vmatmul.mubr.msk.f32.vlgmr.msra.gmra.mxu0 %vm1464_vm7, %v6794_v57 }
0x2101   :  { %v5864_v63 = vpop.f32.mrf.mxu0 }
0x2102   :  { %v3996_v2 = vmul.f32 0.35355338, %v5864_v63 }
0x2103   :  { %v3986_v58 = vpop.f32.mrf.mxu0 }
0x2104   :  { %v3995_v59 = vmul.f32 0.35355338, %v3986_v58  ;;  %v4000_v60 = vsel %vm226_vm5, %v3996_v2, -inf }
0x2105   :  { %4001 = vmax.xlane.f32.xlu0 %v4000_v60 }
0x2106   :  { %v3997_v45 = vsel %vm226_vm5, %v3995_v59, -inf }
0x2107   :  { %3998 = vmax.xlane.f32.xlu1 %v3997_v45 }
0x2118   :  { %4106 = vrot.lane.b32.xlu1 %v6774_v42, %s6265_s12 }
0x211c   :  { %4100 = vrot.lane.b32.xlu1 %v6772_v39, %s6265_s12 }
0x218e   :  { %v4002_v50 = vpop.xlane.xlu0 %4001 }
0x218f   :  { %v4004_v61 = vsub.f32 %v3996_v2, %v4002_v50 }
0x2190   :  { %v3999_v1 = vpop.xlane.xlu1 %3998 }
0x2191   :  { %v4007_v6 = vmul.f32 1.442695, %v4004_v61  ;;  %v4003_v16 = vsub.f32 %v3995_v59, %v3999_v1 }
0x2193   :  { %6058 = vpow2.f32 %v4007_v6  ;;  %v4005_v51 = vmul.f32 1.442695, %v4003_v16 }
0x2194   :  { %v4107_v52 = vpop.permute.xlu1 %4106 }
0x2195   :  { %6060 = vpow2.f32 %v4005_v51  ;;  %5872 = vmatprep.subr.msk.mxu1 %vm1464_vm7, %v4107_v52 }
0x2198   :  { %v4101_v7 = vpop.permute.xlu1 %4100 }
0x21a0   :  { %v6059_v4 = vpop.eup %6058 }
0x21a1   :  { %v4012_v46 = vsel %vm226_vm5, %v6059_v4, 0.0 }
0x21a2   :  { %v6061_v23 = vpop.eup %6060  ;;  %4013 = vadd.xlane.f32.xlu0 %v4012_v46 }
0x21a3   :  { %v4009_v10 = vsel %vm226_vm5, %v6061_v23, 0.0 }
0x21a4   :  { %4010 = vadd.xlane.f32.xlu1 %v4009_v10 }
0x21b5   :  { %4102 = vrot.lane.b32.xlu1 %v6794_v57, %s6265_s12 }
0x21b8   :  { %4104 = vrot.lane.b32.xlu0 %v6778_v44, %s6265_s12 }
0x222b   :  { %v4014_v12 = vpop.xlane.xlu0 %4013 }
0x222c   :  { %6062 = vrcp.f32 %v4014_v12 }
0x222d   :  { %v4011_v11 = vpop.xlane.xlu1 %4010 }
0x222e   :  { %6064 = vrcp.f32 %v4011_v11 }
0x222f   :  { %v4105_v18 = vpop.permute.xlu0 %4104 }
0x2231   :  { %v4103_v17 = vpop.permute.xlu1 %4102 }
0x2239   :  { %v6063_v33 = vpop.eup %6062 }
0x223a   :  { %v4018_v53 = vmul.f32 %v6063_v33, %v6059_v4 }
0x223b   :  { %v6065_v9 = vpop.eup %6064 }
0x223c   :  { %v4017_v14 = vmul.f32 %v6065_v9, %v6061_v23 }
0x223e   :  { %5869 = vmatprep.mubr.msk.f32.mxu1 %vm226_vm5, %v4017_v14 }
0x223f   :  { %5870 = vmatmul.mubr.msk.f32.vlgmr.msra.gmra.mxu1 %vm226_vm5, %v4018_v53 }
0x2240   :  { %5873 = vmatpush3.xpose.msk.msra.mxu1 %vm1464_vm7, %v4107_v52  ;;  %5876 = vmatprep.mubr.msk.f32.mxu1 %vm1464_vm7, %v4101_v7 }
0x2241   :  { %5874 = vmatprep.subr.msk.mxu1 %vm1464_vm7, %v4105_v18 }
0x2244   :  { %5875 = vmatpush3.xpose.msk.msra.mxu1 %vm1464_vm7, %v4105_v18 }
0x2247   :  { %5877 = vmatmul.mubr.msk.f32.vlgmr.msra.gmra.mxu1 %vm1464_vm7, %v4103_v17 }
0x22ff   :  { %v6820_v19 = vpop.f32.mrf.mxu1 }
0x2301   :  { %v6822_v20 = vpop.f32.mrf.mxu1 }
0x2307   :  { %v5878_v21 = vpop.f32.mrf.mxu1 }
0x2308   :  { %v4192_v22 = vmul.f32 0.35355338, %v5878_v21 }
0x2309   :  { %v4182_v24 = vpop.f32.mrf.mxu1 }
0x230a   :  { %v4191_v25 = vmul.f32 0.35355338, %v4182_v24  ;;  %v4196_v26 = vsel %vm226_vm5, %v4192_v22, -inf }
0x230b   :  { %4197 = vmax.xlane.f32.xlu1 %v4196_v26 }
0x230c   :  { %v4193_v28 = vsel %vm226_vm5, %v4191_v25, -inf }
0x230d   :  { %4194 = vmax.xlane.f32.xlu0 %v4193_v28 }
0x231c   :  { %4219 = vrot.lane.b32.xlu1 %v6786_v54, %s6265_s12 }
0x2320   :  { %4310 = vrot.lane.b32.xlu1 %v6774_v42, %s6266_s13 }
0x2324   :  { %4308 = vrot.lane.b32.xlu1 %v6778_v44, %s6266_s13 }
0x2328   :  { %4306 = vrot.lane.b32.xlu1 %v6794_v57, %s6266_s13 }
0x2394   :  { %v4198_v29 = vpop.xlane.xlu1 %4197 }
0x2395   :  { %v4200_v30 = vsub.f32 %v4192_v22, %v4198_v29 }
0x2396   :  { %v4195_v41 = vpop.xlane.xlu0 %4194 }
0x2397   :  { %v4203_v34 = vmul.f32 1.442695, %v4200_v30  ;;  %v4199_v35 = vsub.f32 %v4191_v25, %v4195_v41 }
0x2398   :  { %v4220_v36 = vpop.permute.xlu1 %4219 }
0x2399   :  { %6066 = vpow2.f32 %v4203_v34  ;;  %v4201_v43 = vmul.f32 1.442695, %v4199_v35  ;;  %5879 = vmatprep.subr.mxu0 %v4220_v36 }
0x239a   :  { %5880 = vmatpush3.msra.mxu0 %v4220_v36 }
0x239b   :  { %6068 = vpow2.f32 %v4201_v43 }
0x239c   :  { %v4311_v32 = vpop.permute.xlu1 %4310 }
0x23a0   :  { %v4309_v58 = vpop.permute.xlu1 %4308 }
0x23a4   :  { %v4307_v59 = vpop.permute.xlu1 %4306 }
0x23a6   :  { %v6067_v48 = vpop.eup %6066 }
0x23a7   :  { %v4208_v13 = vsel %vm226_vm5, %v6067_v48, 0.0 }
0x23a8   :  { %v6069_v37 = vpop.eup %6068  ;;  %4209 = vadd.xlane.f32.xlu0 %v4208_v13 }
0x23a9   :  { %v4205_v38 = vsel %vm226_vm5, %v6069_v37, 0.0 }
0x23ac   :  { %4206 = vadd.xlane.f32.xlu0 %v4205_v38 }
0x23c2   :  { %4217 = vrot.lane.b32.xlu0 %v6788_v56, %s6265_s12 }
0x23c6   :  { %4304 = vrot.lane.b32.xlu0 %v6772_v39, %s6266_s13 }
0x2431   :  { %v4210_v31 = vpop.xlane.xlu0 %4209 }
0x2432   :  { %6070 = vrcp.f32 %v4210_v31 }
0x2435   :  { %v4207_v15 = vpop.xlane.xlu0 %4206 }
0x2436   :  { %6072 = vrcp.f32 %v4207_v15 }
0x2439   :  { %v4218_v8 = vpop.permute.xlu0 %4217 }
0x243a   :  { %5881 = vmatprep.subr.mxu0 %v4218_v8 }
0x243b   :  { %5882 = vmatpush3.msra.mxu0 %v4218_v8 }
0x243c   :  { %5886 = vmatprep.subr.msk.mxu0 %vm1464_vm7, %v4311_v32 }
0x243d   :  { %v4305_v2 = vpop.permute.xlu0 %4304 }
0x243f   :  { %v6071_v47 = vpop.eup %6070 }
0x2440   :  { %v4214_v63 = vmul.f32 %v6071_v47, %v6067_v48 }
0x2443   :  { %v6073_v49 = vpop.eup %6072 }
0x2444   :  { %v4213_v55 = vmul.f32 %v6073_v49, %v6069_v37 }
0x2446   :  { %5883 = vmatprep.mubr.msk.f32.mxu0 %vm226_vm5, %v4213_v55 }
0x2447   :  { %5884 = vmatmul.mubr.msk.f32.vlgmr.msra.gmra.mxu0 %vm226_vm5, %v4214_v63 }
0x2448   :  { %5887 = vmatpush3.xpose.msk.msra.mxu0 %vm1464_vm7, %v4311_v32  ;;  %5890 = vmatprep.mubr.msk.f32.mxu0 %vm1464_vm7, %v4305_v2  ;;  %v6168_v2 = vld [vmem:[#allocation8 + $0x248] sm:$0xff] }
0x2449   :  { %5888 = vmatprep.subr.msk.mxu0 %vm1464_vm7, %v4309_v58 }
0x244c   :  { %5889 = vmatpush3.xpose.msk.msra.mxu0 %vm1464_vm7, %v4309_v58 }
0x244f   :  { %5891 = vmatmul.mubr.msk.f32.vlgmr.msra.gmra.mxu0 %vm1464_vm7, %v4307_v59 }
0x2507   :  { %v6848_v60 = vpop.f32.mrf.mxu0 }
0x2509   :  { %v6850_v45 = vpop.f32.mrf.mxu0 }
0x250f   :  { %v5892_v50 = vpop.f32.mrf.mxu0 }
0x2510   :  { %v4396_v61 = vmul.f32 0.35355338, %v5892_v50  ;;  %v6170_v50 = vld [vmem:[#allocation8 + $0x238] sm:$0xff] }
0x2511   :  { %v4386_v1 = vpop.f32.mrf.mxu0 }
0x2512   :  { %v4395_v6 = vmul.f32 0.35355338, %v4386_v1  ;;  %v4400_v16 = vsel %vm226_vm5, %v4396_v61, -inf }
0x2513   :  { %4401 = vmax.xlane.f32.xlu1 %v4400_v16 }
0x2514   :  { %v4397_v51 = vsel %vm226_vm5, %v4395_v6, -inf }
0x2515   :  { %4398 = vmax.xlane.f32.xlu0 %v4397_v51 }
0x2524   :  { %4421 = vrot.lane.b32.xlu1 %v6786_v54, %s6266_s13 }
0x2528   :  { %4512 = vrot.lane.b32.xlu1 %v6774_v42, %s6267_s14 }
0x252c   :  { %4510 = vrot.lane.b32.xlu1 %v6778_v44, %s6267_s14 }
0x2530   :  { %4508 = vrot.lane.b32.xlu1 %v6794_v57, %s6267_s14 }
0x259c   :  { %v4402_v52 = vpop.xlane.xlu1 %4401 }
0x259d   :  { %v4404_v4 = vsub.f32 %v4396_v61, %v4402_v52  ;;  %v6171_v61 = vld [vmem:[#allocation8 + $0x230] sm:$0xff] }
0x259e   :  { %v4399_v46 = vpop.xlane.xlu0 %4398 }
0x259f   :  { %v4407_v23 = vmul.f32 1.442695, %v4404_v4  ;;  %v4403_v10 = vsub.f32 %v4395_v6, %v4399_v46 }
0x25a0   :  { %v4422_v7 = vpop.permute.xlu1 %4421 }
0x25a1   :  { %6074 = vpow2.f32 %v4407_v23  ;;  %v4405_v12 = vmul.f32 1.442695, %v4403_v10  ;;  %5893 = vmatprep.subr.mxu1 %v4422_v7 }
0x25a2   :  { %5894 = vmatpush3.msra.mxu1 %v4422_v7 }
0x25a3   :  { %6076 = vpow2.f32 %v4405_v12 }
0x25a4   :  { %v4513_v53 = vpop.permute.xlu1 %4512 }
0x25ae   :  { %v6075_v11 = vpop.eup %6074 }
0x25af   :  { %v4412_v42 = vsel %vm226_vm5, %v6075_v11, 0.0 }
0x25b0   :  { %v6077_v33 = vpop.eup %6076  ;;  %4413 = vadd.xlane.f32.xlu0 %v4412_v42 }
0x25b1   :  { %v4409_v44 = vsel %vm226_vm5, %v6077_v33, 0.0 }
0x25b4   :  { %4410 = vadd.xlane.f32.xlu0 %v4409_v44  ;;  %v6173_v44 = vld [vmem:[#allocation8 + $0x250] ss:$0 sm:$0xff] }
0x25ca   :  { %4419 = vrot.lane.b32.xlu0 %v6788_v56, %s6266_s13 }
0x25ce   :  { %4506 = vrot.lane.b32.xlu0 %v6772_v39, %s6267_s14  ;;  %v4511_v39 = vpop.permute.xlu1 %4510 }
0x25d2   :  { %v4509_v25 = vpop.permute.xlu1 %4508 }
0x2639   :  { %v4414_v57 = vpop.xlane.xlu0 %4413 }
0x263a   :  { %6078 = vrcp.f32 %v4414_v57 }
0x263d   :  { %v4411_v9 = vpop.xlane.xlu0 %4410 }
0x263e   :  { %6080 = vrcp.f32 %v4411_v9 }
0x2641   :  { %v4420_v14 = vpop.permute.xlu0 %4419 }
0x2642   :  { %5895 = vmatprep.subr.mxu1 %v4420_v14 }
0x2643   :  { %5896 = vmatpush3.msra.mxu1 %v4420_v14 }
0x2644   :  { %5900 = vmatprep.subr.msk.mxu1 %vm1464_vm7, %v4513_v53 }
0x2645   :  { %v4507_v24 = vpop.permute.xlu0 %4506 }
0x2647   :  { %v6079_v18 = vpop.eup %6078 }
0x2648   :  { %v4418_v22 = vmul.f32 %v6079_v18, %v6075_v11 }
0x264b   :  { %v6081_v17 = vpop.eup %6080 }
0x264c   :  { %v4417_v21 = vmul.f32 %v6081_v17, %v6077_v33 }
0x264e   :  { %5897 = vmatprep.mubr.msk.f32.mxu1 %vm226_vm5, %v4417_v21 }
0x264f   :  { %5898 = vmatmul.mubr.msk.f32.vlgmr.msra.gmra.mxu1 %vm226_vm5, %v4418_v22 }
0x2650   :  { %5901 = vmatpush3.xpose.msk.msra.mxu1 %vm1464_vm7, %v4513_v53  ;;  %5904 = vmatprep.mubr.msk.f32.mxu1 %vm1464_vm7, %v4507_v24  ;;  %v6174_v53 = vld [vmem:[#allocation8 + $0x258] sm:$0x3f] }
0x2651   :  { %5902 = vmatprep.subr.msk.mxu1 %vm1464_vm7, %v4511_v39 }
0x2654   :  { %5903 = vmatpush3.xpose.msk.msra.mxu1 %vm1464_vm7, %v4511_v39 }
0x2655   :  { %5925 = vmatprep.subr.mxu1 %v6258_v0 }
0x2657   :  { %5905 = vmatmul.mubr.msk.f32.vlgmr.msra.gmra.mxu1 %vm1464_vm7, %v4509_v25 }
0x2658   :  { %5929 = vmatprep.mubr.msk.f32.mxu1 %vm6259_vm0, %v6258_v0 }
0x270f   :  { %v5899_v26 = vpop.f32.mrf.mxu1 }
0x2711   :  { %v4497_v28 = vpop.f32.mrf.mxu1 }
0x2717   :  { %v5906_v29 = vpop.f32.mrf.mxu1 }
0x2718   :  { %v4598_v30 = vmul.f32 0.35355338, %v5906_v29 }
0x2719   :  { %v4588_v41 = vpop.f32.mrf.mxu1 }
0x271a   :  { %v4597_v34 = vmul.f32 0.35355338, %v4588_v41  ;;  %v4602_v35 = vsel %vm226_vm5, %v4598_v30, -inf }
0x271b   :  { %4603 = vmax.xlane.f32.xlu1 %v4602_v35 }
0x271c   :  { %v4599_v36 = vsel %vm226_vm5, %v4597_v34, -inf }
0x271d   :  { %4600 = vmax.xlane.f32.xlu0 %v4599_v36 }
0x272c   :  { %4623 = vrot.lane.b32.xlu1 %v6786_v54, %s6267_s14 }
0x2730   :  { %4710 = vrot.lane.b32.xlu1 %v6850_v45, %s6257_s6 }
0x2734   :  { %4712 = vrot.lane.b32.xlu1 %v6848_v60, %s6257_s6 }
0x2738   :  { %4720 = vrot.lane.b32.xlu1 %v5899_v26, %s6268_s15 }
0x27a4   :  { %v4604_v43 = vpop.xlane.xlu1 %4603 }
0x27a5   :  { %v4606_v48 = vsub.f32 %v4598_v30, %v4604_v43  ;;  %v6175_v43 = vld [vmem:[#allocation8 + $0x268] sm:$0x3f] }
0x27a6   :  { %v4601_v13 = vpop.xlane.xlu0 %4600 }
0x27a7   :  { %v4609_v37 = vmul.f32 1.442695, %v4606_v48  ;;  %v4605_v38 = vsub.f32 %v4597_v34, %v4601_v13 }
0x27a8   :  { %v4624_v31 = vpop.permute.xlu1 %4623 }
0x27a9   :  { %6082 = vpow2.f32 %v4609_v37  ;;  %v4607_v15 = vmul.f32 1.442695, %v4605_v38  ;;  %5907 = vmatprep.subr.mxu0 %v4624_v31 }
0x27aa   :  { %5908 = vmatpush3.msra.mxu0 %v4624_v31 }
0x27ab   :  { %6084 = vpow2.f32 %v4607_v15 }
0x27ac   :  { %v4711_v16 = vpop.permute.xlu1 %4710 }
0x27ad   :  { %v4732_v46 = vsel %vm1464_vm7, %v6822_v20, %v4711_v16 }
0x27b0   :  { %v4713_v51 = vpop.permute.xlu1 %4712 }
0x27b1   :  { %v4733_v10 = vsel %vm1464_vm7, %v6820_v19, %v4713_v51  ;;  %v6172_v19 = vld [vmem:[#allocation8 + $0x288] sm:$0x3f] }
0x27b4   :  { %v4721_v52 = vpop.permute.xlu1 %4720 }
0x27b5   :  { %v4735_v11 = vsel %vm226_vm5, %v4733_v10, %v4721_v52 }
0x27b6   :  { %v6083_v54 = vpop.eup %6082 }
0x27b7   :  { %v4614_v8 = vsel %vm226_vm5, %v6083_v54, 0.0 }
0x27b8   :  { %v6085_v32 = vpop.eup %6084  ;;  %4615 = vadd.xlane.f32.xlu0 %v4614_v8 }
0x27b9   :  { %v4611_v47 = vsel %vm226_vm5, %v6085_v32, 0.0 }
0x27bc   :  { %4612 = vadd.xlane.f32.xlu0 %v4611_v47 }
0x27d2   :  { %4621 = vrot.lane.b32.xlu0 %v6788_v56, %s6267_s14  ;;  %v6169_v56 = vld [vmem:[#allocation8 + $0x240] sm:$0xff] }
0x27d6   :  { %4718 = vrot.lane.b32.xlu0 %v4497_v28, %s6268_s15 }
0x2841   :  { %v4616_v49 = vpop.xlane.xlu0 %4615 }
0x2842   :  { %6086 = vrcp.f32 %v4616_v49 }
0x2845   :  { %v4613_v55 = vpop.xlane.xlu0 %4612 }
0x2846   :  { %6088 = vrcp.f32 %v4613_v55 }
0x2849   :  { %v4622_v63 = vpop.permute.xlu0 %4621 }
0x284a   :  { %5909 = vmatprep.subr.mxu0 %v4622_v63 }
0x284b   :  { %5910 = vmatpush3.msra.mxu0 %v4622_v63  ;;  %v142_v63 = vld [vmem:[#allocation8 + $0x290] sm:$0x3f] }
0x284c   :  { %5914 = vmatprep.subr.mxu0 %v6168_v2 }
0x284d   :  { %v4719_v4 = vpop.permute.xlu0 %4718 }
0x284e   :  { %v4734_v7 = vsel %vm226_vm5, %v4732_v46, %v4719_v4 }
0x284f   :  { %v6087_v58 = vpop.eup %6086 }
0x2850   :  { %v4620_v45 = vmul.f32 %v6087_v58, %v6083_v54 }
0x2853   :  { %v6089_v59 = vpop.eup %6088 }
0x2854   :  { %v4619_v60 = vmul.f32 %v6089_v59, %v6085_v32 }
0x2856   :  { %5911 = vmatprep.mubr.msk.f32.mxu0 %vm226_vm5, %v4619_v60 }
0x2857   :  { %5912 = vmatmul.mubr.msk.f32.vlgmr.msra.gmra.mxu0 %vm226_vm5, %v4620_v45  ;;  %v5163_v45 = vld [vmem:[#allocation8 + $0x278] ss:$0 sm:$0xff] }
0x2858   :  { %5915 = vmatpush3.msra.mxu0 %v6168_v2 }
0x2859   :  { %5916 = vmatprep.subr.mxu0 %v6169_v56 }
0x285a   :  { %5917 = vmatpush3.msra.mxu0 %v6169_v56 }
0x285b   :  { %5918 = vmatprep.subr.mxu0 %v6170_v50 }
0x285c   :  { %5919 = vmatpush3.msra.mxu0 %v6170_v50  ;;  %v5164_v50 = vld [vmem:[#allocation8 + $0x280] ss:$0 sm:$0xff] }
0x285d   :  { %5920 = vmatprep.subr.mxu0 %v6171_v61 }
0x285e   :  { %5921 = vmatpush3.msra.mxu0 %v6171_v61 }
0x285f   :  { %5943 = vmatprep.subr.mxu0 %v6258_v0 }
0x2917   :  { %v5913_v1 = vpop.f32.mrf.mxu0 }
0x2918   :  { %4728 = vrot.lane.b32.xlu1 %v5913_v1, %s6269_s16 }
0x2919   :  { %v4699_v6 = vpop.f32.mrf.mxu0 }
0x291a   :  { %4726 = vrot.lane.b32.xlu0 %v4699_v6, %s6269_s16 }
0x298a   :  { %v4729_v23 = vpop.permute.xlu1 %4728 }
0x298b   :  { %v4737_v33 = vsel %vm6959_vm14, %v4735_v11, %v4729_v23 }
0x298c   :  { %v4727_v12 = vpop.permute.xlu0 %4726 }
0x298d   :  { %v4736_v42 = vsel %vm6958_vm3, %v4734_v7, %v4727_v12 }
0x298e   :  { %5922 = vmatprep.mubr.msk.f32.mxu0 %vm1212_vm6, %v4736_v42 }
0x298f   :  { %5923 = vmatmul.mubr.msk.f32.vlgmr.msra.gmra.mxu0 %vm1212_vm6, %v4737_v33 }
0x2990   :  { %5944 = vmatpush3.msk.msra.mxu0 %vm766_vm9, %v6727_v5  ;;  %5945 = vmatprep.mubr.msk.f32.mxu0 %vm6259_vm0, %v6258_v0 }
0x2993   :  { %5946 = vmatmul.mubr.msk.f32.vlgmr.msra.gmra.mxu0 %vm762_vm10, %v6172_v19 }
0x2a4f   :  { %v5924_v20 = vpop.f32.mrf.mxu0 }
0x2a50   :  { %v4816_v57 = vadd.f32 %v6173_v44, %v5924_v20 }
0x2a51   :  { %v4810_v9 = vpop.f32.mrf.mxu0 }
0x2a52   :  { %v4811_v14 = vadd.f32 %v6173_v44, %v4810_v9  ;;  %5926 = vmatpush3.msra.mxu1 %v4816_v57 }
0x2a53   :  { %5927 = vmatprep.subr.mxu1 %v6258_v0  ;;  %v6939_v55 = vpop.f32.mrf.mxu0 }
0x2a54   :  { %5928 = vmatpush3.msra.mxu1 %v4811_v14 }
0x2a55   :  { %5930 = vmatmul.mubr.msk.f32.vlgmr.msra.gmra.mxu1 %vm226_vm5, %v6174_v53  ;;  %5932 = vmatprep.subr.mxu1 %v6258_v0 }
0x2a56   :  { %5940 = vmatprep.mubr.msk.f32.mxu1 %vm6259_vm0, %v6258_v0 }
0x2b15   :  { %v4885_v5 = vpop.f32.mrf.mxu1 }
0x2b16   :  { %v4886_v18 = vadd.f32 %v4885_v5, %v6618_v3  ;;  %v138_v3 = vld [vmem:[#allocation8 + $0x270] sm:$0x3f] }
0x2b17   :  { %v5931_v17 = vpop.f32.mrf.mxu1 }
0x2b18   :  { %v4889_v21 = vadd.f32 %v4886_v18, %v6753_v62 }
0x2b1a   :  { %4891 = vrot.lane.b32.xlu0 %v4889_v21, %s6254_s0 }
0x2b8c   :  { %v4892_v22 = vpop.permute.xlu0 %4891 }
0x2b8d   :  { %v4894_v24 = vsel %vm146_vm2, 0.0, %v4892_v22 }
0x2b8e   :  { %v4895_v39 = vsel %vm846_vm11, %v4894_v24, 0.0 }
0x2b8f   :  { %4909 = vrot.lane.b32.xlu1 %v4895_v39, %s6262_s9  ;;  %v4901_v25 = vrot.slane %v4895_v39, 4  ;;  %v4905_v26 = vrot.slane %v4895_v39, 6  ;;  %v4897_v28 = vrot.slane %v4895_v39, 2 }
0x2b91   :  { %4902 = vrot.lane.b32.xlu0 %v4901_v25, %s6261_s3 }
0x2b93   :  { %4906 = vrot.lane.b32.xlu1 %v4905_v26, %s6264_s11 }
0x2b95   :  { %4898 = vrot.lane.b32.xlu0 %v4897_v28, %s6263_s10 }
0x2b97   :  { %2486 = vperm.xlu1 %5969, %v138_v3  }
0x2c01   :  { %v4910_v62 = vpop.permute.xlu1 %4909 }
0x2c02   :  { %5933 = vmatpush3.msk.msra.mxu1 %vm995_vm15, %v4910_v62 }
0x2c03   :  { %v4903_v29 = vpop.permute.xlu0 %4902  ;;  %5934 = vmatprep.subr.mxu1 %v6258_v0 }
0x2c05   :  { %v4907_v30 = vpop.permute.xlu1 %4906 }
0x2c06   :  { %v4913_v41 = vsel %vm150_vm1, %v4903_v29, %v4907_v30 }
0x2c07   :  { %5935 = vmatpush3.msra.mxu1 %v4913_v41  ;;  %v4899_v34 = vpop.permute.xlu0 %4898 }
0x2c08   :  { %v4912_v35 = vsel %vm766_vm9, %v4899_v34, %v4903_v29  ;;  %5936 = vmatprep.subr.mxu1 %v6258_v0  ;;  %v4911_v36 = vsel %vm995_vm15, %v4895_v39, %v4899_v34 }
0x2c09   :  { %5937 = vmatpush3.msra.mxu1 %v4912_v35 }
0x2c0a   :  { %5938 = vmatprep.subr.mxu1 %v6258_v0 }
0x2c0b   :  { %5939 = vmatpush3.msra.mxu1 %v4911_v36 }
0x2c0c   :  { %5941 = vmatmul.mubr.msk.f32.vlgmr.msra.gmra.mxu1 %vm2489_vm8, %v6175_v43 }
0x2c12   :  { %v2487_v48 = vpop.permute.xlu1 %2486 }
0x2c13   :  { %v2562_v13 = vadd.f32 %v6704_v40, %v2487_v48  ;;  %v5947_v40 = vpop.f32.mrf.mxu0 }
0x2c15   :  { %v2565_v37 = vsel %vm944_vm13, %v2562_v13, 0.0 }
0x2c16   :  { %2566 = vadd.xlane.f32.xlu0 %v2565_v37 }
0x2c9f   :  { %v2567_v38 = vpop.xlane.xlu0 %2566 }
0x2ca0   :  { %v2568_v31 = vmul.f32 0.03125, %v2567_v38 }
0x2ca2   :  { %v2569_v15 = vsub.f32 %v2562_v13, %v2568_v31 }
0x2ca4   :  { %v2570_v54 = vmul.f32 %v2569_v15, %v2569_v15 }
0x2ca6   :  { %v2571_v8 = vsel %vm944_vm13, %v2570_v54, 0.0 }
0x2ca7   :  { %2572 = vadd.xlane.f32.xlu0 %v2571_v8 }
0x2ccc   :  { %v4982_v32 = vpop.f32.mrf.mxu1 }
0x2ccd   :  { %v4983_v47 = vadd.f32 %v4982_v32, %v2487_v48 }
0x2cce   :  { %v5942_v0 = vpop.f32.mrf.mxu1 }
0x2ccf   :  { %v4986_v49 = vsel %vm944_vm13, %v4983_v47, 0.0 }
0x2cd0   :  { %4987 = vadd.xlane.f32.xlu1 %v4986_v49 }
0x2ce1   :  { %2607 = vperm.xlu1 %5969, %v142_v63  }
0x2d30   :  { %v2573_v2 = vpop.xlane.xlu0 %2572 }
0x2d31   :  { %v2574_v58 = vmul.f32 0.03125, %v2573_v2 }
0x2d33   :  { %v2575_v59 = vadd.f32 1e-05, %v2574_v58 }
0x2d35   :  { %6090 = vrsqrt.f32 %v2575_v59 }
0x2d42   :  { %v6091_v60 = vpop.eup %6090 }
0x2d43   :  { %v2577_v56 = vmul.f32 %v6091_v60, %v2569_v15 }
0x2d45   :  { %v2582_v61 = vmul.f32 %v5163_v45, %v2577_v56 }
0x2d47   :  { %v2587_v1 = vadd.f32 %v5164_v50, %v2582_v61 }
0x2d49   :  { %v2589_v6 = vand.u32 2147483647, %v2587_v1  ;;  %v2588_v57 = vmax.f32 %v2587_v1, 0.0 }
0x2d4b   :  { %v2590_v16 = vsub.f32 0.0, %v2589_v6 }
0x2d4d   :  { %v2591_v51 = vmul.f32 1.442695, %v2590_v16 }
0x2d4f   :  { %6092 = vpow2.f32 %v2591_v51 }
0x2d59   :  { %v4988_v52 = vpop.xlane.xlu1 %4987 }
0x2d5a   :  { %v4989_v4 = vmul.f32 0.03125, %v4988_v52 }
0x2d5c   :  { %v6093_v46 = vpop.eup %6092  ;;  %v4990_v23 = vsub.f32 %v4983_v47, %v4989_v4 }
0x2d5d   :  { %v2593_v10 = vadd.f32 1.0, %v6093_v46  ;;  %v2596_v11 = vmul.f32 -0.5, %v6093_v46  ;;  %v2599_v33 = vand.u32 2147483647, %v6093_v46  ;;  %v2608_v53 = vpop.permute.xlu1 %2607 }
0x2d5e   :  { %v4991_v7 = vmul.f32 %v4990_v23, %v4990_v23  ;;  %v2683_v17 = vadd.f32 %v6623_v27, %v2608_v53  ;;  %v5088_v54 = vadd.f32 %v6939_v55, %v2608_v53 }
0x2d5f   :  { %6094 = vlog2.f32 %v2593_v10  ;;  %v2597_v42 = vadd.f32 1.0, %v2596_v11  ;;  %vm2600_vm0 = vcmp.lt.f32.partialorder %v2599_v33, 0.0004427343 }
0x2d60   :  { %v4992_v12 = vsel %vm944_vm13, %v4991_v7, 0.0 }
0x2d61   :  { %4993 = vadd.xlane.f32.xlu0 %v4992_v12  ;;  %v2598_v44 = vmul.f32 %v6093_v46, %v2597_v42 }
0x2d6c   :  { %v6095_v19 = vpop.eup %6094 }
0x2d6d   :  { %v2595_v20 = vmul.f32 0.6931472, %v6095_v19 }
0x2d6f   :  { %v2601_v9 = vsel %vm2600_vm0, %v2598_v44, %v2595_v20 }
0x2d70   :  { %v2602_v14 = vadd.f32 %v2601_v9, %v2588_v57 }
0x2d72   :  { %6096 = vtanh.f32 %v2602_v14 }
0x2d7f   :  { %v6097_v5 = vpop.eup %6096 }
0x2d80   :  { %v2604_v18 = vmul.f32 %v6097_v5, %v2587_v1 }
0x2d82   :  { %v2686_v21 = vadd.f32 %v2683_v17, %v2604_v18 }
0x2d84   :  { %2687 = vst.msk [vmem:[%s6956_s4] sm:$0x3f] %vm944_vm13, %v2686_v21 }
0x2dea   :  { %v4994_v22 = vpop.xlane.xlu0 %4993 }
0x2deb   :  { %v4995_v24 = vmul.f32 0.03125, %v4994_v22 }
0x2ded   :  { %v4996_v39 = vadd.f32 1e-05, %v4995_v24 }
0x2def   :  { %6098 = vrsqrt.f32 %v4996_v39 }
0x2dfc   :  { %v6099_v25 = vpop.eup %6098 }
0x2dfd   :  { %v4998_v26 = vmul.f32 %v6099_v25, %v4990_v23 }
0x2dff   :  { %v4999_v28 = vmul.f32 %v5163_v45, %v4998_v26 }
0x2e01   :  { %v5000_v3 = vadd.f32 %v5164_v50, %v4999_v28 }
0x2e03   :  { %v5002_v62 = vand.u32 2147483647, %v5000_v3  ;;  %v5001_v37 = vmax.f32 %v5000_v3, 0.0 }
0x2e05   :  { %v5003_v29 = vsub.f32 0.0, %v5002_v62 }
0x2e07   :  { %v5004_v30 = vmul.f32 1.442695, %v5003_v29 }
0x2e09   :  { %6100 = vpow2.f32 %v5004_v30 }
0x2e16   :  { %v6101_v41 = vpop.eup %6100 }
0x2e17   :  { %v5006_v27 = vadd.f32 1.0, %v6101_v41  ;;  %v5009_v34 = vmul.f32 -0.5, %v6101_v41  ;;  %v5012_v36 = vand.u32 2147483647, %v6101_v41 }
0x2e19   :  { %6102 = vlog2.f32 %v5006_v27  ;;  %v5010_v35 = vadd.f32 1.0, %v5009_v34  ;;  %vm5013_vm1 = vcmp.lt.f32.partialorder %v5012_v36, 0.0004427343 }
0x2e1b   :  { %v5011_v13 = vmul.f32 %v6101_v41, %v5010_v35 }
0x2e26   :  { %v6103_v43 = vpop.eup %6102 }
0x2e27   :  { %v5008_v48 = vmul.f32 0.6931472, %v6103_v43 }
0x2e29   :  { %v5014_v38 = vsel %vm5013_vm1, %v5011_v13, %v5008_v48 }
0x2e2a   :  { %v5015_v31 = vadd.f32 %v5014_v38, %v5001_v37 }
0x2e2c   :  { %6104 = vtanh.f32 %v5015_v31 }
0x2e39   :  { %v6105_v15 = vpop.eup %6104 }
0x2e3a   :  { %v5017_v8 = vmul.f32 %v6105_v15, %v5000_v3 }
0x2e3c   :  { %v5091_v32 = vadd.f32 %v5088_v54, %v5017_v8 }
0x2e3e   :  { %5225 = vst.msk [vmem:[%s6956_s4 + $0x8] sm:$0x3f] %vm944_vm13, %v5091_v32 }
0x2e3f   :  { %5098 = vsyncpa [#allocation5], 1 }
0x2e40   :  { %5099 = vsyncpa [#allocation7], 1 }

</bundles_post_ra>
